<compile_context>
chip_gen: v7x
topology: tpu7x:2x2x1
jax: 0.10.0
libtpu: 0.0.40
codegen_flags: <defaults>
</compile_context>

<pallas_src>
import jax
import jax.numpy as jnp
from jax import lax
from jax.experimental import pallas as pl
from jax.experimental.pallas import tpu as pltpu

# ----------------- small, module-consistent config -----------------
N_VOCAB = 128
N_EMBED = 32
N_HIDDEN_E = 32          # must equal N_HIDDEN_G (module feeds E_hidden into hidden_to_logvar)
N_HIDDEN_G = 32
N_LAYERS_E = 1           # fused kernel is specialized to a single bidirectional encoder layer
N_LAYERS_G = 2
N_Z = 16
N_HIGHWAY_LAYERS = 2
BATCH = 2
SEQ = 8
B_PAD = 8                # pad batch to full sublane width

assert N_HIDDEN_E == N_HIDDEN_G, "original module requires n_hidden_E == n_hidden_G"


# ----------------------------- kernel -------------------------------
def _lstm_cell(gates, c_prev, h_dim):
    """LSTM cell from pre-activations (B, 4H), torch gate order i,f,g,o.
    One full-width sigmoid (unused g lanes are discarded) + one small tanh."""
    sig = jax.nn.sigmoid(gates)
    i = sig[:, 0 * h_dim:1 * h_dim]
    f = sig[:, 1 * h_dim:2 * h_dim]
    o = sig[:, 3 * h_dim:4 * h_dim]
    g = jnp.tanh(gates[:, 2 * h_dim:3 * h_dim])
    c_new = f * c_prev + i * g
    h_new = o * jnp.tanh(c_new)
    return h_new, c_new


def _vae_fused_kernel(
    # activations (time-major, batch padded to B_PAD, flattened to (T*B, E))
    x_ref, g_ref, eps_ref,
    # highway (stacked over layers; per layer W = [wg | wn | wl] pre-transposed)
    hw_w_ref, hw_b_ref,
    # encoder BiLSTM: fused x-projection (E, 8H), fused bias (1, 8H),
    # block-diagonal recurrent weight (2H, 8H), layout [fwd 4H | bwd 4H]
    wxe_ref, be_ref, whh_ref,
    # latent heads fused: (2H, 2*n_z) = [mu | logvar], bias (1, 2*n_z)
    wmulv_ref, bmulv_ref,
    # generator layer 1 (input weight split into x / z parts)
    w1x_ref, w1z_ref, w1h_ref, b1_ref,
    # generator layers 2..L (pre-split below/self weights, stacked over layers)
    wdb_ref, wds_ref, bdeep_ref,
    # output FC
    fcw_ref, fcb_ref,
    # outputs
    logits_ref, hn_ref, cn_ref, kld_ref,
    # scratch
    xpe_sc, xp1_sc, hall_sc,
):
    f32 = jnp.float32
    TB = logits_ref.shape[0]
    L, B, HG = hn_ref.shape
    H = whh_ref.shape[0] // 2        # encoder hidden
    T = TB // B
    E = x_ref.shape[1]
    nz = eps_ref.shape[1]
    n_hw = hw_w_ref.shape[0]

    # -------------------- Highway on encoder embeddings --------------------
    # one fused matmul per layer: y = x @ [wg|wn|wl] + [bg|bn|bl]
    x2d = x_ref[...]                                                  # (T*B, E)
    for l in range(n_hw):
        y = jnp.dot(x2d, hw_w_ref[l], preferred_element_type=f32) + hw_b_ref[l]
        gate = jax.nn.sigmoid(y[:, :E])
        non_linear = jax.nn.relu(y[:, E:2 * E])
        linear = y[:, 2 * E:]
        x2d = gate * non_linear + (1.0 - gate) * linear

    # ---- Encoder BiLSTM: fused fwd+bwd x-projection (biases folded), one matmul ----
    xpe_sc[...] = jnp.dot(x2d, wxe_ref[...], preferred_element_type=f32) + be_ref[...]

    whh = whh_ref[...]                                                # (2H, 8H) blockdiag

    def enc_body(t, carry):
        h_cat, c_f, c_b = carry                                       # (B,2H),(B,H),(B,H)
        tb_f = pl.multiple_of(t * B, B)
        tb_b = pl.multiple_of((T - 1 - t) * B, B)
        gx_f = xpe_sc[pl.ds(tb_f, B), pl.ds(0, 4 * H)]                # fwd x-proj @ t
        gx_b = xpe_sc[pl.ds(tb_b, B), pl.ds(4 * H, 4 * H)]            # bwd x-proj @ T-1-t
        gates = (jnp.concatenate([gx_f, gx_b], axis=-1)
                 + jnp.dot(h_cat, whh, preferred_element_type=f32))   # (B, 8H)
        h_f, c_f = _lstm_cell(gates[:, :4 * H], c_f, H)
        h_b, c_b = _lstm_cell(gates[:, 4 * H:], c_b, H)
        return jnp.concatenate([h_f, h_b], axis=-1), c_f, c_b

    zeros_bh = jnp.zeros((B, H), f32)
    h_cat, _, _ = lax.fori_loop(
        0, T, enc_body,
        (jnp.zeros((B, 2 * H), f32), zeros_bh, zeros_bh),
        unroll=True)

    # ------------------- latent: mu / logvar / z / KLD ----------------------
    e_hidden = h_cat                                                  # (B, 2H) = [h_fwd|h_bwd]
    mulv = jnp.dot(e_hidden, wmulv_ref[...], preferred_element_type=f32) + bmulv_ref[...]
    mu = mulv[:, :nz]
    logvar = mulv[:, nz:]
    z = mu + eps_ref[...] * jnp.exp(0.5 * logvar)                     # (B, n_z)

    row_id = lax.broadcasted_iota(jnp.int32, (B, 1), 0)
    valid = (row_id < BATCH).astype(f32)                              # mask padded batch rows
    per_row = jnp.sum(logvar - mu * mu - jnp.exp(logvar) + 1.0, axis=1, keepdims=True)
    kld_ref[...] = (-0.5 / BATCH) * jnp.sum(per_row * valid, axis=0, keepdims=True)

    # ---- generator: layer-1 x-projection hoisted; z/bias contribution hoisted too ----
    xp1_sc[...] = jnp.dot(g_ref[...], w1x_ref[...], preferred_element_type=f32)
    zb1 = jnp.dot(z, w1z_ref[...], preferred_element_type=f32) + b1_ref[...]   # (B, 4HG)

    w1h = w1h_ref[...]
    wdb = [wdb_ref[l] for l in range(L - 1)]       # input-from-below weights
    wds = [wds_ref[l] for l in range(L - 1)]       # self-recurrent weights
    bd = [bdeep_ref[l] for l in range(L - 1)]

    def gen_body(t, carry):
        hs, cs = carry
        tb = pl.multiple_of(t * B, B)
        # layer 1: only the recurrent matmul remains in the loop
        g1 = (xp1_sc[pl.ds(tb, B), :] + zb1
              + jnp.dot(hs[0], w1h, preferred_element_type=f32))
        h_below, c0 = _lstm_cell(g1, cs[0], HG)
        new_hs = [h_below]
        new_cs = [c0]
        # layers 2..L : self-dot (ready early, only needs last step) + below-dot
        for l in range(1, L):
            gl = (jnp.dot(hs[l], wds[l - 1], preferred_element_type=f32)
                  + jnp.dot(h_below, wdb[l - 1], preferred_element_type=f32)
                  + bd[l - 1])
            h_l, c_l = _lstm_cell(gl, cs[l], HG)
            new_hs.append(h_l)
            new_cs.append(c_l)
            h_below = h_l
        # stash top-layer hidden; the output FC is done once after the loop
        hall_sc[pl.ds(tb, B), :] = h_below
        return tuple(new_hs), tuple(new_cs)

    init_h = tuple(jnp.zeros((B, HG), f32) for _ in range(L))
    init_c = tuple(jnp.zeros((B, HG), f32) for _ in range(L))
    hs, cs = lax.fori_loop(0, T, gen_body, (init_h, init_c), unroll=True)

    for l in range(L):
        hn_ref[l] = hs[l]
        cn_ref[l] = cs[l]

    # ---- hoisted output FC: one (T*B, HG) @ (HG, V) matmul, one lane-dense store ----
    logits_ref[...] = (jnp.dot(hall_sc[...], fcw_ref[...], preferred_element_type=f32)
                       + fcb_ref[...])


# ---------------------------- wrappers ------------------------------
def _pack_params(p):
    """Pre-transpose / pre-concatenate all weights once, outside the kernel."""
    assert len(p['enc_lstm']) == 1, "fused kernel is specialized to n_layers_E == 1"
    hw = p['highway']
    enc = p['enc_lstm'][0]
    gen = p['gen']
    assert len(gen['lstm']) >= 2, "fused kernel assumes n_layers_G >= 2"
    E = N_EMBED
    H = N_HIDDEN_E
    f32 = jnp.float32

    # highway: one (E, 3E) weight per layer = [gate | non_linear | linear]
    hw_w = jnp.stack([jnp.concatenate([q['wg'].T, q['wn'].T, q['wl'].T], axis=1) for q in hw])
    hw_b = jnp.stack([jnp.concatenate([q['bg'], q['bn'], q['bl']], axis=1) for q in hw])

    # encoder BiLSTM: fused x-projection / bias; block-diagonal recurrent weight
    wxe = jnp.concatenate([enc['w_ih_f'].T, enc['w_ih_b'].T], axis=1)          # (E, 8H)
    be = jnp.concatenate([enc['b_f'], enc['b_b']], axis=1)                     # (1, 8H)
    whh = jnp.concatenate([
        jnp.concatenate([enc['w_hh_f'].T, jnp.zeros((H, 4 * H), f32)], axis=1),
        jnp.concatenate([jnp.zeros((H, 4 * H), f32), enc['w_hh_b'].T], axis=1),
    ], axis=0)                                                                 # (2H, 8H)

    # latent heads fused: [mu | logvar]
    wmulv = jnp.concatenate([p['w_mu'].T, p['w_lv'].T], axis=1)                # (2H, 2*n_z)
    bmulv = jnp.concatenate([p['b_mu'], p['b_lv']], axis=1)                    # (1, 2*n_z)

    # generator layer 1 (split x / z columns of W_ih)
    w1x = gen['lstm'][0]['w_ih'][:, :E].T
    w1z = gen['lstm'][0]['w_ih'][:, E:].T
    w1h = gen['lstm'][0]['w_hh'].T
    b1 = gen['lstm'][0]['b']

    # generator layers 2..L: pre-split below / self weights
    wdb = jnp.stack([q['w_ih'].T for q in gen['lstm'][1:]])
    wds = jnp.stack([q['w_hh'].T for q in gen['lstm'][1:]])
    bd = jnp.stack([q['b'] for q in gen['lstm'][1:]])

    return [hw_w, hw_b, wxe, be, whh, wmulv, bmulv,
            w1x, w1z, w1h, b1, wdb, wds, bd,
            gen['fc_w'].T, gen['fc_b']]


@jax.jit
def vae_forward(params, x_tok, g_tok, rng):
    B, T_ = x_tok.shape
    emb = params['embedding']

    # TODO(synk): embedding lookup (gather) and gaussian noise stay in plain JAX glue.
    x = emb[x_tok]                                                    # (B, T, E)
    g = emb[g_tok]                                                    # (B, T, E)
    eps = jax.random.normal(rng, (B, N_Z), dtype=jnp.float32)

    # pad batch to full sublane width, go time-major and flatten: (T*B_PAD, E)
    pad = B_PAD - B
    x2d = jnp.transpose(jnp.pad(x, ((0, pad), (0, 0), (0, 0))), (1, 0, 2)).reshape(
        T_ * B_PAD, N_EMBED)
    g2d = jnp.transpose(jnp.pad(g, ((0, pad), (0, 0), (0, 0))), (1, 0, 2)).reshape(
        T_ * B_PAD, N_EMBED)
    eps_p = jnp.pad(eps, ((0, pad), (0, 0)))

    logits2d, hn, cn, kld = pl.pallas_call(
        _vae_fused_kernel,
        out_shape=(
            jax.ShapeDtypeStruct((T_ * B_PAD, N_VOCAB), jnp.float32),
            jax.ShapeDtypeStruct((N_LAYERS_G, B_PAD, N_HIDDEN_G), jnp.float32),
            jax.ShapeDtypeStruct((N_LAYERS_G, B_PAD, N_HIDDEN_G), jnp.float32),
            jax.ShapeDtypeStruct((1, 1), jnp.float32),
        ),
        scratch_shapes=[
            pltpu.VMEM((T_ * B_PAD, 8 * N_HIDDEN_E), jnp.float32),    # fused enc fwd|bwd x-proj
            pltpu.VMEM((T_ * B_PAD, 4 * N_HIDDEN_G), jnp.float32),    # gen layer-1 x-proj
            pltpu.VMEM((T_ * B_PAD, N_HIDDEN_G), jnp.float32),        # gen top-layer hiddens
        ],
    )(x2d, g2d, eps_p, *_pack_params(params))

    logit = jnp.transpose(logits2d.reshape(T_, B_PAD, N_VOCAB), (1, 0, 2))[:B]  # (B, T, V)
    g_hidden = (hn[:, :B, :], cn[:, :B, :])
    return logit, g_hidden, kld[0, 0]


# --------------------------- param setup ----------------------------
def _uniform(key, shape, fan_in):
    s = 1.0 / jnp.sqrt(jnp.float32(fan_in))
    return jax.random.uniform(key, shape, jnp.float32, -s, s)


def init_params(key):
    keys = iter(jax.random.split(key, 128))
    p = {}
    p['embedding'] = jax.random.normal(next(keys), (N_VOCAB, N_EMBED), jnp.float32) * 0.1

    p['highway'] = []
    for _ in range(N_HIGHWAY_LAYERS):
        p['highway'].append({
            'wg': _uniform(next(keys), (N_EMBED, N_EMBED), N_EMBED),
            'bg': _uniform(next(keys), (1, N_EMBED), N_EMBED),
            'wn': _uniform(next(keys), (N_EMBED, N_EMBED), N_EMBED),
            'bn': _uniform(next(keys), (1, N_EMBED), N_EMBED),
            'wl': _uniform(next(keys), (N_EMBED, N_EMBED), N_EMBED),
            'bl': _uniform(next(keys), (1, N_EMBED), N_EMBED),
        })

    p['enc_lstm'] = []
    din = N_EMBED
    for _ in range(N_LAYERS_E):
        H = N_HIDDEN_E
        p['enc_lstm'].append({
            'w_ih_f': _uniform(next(keys), (4 * H, din), H),
            'w_hh_f': _uniform(next(keys), (4 * H, H), H),
            'b_f':    _uniform(next(keys), (1, 4 * H), H),   # b_ih + b_hh folded together
            'w_ih_b': _uniform(next(keys), (4 * H, din), H),
            'w_hh_b': _uniform(next(keys), (4 * H, H), H),
            'b_b':    _uniform(next(keys), (1, 4 * H), H),
        })
        din = 2 * H

    # hidden_to_mu / hidden_to_logvar (original module relies on n_hidden_E == n_hidden_G)
    p['w_mu'] = _uniform(next(keys), (N_Z, 2 * N_HIDDEN_E), 2 * N_HIDDEN_E)
    p['b_mu'] = _uniform(next(keys), (1, N_Z), 2 * N_HIDDEN_E)
    p['w_lv'] = _uniform(next(keys), (N_Z, 2 * N_HIDDEN_E), 2 * N_HIDDEN_E)
    p['b_lv'] = _uniform(next(keys), (1, N_Z), 2 * N_HIDDEN_E)

    gen = {'lstm': []}
    din = N_EMBED + N_Z
    for _ in range(N_LAYERS_G):
        H = N_HIDDEN_G
        gen['lstm'].append({
            'w_ih': _uniform(next(keys), (4 * H, din), H),
            'w_hh': _uniform(next(keys), (4 * H, H), H),
            'b':    _uniform(next(keys), (1, 4 * H), H),
        })
        din = H
    gen['fc_w'] = _uniform(next(keys), (N_VOCAB, N_HIDDEN_G), N_HIDDEN_G)
    gen['fc_b'] = _uniform(next(keys), (1, N_VOCAB), N_HIDDEN_G)
    p['gen'] = gen
    return p


# ------------------------------ main --------------------------------
if __name__ == "__main__":
    root = jax.random.PRNGKey(0)
    k_params, k_x, k_g, k_eps = jax.random.split(root, 4)

    params = init_params(k_params)
    x_tok = jax.random.randint(k_x, (BATCH, SEQ), 0, N_VOCAB, dtype=jnp.int32)
    g_tok = jax.random.randint(k_g, (BATCH, SEQ), 0, N_VOCAB, dtype=jnp.int32)

    logit, g_hidden, kld = vae_forward(params, x_tok, g_tok, k_eps)
    jax.block_until_ready((logit, g_hidden, kld))

    assert logit.shape == (BATCH, SEQ, N_VOCAB)
    assert g_hidden[0].shape == (N_LAYERS_G, BATCH, N_HIDDEN_G)
    assert g_hidden[1].shape == (N_LAYERS_G, BATCH, N_HIDDEN_G)
    assert kld.shape == ()
    assert bool(jnp.isfinite(logit).all()) and bool(jnp.isfinite(kld))
    print("KERNEL_OK")
</pallas_src>

<mosaic_0001>
module attributes {stable_mosaic.version = 11 : i64} {
  func.func @_vae_fused_kernel(%arg0: memref<64x32xf32, #tpu.memory_space<vmem>>, %arg1: memref<64x32xf32, #tpu.memory_space<vmem>>, %arg2: memref<8x16xf32, #tpu.memory_space<vmem>>, %arg3: memref<2x32x96xf32, #tpu.memory_space<vmem>>, %arg4: memref<2x1x96xf32, #tpu.memory_space<vmem>>, %arg5: memref<32x256xf32, #tpu.memory_space<vmem>>, %arg6: memref<1x256xf32, #tpu.memory_space<vmem>>, %arg7: memref<64x256xf32, #tpu.memory_space<vmem>>, %arg8: memref<64x32xf32, #tpu.memory_space<vmem>>, %arg9: memref<1x32xf32, #tpu.memory_space<vmem>>, %arg10: memref<32x128xf32, #tpu.memory_space<vmem>>, %arg11: memref<16x128xf32, #tpu.memory_space<vmem>>, %arg12: memref<32x128xf32, #tpu.memory_space<vmem>>, %arg13: memref<1x128xf32, #tpu.memory_space<vmem>>, %arg14: memref<1x32x128xf32, #tpu.memory_space<vmem>>, %arg15: memref<1x32x128xf32, #tpu.memory_space<vmem>>, %arg16: memref<1x1x128xf32, #tpu.memory_space<vmem>>, %arg17: memref<32x128xf32, #tpu.memory_space<vmem>>, %arg18: memref<1x128xf32, #tpu.memory_space<vmem>>, %arg19: memref<64x128xf32, #tpu.memory_space<vmem>>, %arg20: memref<2x8x32xf32, #tpu.memory_space<vmem>>, %arg21: memref<2x8x32xf32, #tpu.memory_space<vmem>>, %arg22: memref<1x1xf32, #tpu.memory_space<vmem>>, %arg23: memref<64x256xf32, #tpu.memory_space<vmem>>, %arg24: memref<64x128xf32, #tpu.memory_space<vmem>>, %arg25: memref<64x32xf32, #tpu.memory_space<vmem>>) attributes {dimension_semantics = [], scalar_prefetch = 0 : i64, scratch_operands = 3 : i64, tpu.core_type = #tpu.core_type<tc>} {
    %c0 = arith.constant 0 : index
    %c0_0 = arith.constant 0 : index
    %0 = vector.load %arg0[%c0, %c0_0] : memref<64x32xf32, #tpu.memory_space<vmem>>, vector<64x32xf32>
    %c0_1 = arith.constant 0 : index
    %c0_2 = arith.constant 0 : index
    %c0_3 = arith.constant 0 : index
    %1 = vector.load %arg3[%c0_1, %c0_2, %c0_3] : memref<2x32x96xf32, #tpu.memory_space<vmem>>, vector<1x32x96xf32>
    %2 = vector.shape_cast %1 : vector<1x32x96xf32> to vector<32x96xf32>
    %cst = arith.constant dense<0.000000e+00> : vector<64x96xf32>
    %3 = tpu.matmul %0, %2, %cst {dimension_numbers = #tpu.dot_dimension_numbers<[1], [0], [0], [1], [0, 0, 1, 1], [], []>} : vector<64x32xf32>, vector<32x96xf32>, vector<64x96xf32> -> vector<64x96xf32>
    %c0_4 = arith.constant 0 : index
    %c0_5 = arith.constant 0 : index
    %c0_6 = arith.constant 0 : index
    %4 = vector.load %arg4[%c0_4, %c0_5, %c0_6] : memref<2x1x96xf32, #tpu.memory_space<vmem>>, vector<1x1x96xf32>
    %5 = vector.shape_cast %4 : vector<1x1x96xf32> to vector<1x96xf32>
    %6 = vector.broadcast %5 : vector<1x96xf32> to vector<64x96xf32>
    %7 = arith.addf %3, %6 : vector<64x96xf32>
    %8 = vector.extract_strided_slice %7 {offsets = [0, 0], sizes = [64, 32], strides = [1, 1]} : vector<64x96xf32> to vector<64x32xf32>
    %9 = arith.negf %8 : vector<64x32xf32>
    %10 = math.exp %9 : vector<64x32xf32>
    %cst_7 = arith.constant 1.000000e+00 : f32
    %11 = vector.broadcast %cst_7 : f32 to vector<64x32xf32>
    %12 = arith.addf %11, %10 : vector<64x32xf32>
    %13 = arith.divf %11, %12 : vector<64x32xf32>
    %14 = vector.extract_strided_slice %7 {offsets = [0, 32], sizes = [64, 32], strides = [1, 1]} : vector<64x96xf32> to vector<64x32xf32>
    %cst_8 = arith.constant 0.000000e+00 : f32
    %15 = vector.broadcast %cst_8 : f32 to vector<64x32xf32>
    %16 = arith.maximumf %14, %15 : vector<64x32xf32>
    %17 = vector.extract_strided_slice %7 {offsets = [0, 64], sizes = [64, 32], strides = [1, 1]} : vector<64x96xf32> to vector<64x32xf32>
    %18 = arith.mulf %13, %16 : vector<64x32xf32>
    %cst_9 = arith.constant 1.000000e+00 : f32
    %19 = vector.broadcast %cst_9 : f32 to vector<64x32xf32>
    %20 = arith.subf %19, %13 : vector<64x32xf32>
    %21 = arith.mulf %20, %17 : vector<64x32xf32>
    %22 = arith.addf %18, %21 : vector<64x32xf32>
    %c1 = arith.constant 1 : index
    %c0_10 = arith.constant 0 : index
    %c0_11 = arith.constant 0 : index
    %23 = vector.load %arg3[%c1, %c0_10, %c0_11] : memref<2x32x96xf32, #tpu.memory_space<vmem>>, vector<1x32x96xf32>
    %24 = vector.shape_cast %23 : vector<1x32x96xf32> to vector<32x96xf32>
    %cst_12 = arith.constant dense<0.000000e+00> : vector<64x96xf32>
    %25 = tpu.matmul %22, %24, %cst_12 {dimension_numbers = #tpu.dot_dimension_numbers<[1], [0], [0], [1], [0, 0, 1, 1], [], []>} : vector<64x32xf32>, vector<32x96xf32>, vector<64x96xf32> -> vector<64x96xf32>
    %c1_13 = arith.constant 1 : index
    %c0_14 = arith.constant 0 : index
    %c0_15 = arith.constant 0 : index
    %26 = vector.load %arg4[%c1_13, %c0_14, %c0_15] : memref<2x1x96xf32, #tpu.memory_space<vmem>>, vector<1x1x96xf32>
    %27 = vector.shape_cast %26 : vector<1x1x96xf32> to vector<1x96xf32>
    %28 = vector.broadcast %27 : vector<1x96xf32> to vector<64x96xf32>
    %29 = arith.addf %25, %28 : vector<64x96xf32>
    %30 = vector.extract_strided_slice %29 {offsets = [0, 0], sizes = [64, 32], strides = [1, 1]} : vector<64x96xf32> to vector<64x32xf32>
    %31 = arith.negf %30 : vector<64x32xf32>
    %32 = math.exp %31 : vector<64x32xf32>
    %cst_16 = arith.constant 1.000000e+00 : f32
    %33 = vector.broadcast %cst_16 : f32 to vector<64x32xf32>
    %34 = arith.addf %33, %32 : vector<64x32xf32>
    %35 = arith.divf %33, %34 : vector<64x32xf32>
    %36 = vector.extract_strided_slice %29 {offsets = [0, 32], sizes = [64, 32], strides = [1, 1]} : vector<64x96xf32> to vector<64x32xf32>
    %cst_17 = arith.constant 0.000000e+00 : f32
    %37 = vector.broadcast %cst_17 : f32 to vector<64x32xf32>
    %38 = arith.maximumf %36, %37 : vector<64x32xf32>
    %39 = vector.extract_strided_slice %29 {offsets = [0, 64], sizes = [64, 32], strides = [1, 1]} : vector<64x96xf32> to vector<64x32xf32>
    %40 = arith.mulf %35, %38 : vector<64x32xf32>
    %cst_18 = arith.constant 1.000000e+00 : f32
    %41 = vector.broadcast %cst_18 : f32 to vector<64x32xf32>
    %42 = arith.subf %41, %35 : vector<64x32xf32>
    %43 = arith.mulf %42, %39 : vector<64x32xf32>
    %44 = arith.addf %40, %43 : vector<64x32xf32>
    %c0_19 = arith.constant 0 : index
    %c0_20 = arith.constant 0 : index
    %45 = vector.load %arg5[%c0_19, %c0_20] : memref<32x256xf32, #tpu.memory_space<vmem>>, vector<32x256xf32>
    %cst_21 = arith.constant dense<0.000000e+00> : vector<64x256xf32>
    %46 = tpu.matmul %44, %45, %cst_21 {dimension_numbers = #tpu.dot_dimension_numbers<[1], [0], [0], [1], [0, 0, 1, 1], [], []>} : vector<64x32xf32>, vector<32x256xf32>, vector<64x256xf32> -> vector<64x256xf32>
    %c0_22 = arith.constant 0 : index
    %c0_23 = arith.constant 0 : index
    %47 = vector.load %arg6[%c0_22, %c0_23] : memref<1x256xf32, #tpu.memory_space<vmem>>, vector<1x256xf32>
    %48 = vector.broadcast %47 : vector<1x256xf32> to vector<64x256xf32>
    %49 = arith.addf %46, %48 : vector<64x256xf32>
    %c0_24 = arith.constant 0 : index
    %c0_25 = arith.constant 0 : index
    %50 = vector.load %arg23[%c0_24, %c0_25] : memref<64x256xf32, #tpu.memory_space<vmem>>, vector<64x256xf32>
    tpu.vector_store %arg23[%c0_24, %c0_25], %49 {strides = array<i32>} : memref<64x256xf32, #tpu.memory_space<vmem>>, vector<64x256xf32>,
    %c0_26 = arith.constant 0 : index
    %c0_27 = arith.constant 0 : index
    %51 = vector.load %arg7[%c0_26, %c0_27] : memref<64x256xf32, #tpu.memory_space<vmem>>, vector<64x256xf32>
    %cst_28 = arith.constant 0.000000e+00 : f32
    %52 = vector.broadcast %cst_28 : f32 to vector<8x32xf32>
    %cst_29 = arith.constant 0.000000e+00 : f32
    %53 = vector.broadcast %cst_29 : f32 to vector<8x64xf32>
    %c0_i32 = arith.constant 0 : i32
    %c8_i32 = arith.constant 8 : i32
    %54 = arith.muli %c0_i32, %c8_i32 : i32
    %55 = tpu.assume_multiple %54, 8 : i32
    %c7_i32 = arith.constant 7 : i32
    %56 = arith.subi %c7_i32, %c0_i32 : i32
    %c8_i32_30 = arith.constant 8 : i32
    %57 = arith.muli %56, %c8_i32_30 : i32
    %58 = tpu.assume_multiple %57, 8 : i32
    %59 = arith.index_cast %55 : i32 to index
    %c0_31 = arith.constant 0 : index
    %60 = vector.load %arg23[%59, %c0_31] : memref<64x256xf32, #tpu.memory_space<vmem>>, vector<8x128xf32>
    %61 = arith.index_cast %58 : i32 to index
    %c128 = arith.constant 128 : index
    %62 = vector.load %arg23[%61, %c128] : memref<64x256xf32, #tpu.memory_space<vmem>>, vector<8x128xf32>
    %63 = tpu.concatenate %60, %62 in 1 : vector<8x128xf32>, vector<8x128xf32> -> vector<8x256xf32>
    %cst_32 = arith.constant dense<0.000000e+00> : vector<8x256xf32>
    %64 = tpu.matmul %53, %51, %cst_32 {dimension_numbers = #tpu.dot_dimension_numbers<[1], [0], [0], [1], [0, 0, 1, 1], [], []>} : vector<8x64xf32>, vector<64x256xf32>, vector<8x256xf32> -> vector<8x256xf32>
    %65 = arith.addf %63, %64 : vector<8x256xf32>
    %66 = vector.extract_strided_slice %65 {offsets = [0, 0], sizes = [8, 128], strides = [1, 1]} : vector<8x256xf32> to vector<8x128xf32>
    %67 = arith.negf %66 : vector<8x128xf32>
    %68 = math.exp %67 : vector<8x128xf32>
    %cst_33 = arith.constant 1.000000e+00 : f32
    %69 = vector.broadcast %cst_33 : f32 to vector<8x128xf32>
    %70 = arith.addf %69, %68 : vector<8x128xf32>
    %71 = arith.divf %69, %70 : vector<8x128xf32>
    %72 = vector.extract_strided_slice %71 {offsets = [0, 0], sizes = [8, 32], strides = [1, 1]} : vector<8x128xf32> to vector<8x32xf32>
    %73 = vector.extract_strided_slice %71 {offsets = [0, 32], sizes = [8, 32], strides = [1, 1]} : vector<8x128xf32> to vector<8x32xf32>
    %74 = vector.extract_strided_slice %71 {offsets = [0, 96], sizes = [8, 32], strides = [1, 1]} : vector<8x128xf32> to vector<8x32xf32>
    %75 = vector.extract_strided_slice %66 {offsets = [0, 64], sizes = [8, 32], strides = [1, 1]} : vector<8x128xf32> to vector<8x32xf32>
    %76 = math.tanh %75 : vector<8x32xf32>
    %77 = arith.mulf %73, %52 : vector<8x32xf32>
    %78 = arith.mulf %72, %76 : vector<8x32xf32>
    %79 = arith.addf %77, %78 : vector<8x32xf32>
    %80 = math.tanh %79 : vector<8x32xf32>
    %81 = arith.mulf %74, %80 : vector<8x32xf32>
    %82 = vector.extract_strided_slice %65 {offsets = [0, 128], sizes = [8, 128], strides = [1, 1]} : vector<8x256xf32> to vector<8x128xf32>
    %83 = arith.negf %82 : vector<8x128xf32>
    %84 = math.exp %83 : vector<8x128xf32>
    %cst_34 = arith.constant 1.000000e+00 : f32
    %85 = vector.broadcast %cst_34 : f32 to vector<8x128xf32>
    %86 = arith.addf %85, %84 : vector<8x128xf32>
    %87 = arith.divf %85, %86 : vector<8x128xf32>
    %88 = vector.extract_strided_slice %87 {offsets = [0, 0], sizes = [8, 32], strides = [1, 1]} : vector<8x128xf32> to vector<8x32xf32>
    %89 = vector.extract_strided_slice %87 {offsets = [0, 32], sizes = [8, 32], strides = [1, 1]} : vector<8x128xf32> to vector<8x32xf32>
    %90 = vector.extract_strided_slice %87 {offsets = [0, 96], sizes = [8, 32], strides = [1, 1]} : vector<8x128xf32> to vector<8x32xf32>
    %91 = vector.extract_strided_slice %82 {offsets = [0, 64], sizes = [8, 32], strides = [1, 1]} : vector<8x128xf32> to vector<8x32xf32>
    %92 = math.tanh %91 : vector<8x32xf32>
    %93 = arith.mulf %89, %52 : vector<8x32xf32>
    %94 = arith.mulf %88, %92 : vector<8x32xf32>
    %95 = arith.addf %93, %94 : vector<8x32xf32>
    %96 = math.tanh %95 : vector<8x32xf32>
    %97 = arith.mulf %90, %96 : vector<8x32xf32>
    %98 = tpu.concatenate %81, %97 in 1 : vector<8x32xf32>, vector<8x32xf32> -> vector<8x64xf32>
    %c1_i32 = arith.constant 1 : i32
    %c8_i32_35 = arith.constant 8 : i32
    %99 = arith.muli %c1_i32, %c8_i32_35 : i32
    %100 = tpu.assume_multiple %99, 8 : i32
    %c7_i32_36 = arith.constant 7 : i32
    %101 = arith.subi %c7_i32_36, %c1_i32 : i32
    %c8_i32_37 = arith.constant 8 : i32
    %102 = arith.muli %101, %c8_i32_37 : i32
    %103 = tpu.assume_multiple %102, 8 : i32
    %104 = arith.index_cast %100 : i32 to index
    %c0_38 = arith.constant 0 : index
    %105 = vector.load %arg23[%104, %c0_38] : memref<64x256xf32, #tpu.memory_space<vmem>>, vector<8x128xf32>
    %106 = arith.index_cast %103 : i32 to index
    %c128_39 = arith.constant 128 : index
    %107 = vector.load %arg23[%106, %c128_39] : memref<64x256xf32, #tpu.memory_space<vmem>>, vector<8x128xf32>
    %108 = tpu.concatenate %105, %107 in 1 : vector<8x128xf32>, vector<8x128xf32> -> vector<8x256xf32>
    %cst_40 = arith.constant dense<0.000000e+00> : vector<8x256xf32>
    %109 = tpu.matmul %98, %51, %cst_40 {dimension_numbers = #tpu.dot_dimension_numbers<[1], [0], [0], [1], [0, 0, 1, 1], [], []>} : vector<8x64xf32>, vector<64x256xf32>, vector<8x256xf32> -> vector<8x256xf32>
    %110 = arith.addf %108, %109 : vector<8x256xf32>
    %111 = vector.extract_strided_slice %110 {offsets = [0, 0], sizes = [8, 128], strides = [1, 1]} : vector<8x256xf32> to vector<8x128xf32>
    %112 = arith.negf %111 : vector<8x128xf32>
    %113 = math.exp %112 : vector<8x128xf32>
    %cst_41 = arith.constant 1.000000e+00 : f32
    %114 = vector.broadcast %cst_41 : f32 to vector<8x128xf32>
    %115 = arith.addf %114, %113 : vector<8x128xf32>
    %116 = arith.divf %114, %115 : vector<8x128xf32>
    %117 = vector.extract_strided_slice %116 {offsets = [0, 0], sizes = [8, 32], strides = [1, 1]} : vector<8x128xf32> to vector<8x32xf32>
    %118 = vector.extract_strided_slice %116 {offsets = [0, 32], sizes = [8, 32], strides = [1, 1]} : vector<8x128xf32> to vector<8x32xf32>
    %119 = vector.extract_strided_slice %116 {offsets = [0, 96], sizes = [8, 32], strides = [1, 1]} : vector<8x128xf32> to vector<8x32xf32>
    %120 = vector.extract_strided_slice %111 {offsets = [0, 64], sizes = [8, 32], strides = [1, 1]} : vector<8x128xf32> to vector<8x32xf32>
    %121 = math.tanh %120 : vector<8x32xf32>
    %122 = arith.mulf %118, %79 : vector<8x32xf32>
    %123 = arith.mulf %117, %121 : vector<8x32xf32>
    %124 = arith.addf %122, %123 : vector<8x32xf32>
    %125 = math.tanh %124 : vector<8x32xf32>
    %126 = arith.mulf %119, %125 : vector<8x32xf32>
    %127 = vector.extract_strided_slice %110 {offsets = [0, 128], sizes = [8, 128], strides = [1, 1]} : vector<8x256xf32> to vector<8x128xf32>
    %128 = arith.negf %127 : vector<8x128xf32>
    %129 = math.exp %128 : vector<8x128xf32>
    %cst_42 = arith.constant 1.000000e+00 : f32
    %130 = vector.broadcast %cst_42 : f32 to vector<8x128xf32>
    %131 = arith.addf %130, %129 : vector<8x128xf32>
    %132 = arith.divf %130, %131 : vector<8x128xf32>
    %133 = vector.extract_strided_slice %132 {offsets = [0, 0], sizes = [8, 32], strides = [1, 1]} : vector<8x128xf32> to vector<8x32xf32>
    %134 = vector.extract_strided_slice %132 {offsets = [0, 32], sizes = [8, 32], strides = [1, 1]} : vector<8x128xf32> to vector<8x32xf32>
    %135 = vector.extract_strided_slice %132 {offsets = [0, 96], sizes = [8, 32], strides = [1, 1]} : vector<8x128xf32> to vector<8x32xf32>
    %136 = vector.extract_strided_slice %127 {offsets = [0, 64], sizes = [8, 32], strides = [1, 1]} : vector<8x128xf32> to vector<8x32xf32>
    %137 = math.tanh %136 : vector<8x32xf32>
    %138 = arith.mulf %134, %95 : vector<8x32xf32>
    %139 = arith.mulf %133, %137 : vector<8x32xf32>
    %140 = arith.addf %138, %139 : vector<8x32xf32>
    %141 = math.tanh %140 : vector<8x32xf32>
    %142 = arith.mulf %135, %141 : vector<8x32xf32>
    %143 = tpu.concatenate %126, %142 in 1 : vector<8x32xf32>, vector<8x32xf32> -> vector<8x64xf32>
    %c2_i32 = arith.constant 2 : i32
    %c8_i32_43 = arith.constant 8 : i32
    %144 = arith.muli %c2_i32, %c8_i32_43 : i32
    %145 = tpu.assume_multiple %144, 8 : i32
    %c7_i32_44 = arith.constant 7 : i32
    %146 = arith.subi %c7_i32_44, %c2_i32 : i32
    %c8_i32_45 = arith.constant 8 : i32
    %147 = arith.muli %146, %c8_i32_45 : i32
    %148 = tpu.assume_multiple %147, 8 : i32
    %149 = arith.index_cast %145 : i32 to index
    %c0_46 = arith.constant 0 : index
    %150 = vector.load %arg23[%149, %c0_46] : memref<64x256xf32, #tpu.memory_space<vmem>>, vector<8x128xf32>
    %151 = arith.index_cast %148 : i32 to index
    %c128_47 = arith.constant 128 : index
    %152 = vector.load %arg23[%151, %c128_47] : memref<64x256xf32, #tpu.memory_space<vmem>>, vector<8x128xf32>
    %153 = tpu.concatenate %150, %152 in 1 : vector<8x128xf32>, vector<8x128xf32> -> vector<8x256xf32>
    %cst_48 = arith.constant dense<0.000000e+00> : vector<8x256xf32>
    %154 = tpu.matmul %143, %51, %cst_48 {dimension_numbers = #tpu.dot_dimension_numbers<[1], [0], [0], [1], [0, 0, 1, 1], [], []>} : vector<8x64xf32>, vector<64x256xf32>, vector<8x256xf32> -> vector<8x256xf32>
    %155 = arith.addf %153, %154 : vector<8x256xf32>
    %156 = vector.extract_strided_slice %155 {offsets = [0, 0], sizes = [8, 128], strides = [1, 1]} : vector<8x256xf32> to vector<8x128xf32>
    %157 = arith.negf %156 : vector<8x128xf32>
    %158 = math.exp %157 : vector<8x128xf32>
    %cst_49 = arith.constant 1.000000e+00 : f32
    %159 = vector.broadcast %cst_49 : f32 to vector<8x128xf32>
    %160 = arith.addf %159, %158 : vector<8x128xf32>
    %161 = arith.divf %159, %160 : vector<8x128xf32>
    %162 = vector.extract_strided_slice %161 {offsets = [0, 0], sizes = [8, 32], strides = [1, 1]} : vector<8x128xf32> to vector<8x32xf32>
    %163 = vector.extract_strided_slice %161 {offsets = [0, 32], sizes = [8, 32], strides = [1, 1]} : vector<8x128xf32> to vector<8x32xf32>
    %164 = vector.extract_strided_slice %161 {offsets = [0, 96], sizes = [8, 32], strides = [1, 1]} : vector<8x128xf32> to vector<8x32xf32>
    %165 = vector.extract_strided_slice %156 {offsets = [0, 64], sizes = [8, 32], strides = [1, 1]} : vector<8x128xf32> to vector<8x32xf32>
    %166 = math.tanh %165 : vector<8x32xf32>
    %167 = arith.mulf %163, %124 : vector<8x32xf32>
    %168 = arith.mulf %162, %166 : vector<8x32xf32>
    %169 = arith.addf %167, %168 : vector<8x32xf32>
    %170 = math.tanh %169 : vector<8x32xf32>
    %171 = arith.mulf %164, %170 : vector<8x32xf32>
    %172 = vector.extract_strided_slice %155 {offsets = [0, 128], sizes = [8, 128], strides = [1, 1]} : vector<8x256xf32> to vector<8x128xf32>
    %173 = arith.negf %172 : vector<8x128xf32>
    %174 = math.exp %173 : vector<8x128xf32>
    %cst_50 = arith.constant 1.000000e+00 : f32
    %175 = vector.broadcast %cst_50 : f32 to vector<8x128xf32>
    %176 = arith.addf %175, %174 : vector<8x128xf32>
    %177 = arith.divf %175, %176 : vector<8x128xf32>
    %178 = vector.extract_strided_slice %177 {offsets = [0, 0], sizes = [8, 32], strides = [1, 1]} : vector<8x128xf32> to vector<8x32xf32>
    %179 = vector.extract_strided_slice %177 {offsets = [0, 32], sizes = [8, 32], strides = [1, 1]} : vector<8x128xf32> to vector<8x32xf32>
    %180 = vector.extract_strided_slice %177 {offsets = [0, 96], sizes = [8, 32], strides = [1, 1]} : vector<8x128xf32> to vector<8x32xf32>
    %181 = vector.extract_strided_slice %172 {offsets = [0, 64], sizes = [8, 32], strides = [1, 1]} : vector<8x128xf32> to vector<8x32xf32>
    %182 = math.tanh %181 : vector<8x32xf32>
    %183 = arith.mulf %179, %140 : vector<8x32xf32>
    %184 = arith.mulf %178, %182 : vector<8x32xf32>
    %185 = arith.addf %183, %184 : vector<8x32xf32>
    %186 = math.tanh %185 : vector<8x32xf32>
    %187 = arith.mulf %180, %186 : vector<8x32xf32>
    %188 = tpu.concatenate %171, %187 in 1 : vector<8x32xf32>, vector<8x32xf32> -> vector<8x64xf32>
    %c3_i32 = arith.constant 3 : i32
    %c8_i32_51 = arith.constant 8 : i32
    %189 = arith.muli %c3_i32, %c8_i32_51 : i32
    %190 = tpu.assume_multiple %189, 8 : i32
    %c7_i32_52 = arith.constant 7 : i32
    %191 = arith.subi %c7_i32_52, %c3_i32 : i32
    %c8_i32_53 = arith.constant 8 : i32
    %192 = arith.muli %191, %c8_i32_53 : i32
    %193 = tpu.assume_multiple %192, 8 : i32
    %194 = arith.index_cast %190 : i32 to index
    %c0_54 = arith.constant 0 : index
    %195 = vector.load %arg23[%194, %c0_54] : memref<64x256xf32, #tpu.memory_space<vmem>>, vector<8x128xf32>
    %196 = arith.index_cast %193 : i32 to index
    %c128_55 = arith.constant 128 : index
    %197 = vector.load %arg23[%196, %c128_55] : memref<64x256xf32, #tpu.memory_space<vmem>>, vector<8x128xf32>
    %198 = tpu.concatenate %195, %197 in 1 : vector<8x128xf32>, vector<8x128xf32> -> vector<8x256xf32>
    %cst_56 = arith.constant dense<0.000000e+00> : vector<8x256xf32>
    %199 = tpu.matmul %188, %51, %cst_56 {dimension_numbers = #tpu.dot_dimension_numbers<[1], [0], [0], [1], [0, 0, 1, 1], [], []>} : vector<8x64xf32>, vector<64x256xf32>, vector<8x256xf32> -> vector<8x256xf32>
    %200 = arith.addf %198, %199 : vector<8x256xf32>
    %201 = vector.extract_strided_slice %200 {offsets = [0, 0], sizes = [8, 128], strides = [1, 1]} : vector<8x256xf32> to vector<8x128xf32>
    %202 = arith.negf %201 : vector<8x128xf32>
    %203 = math.exp %202 : vector<8x128xf32>
    %cst_57 = arith.constant 1.000000e+00 : f32
    %204 = vector.broadcast %cst_57 : f32 to vector<8x128xf32>
    %205 = arith.addf %204, %203 : vector<8x128xf32>
    %206 = arith.divf %204, %205 : vector<8x128xf32>
    %207 = vector.extract_strided_slice %206 {offsets = [0, 0], sizes = [8, 32], strides = [1, 1]} : vector<8x128xf32> to vector<8x32xf32>
    %208 = vector.extract_strided_slice %206 {offsets = [0, 32], sizes = [8, 32], strides = [1, 1]} : vector<8x128xf32> to vector<8x32xf32>
    %209 = vector.extract_strided_slice %206 {offsets = [0, 96], sizes = [8, 32], strides = [1, 1]} : vector<8x128xf32> to vector<8x32xf32>
    %210 = vector.extract_strided_slice %201 {offsets = [0, 64], sizes = [8, 32], strides = [1, 1]} : vector<8x128xf32> to vector<8x32xf32>
    %211 = math.tanh %210 : vector<8x32xf32>
    %212 = arith.mulf %208, %169 : vector<8x32xf32>
    %213 = arith.mulf %207, %211 : vector<8x32xf32>
    %214 = arith.addf %212, %213 : vector<8x32xf32>
    %215 = math.tanh %214 : vector<8x32xf32>
    %216 = arith.mulf %209, %215 : vector<8x32xf32>
    %217 = vector.extract_strided_slice %200 {offsets = [0, 128], sizes = [8, 128], strides = [1, 1]} : vector<8x256xf32> to vector<8x128xf32>
    %218 = arith.negf %217 : vector<8x128xf32>
    %219 = math.exp %218 : vector<8x128xf32>
    %cst_58 = arith.constant 1.000000e+00 : f32
    %220 = vector.broadcast %cst_58 : f32 to vector<8x128xf32>
    %221 = arith.addf %220, %219 : vector<8x128xf32>
    %222 = arith.divf %220, %221 : vector<8x128xf32>
    %223 = vector.extract_strided_slice %222 {offsets = [0, 0], sizes = [8, 32], strides = [1, 1]} : vector<8x128xf32> to vector<8x32xf32>
    %224 = vector.extract_strided_slice %222 {offsets = [0, 32], sizes = [8, 32], strides = [1, 1]} : vector<8x128xf32> to vector<8x32xf32>
    %225 = vector.extract_strided_slice %222 {offsets = [0, 96], sizes = [8, 32], strides = [1, 1]} : vector<8x128xf32> to vector<8x32xf32>
    %226 = vector.extract_strided_slice %217 {offsets = [0, 64], sizes = [8, 32], strides = [1, 1]} : vector<8x128xf32> to vector<8x32xf32>
    %227 = math.tanh %226 : vector<8x32xf32>
    %228 = arith.mulf %224, %185 : vector<8x32xf32>
    %229 = arith.mulf %223, %227 : vector<8x32xf32>
    %230 = arith.addf %228, %229 : vector<8x32xf32>
    %231 = math.tanh %230 : vector<8x32xf32>
    %232 = arith.mulf %225, %231 : vector<8x32xf32>
    %233 = tpu.concatenate %216, %232 in 1 : vector<8x32xf32>, vector<8x32xf32> -> vector<8x64xf32>
    %c4_i32 = arith.constant 4 : i32
    %c8_i32_59 = arith.constant 8 : i32
    %234 = arith.muli %c4_i32, %c8_i32_59 : i32
    %235 = tpu.assume_multiple %234, 8 : i32
    %c7_i32_60 = arith.constant 7 : i32
    %236 = arith.subi %c7_i32_60, %c4_i32 : i32
    %c8_i32_61 = arith.constant 8 : i32
    %237 = arith.muli %236, %c8_i32_61 : i32
    %238 = tpu.assume_multiple %237, 8 : i32
    %239 = arith.index_cast %235 : i32 to index
    %c0_62 = arith.constant 0 : index
    %240 = vector.load %arg23[%239, %c0_62] : memref<64x256xf32, #tpu.memory_space<vmem>>, vector<8x128xf32>
    %241 = arith.index_cast %238 : i32 to index
    %c128_63 = arith.constant 128 : index
    %242 = vector.load %arg23[%241, %c128_63] : memref<64x256xf32, #tpu.memory_space<vmem>>, vector<8x128xf32>
    %243 = tpu.concatenate %240, %242 in 1 : vector<8x128xf32>, vector<8x128xf32> -> vector<8x256xf32>
    %cst_64 = arith.constant dense<0.000000e+00> : vector<8x256xf32>
    %244 = tpu.matmul %233, %51, %cst_64 {dimension_numbers = #tpu.dot_dimension_numbers<[1], [0], [0], [1], [0, 0, 1, 1], [], []>} : vector<8x64xf32>, vector<64x256xf32>, vector<8x256xf32> -> vector<8x256xf32>
    %245 = arith.addf %243, %244 : vector<8x256xf32>
    %246 = vector.extract_strided_slice %245 {offsets = [0, 0], sizes = [8, 128], strides = [1, 1]} : vector<8x256xf32> to vector<8x128xf32>
    %247 = arith.negf %246 : vector<8x128xf32>
    %248 = math.exp %247 : vector<8x128xf32>
    %cst_65 = arith.constant 1.000000e+00 : f32
    %249 = vector.broadcast %cst_65 : f32 to vector<8x128xf32>
    %250 = arith.addf %249, %248 : vector<8x128xf32>
    %251 = arith.divf %249, %250 : vector<8x128xf32>
    %252 = vector.extract_strided_slice %251 {offsets = [0, 0], sizes = [8, 32], strides = [1, 1]} : vector<8x128xf32> to vector<8x32xf32>
    %253 = vector.extract_strided_slice %251 {offsets = [0, 32], sizes = [8, 32], strides = [1, 1]} : vector<8x128xf32> to vector<8x32xf32>
    %254 = vector.extract_strided_slice %251 {offsets = [0, 96], sizes = [8, 32], strides = [1, 1]} : vector<8x128xf32> to vector<8x32xf32>
    %255 = vector.extract_strided_slice %246 {offsets = [0, 64], sizes = [8, 32], strides = [1, 1]} : vector<8x128xf32> to vector<8x32xf32>
    %256 = math.tanh %255 : vector<8x32xf32>
    %257 = arith.mulf %253, %214 : vector<8x32xf32>
    %258 = arith.mulf %252, %256 : vector<8x32xf32>
    %259 = arith.addf %257, %258 : vector<8x32xf32>
    %260 = math.tanh %259 : vector<8x32xf32>
    %261 = arith.mulf %254, %260 : vector<8x32xf32>
    %262 = vector.extract_strided_slice %245 {offsets = [0, 128], sizes = [8, 128], strides = [1, 1]} : vector<8x256xf32> to vector<8x128xf32>
    %263 = arith.negf %262 : vector<8x128xf32>
    %264 = math.exp %263 : vector<8x128xf32>
    %cst_66 = arith.constant 1.000000e+00 : f32
    %265 = vector.broadcast %cst_66 : f32 to vector<8x128xf32>
    %266 = arith.addf %265, %264 : vector<8x128xf32>
    %267 = arith.divf %265, %266 : vector<8x128xf32>
    %268 = vector.extract_strided_slice %267 {offsets = [0, 0], sizes = [8, 32], strides = [1, 1]} : vector<8x128xf32> to vector<8x32xf32>
    %269 = vector.extract_strided_slice %267 {offsets = [0, 32], sizes = [8, 32], strides = [1, 1]} : vector<8x128xf32> to vector<8x32xf32>
    %270 = vector.extract_strided_slice %267 {offsets = [0, 96], sizes = [8, 32], strides = [1, 1]} : vector<8x128xf32> to vector<8x32xf32>
    %271 = vector.extract_strided_slice %262 {offsets = [0, 64], sizes = [8, 32], strides = [1, 1]} : vector<8x128xf32> to vector<8x32xf32>
    %272 = math.tanh %271 : vector<8x32xf32>
    %273 = arith.mulf %269, %230 : vector<8x32xf32>
    %274 = arith.mulf %268, %272 : vector<8x32xf32>
    %275 = arith.addf %273, %274 : vector<8x32xf32>
    %276 = math.tanh %275 : vector<8x32xf32>
    %277 = arith.mulf %270, %276 : vector<8x32xf32>
    %278 = tpu.concatenate %261, %277 in 1 : vector<8x32xf32>, vector<8x32xf32> -> vector<8x64xf32>
    %c5_i32 = arith.constant 5 : i32
    %c8_i32_67 = arith.constant 8 : i32
    %279 = arith.muli %c5_i32, %c8_i32_67 : i32
    %280 = tpu.assume_multiple %279, 8 : i32
    %c7_i32_68 = arith.constant 7 : i32
    %281 = arith.subi %c7_i32_68, %c5_i32 : i32
    %c8_i32_69 = arith.constant 8 : i32
    %282 = arith.muli %281, %c8_i32_69 : i32
    %283 = tpu.assume_multiple %282, 8 : i32
    %284 = arith.index_cast %280 : i32 to index
    %c0_70 = arith.constant 0 : index
    %285 = vector.load %arg23[%284, %c0_70] : memref<64x256xf32, #tpu.memory_space<vmem>>, vector<8x128xf32>
    %286 = arith.index_cast %283 : i32 to index
    %c128_71 = arith.constant 128 : index
    %287 = vector.load %arg23[%286, %c128_71] : memref<64x256xf32, #tpu.memory_space<vmem>>, vector<8x128xf32>
    %288 = tpu.concatenate %285, %287 in 1 : vector<8x128xf32>, vector<8x128xf32> -> vector<8x256xf32>
    %cst_72 = arith.constant dense<0.000000e+00> : vector<8x256xf32>
    %289 = tpu.matmul %278, %51, %cst_72 {dimension_numbers = #tpu.dot_dimension_numbers<[1], [0], [0], [1], [0, 0, 1, 1], [], []>} : vector<8x64xf32>, vector<64x256xf32>, vector<8x256xf32> -> vector<8x256xf32>
    %290 = arith.addf %288, %289 : vector<8x256xf32>
    %291 = vector.extract_strided_slice %290 {offsets = [0, 0], sizes = [8, 128], strides = [1, 1]} : vector<8x256xf32> to vector<8x128xf32>
    %292 = arith.negf %291 : vector<8x128xf32>
    %293 = math.exp %292 : vector<8x128xf32>
    %cst_73 = arith.constant 1.000000e+00 : f32
    %294 = vector.broadcast %cst_73 : f32 to vector<8x128xf32>
    %295 = arith.addf %294, %293 : vector<8x128xf32>
    %296 = arith.divf %294, %295 : vector<8x128xf32>
    %297 = vector.extract_strided_slice %296 {offsets = [0, 0], sizes = [8, 32], strides = [1, 1]} : vector<8x128xf32> to vector<8x32xf32>
    %298 = vector.extract_strided_slice %296 {offsets = [0, 32], sizes = [8, 32], strides = [1, 1]} : vector<8x128xf32> to vector<8x32xf32>
    %299 = vector.extract_strided_slice %296 {offsets = [0, 96], sizes = [8, 32], strides = [1, 1]} : vector<8x128xf32> to vector<8x32xf32>
    %300 = vector.extract_strided_slice %291 {offsets = [0, 64], sizes = [8, 32], strides = [1, 1]} : vector<8x128xf32> to vector<8x32xf32>
    %301 = math.tanh %300 : vector<8x32xf32>
    %302 = arith.mulf %298, %259 : vector<8x32xf32>
    %303 = arith.mulf %297, %301 : vector<8x32xf32>
    %304 = arith.addf %302, %303 : vector<8x32xf32>
    %305 = math.tanh %304 : vector<8x32xf32>
    %306 = arith.mulf %299, %305 : vector<8x32xf32>
    %307 = vector.extract_strided_slice %290 {offsets = [0, 128], sizes = [8, 128], strides = [1, 1]} : vector<8x256xf32> to vector<8x128xf32>
    %308 = arith.negf %307 : vector<8x128xf32>
    %309 = math.exp %308 : vector<8x128xf32>
    %cst_74 = arith.constant 1.000000e+00 : f32
    %310 = vector.broadcast %cst_74 : f32 to vector<8x128xf32>
    %311 = arith.addf %310, %309 : vector<8x128xf32>
    %312 = arith.divf %310, %311 : vector<8x128xf32>
    %313 = vector.extract_strided_slice %312 {offsets = [0, 0], sizes = [8, 32], strides = [1, 1]} : vector<8x128xf32> to vector<8x32xf32>
    %314 = vector.extract_strided_slice %312 {offsets = [0, 32], sizes = [8, 32], strides = [1, 1]} : vector<8x128xf32> to vector<8x32xf32>
    %315 = vector.extract_strided_slice %312 {offsets = [0, 96], sizes = [8, 32], strides = [1, 1]} : vector<8x128xf32> to vector<8x32xf32>
    %316 = vector.extract_strided_slice %307 {offsets = [0, 64], sizes = [8, 32], strides = [1, 1]} : vector<8x128xf32> to vector<8x32xf32>
    %317 = math.tanh %316 : vector<8x32xf32>
    %318 = arith.mulf %314, %275 : vector<8x32xf32>
    %319 = arith.mulf %313, %317 : vector<8x32xf32>
    %320 = arith.addf %318, %319 : vector<8x32xf32>
    %321 = math.tanh %320 : vector<8x32xf32>
    %322 = arith.mulf %315, %321 : vector<8x32xf32>
    %323 = tpu.concatenate %306, %322 in 1 : vector<8x32xf32>, vector<8x32xf32> -> vector<8x64xf32>
    %c6_i32 = arith.constant 6 : i32
    %c8_i32_75 = arith.constant 8 : i32
    %324 = arith.muli %c6_i32, %c8_i32_75 : i32
    %325 = tpu.assume_multiple %324, 8 : i32
    %c7_i32_76 = arith.constant 7 : i32
    %326 = arith.subi %c7_i32_76, %c6_i32 : i32
    %c8_i32_77 = arith.constant 8 : i32
    %327 = arith.muli %326, %c8_i32_77 : i32
    %328 = tpu.assume_multiple %327, 8 : i32
    %329 = arith.index_cast %325 : i32 to index
    %c0_78 = arith.constant 0 : index
    %330 = vector.load %arg23[%329, %c0_78] : memref<64x256xf32, #tpu.memory_space<vmem>>, vector<8x128xf32>
    %331 = arith.index_cast %328 : i32 to index
    %c128_79 = arith.constant 128 : index
    %332 = vector.load %arg23[%331, %c128_79] : memref<64x256xf32, #tpu.memory_space<vmem>>, vector<8x128xf32>
    %333 = tpu.concatenate %330, %332 in 1 : vector<8x128xf32>, vector<8x128xf32> -> vector<8x256xf32>
    %cst_80 = arith.constant dense<0.000000e+00> : vector<8x256xf32>
    %334 = tpu.matmul %323, %51, %cst_80 {dimension_numbers = #tpu.dot_dimension_numbers<[1], [0], [0], [1], [0, 0, 1, 1], [], []>} : vector<8x64xf32>, vector<64x256xf32>, vector<8x256xf32> -> vector<8x256xf32>
    %335 = arith.addf %333, %334 : vector<8x256xf32>
    %336 = vector.extract_strided_slice %335 {offsets = [0, 0], sizes = [8, 128], strides = [1, 1]} : vector<8x256xf32> to vector<8x128xf32>
    %337 = arith.negf %336 : vector<8x128xf32>
    %338 = math.exp %337 : vector<8x128xf32>
    %cst_81 = arith.constant 1.000000e+00 : f32
    %339 = vector.broadcast %cst_81 : f32 to vector<8x128xf32>
    %340 = arith.addf %339, %338 : vector<8x128xf32>
    %341 = arith.divf %339, %340 : vector<8x128xf32>
    %342 = vector.extract_strided_slice %341 {offsets = [0, 0], sizes = [8, 32], strides = [1, 1]} : vector<8x128xf32> to vector<8x32xf32>
    %343 = vector.extract_strided_slice %341 {offsets = [0, 32], sizes = [8, 32], strides = [1, 1]} : vector<8x128xf32> to vector<8x32xf32>
    %344 = vector.extract_strided_slice %341 {offsets = [0, 96], sizes = [8, 32], strides = [1, 1]} : vector<8x128xf32> to vector<8x32xf32>
    %345 = vector.extract_strided_slice %336 {offsets = [0, 64], sizes = [8, 32], strides = [1, 1]} : vector<8x128xf32> to vector<8x32xf32>
    %346 = math.tanh %345 : vector<8x32xf32>
    %347 = arith.mulf %343, %304 : vector<8x32xf32>
    %348 = arith.mulf %342, %346 : vector<8x32xf32>
    %349 = arith.addf %347, %348 : vector<8x32xf32>
    %350 = math.tanh %349 : vector<8x32xf32>
    %351 = arith.mulf %344, %350 : vector<8x32xf32>
    %352 = vector.extract_strided_slice %335 {offsets = [0, 128], sizes = [8, 128], strides = [1, 1]} : vector<8x256xf32> to vector<8x128xf32>
    %353 = arith.negf %352 : vector<8x128xf32>
    %354 = math.exp %353 : vector<8x128xf32>
    %cst_82 = arith.constant 1.000000e+00 : f32
    %355 = vector.broadcast %cst_82 : f32 to vector<8x128xf32>
    %356 = arith.addf %355, %354 : vector<8x128xf32>
    %357 = arith.divf %355, %356 : vector<8x128xf32>
    %358 = vector.extract_strided_slice %357 {offsets = [0, 0], sizes = [8, 32], strides = [1, 1]} : vector<8x128xf32> to vector<8x32xf32>
    %359 = vector.extract_strided_slice %357 {offsets = [0, 32], sizes = [8, 32], strides = [1, 1]} : vector<8x128xf32> to vector<8x32xf32>
    %360 = vector.extract_strided_slice %357 {offsets = [0, 96], sizes = [8, 32], strides = [1, 1]} : vector<8x128xf32> to vector<8x32xf32>
    %361 = vector.extract_strided_slice %352 {offsets = [0, 64], sizes = [8, 32], strides = [1, 1]} : vector<8x128xf32> to vector<8x32xf32>
    %362 = math.tanh %361 : vector<8x32xf32>
    %363 = arith.mulf %359, %320 : vector<8x32xf32>
    %364 = arith.mulf %358, %362 : vector<8x32xf32>
    %365 = arith.addf %363, %364 : vector<8x32xf32>
    %366 = math.tanh %365 : vector<8x32xf32>
    %367 = arith.mulf %360, %366 : vector<8x32xf32>
    %368 = tpu.concatenate %351, %367 in 1 : vector<8x32xf32>, vector<8x32xf32> -> vector<8x64xf32>
    %c7_i32_83 = arith.constant 7 : i32
    %c8_i32_84 = arith.constant 8 : i32
    %369 = arith.muli %c7_i32_83, %c8_i32_84 : i32
    %370 = tpu.assume_multiple %369, 8 : i32
    %c7_i32_85 = arith.constant 7 : i32
    %371 = arith.subi %c7_i32_85, %c7_i32_83 : i32
    %c8_i32_86 = arith.constant 8 : i32
    %372 = arith.muli %371, %c8_i32_86 : i32
    %373 = tpu.assume_multiple %372, 8 : i32
    %374 = arith.index_cast %370 : i32 to index
    %c0_87 = arith.constant 0 : index
    %375 = vector.load %arg23[%374, %c0_87] : memref<64x256xf32, #tpu.memory_space<vmem>>, vector<8x128xf32>
    %376 = arith.index_cast %373 : i32 to index
    %c128_88 = arith.constant 128 : index
    %377 = vector.load %arg23[%376, %c128_88] : memref<64x256xf32, #tpu.memory_space<vmem>>, vector<8x128xf32>
    %378 = tpu.concatenate %375, %377 in 1 : vector<8x128xf32>, vector<8x128xf32> -> vector<8x256xf32>
    %cst_89 = arith.constant dense<0.000000e+00> : vector<8x256xf32>
    %379 = tpu.matmul %368, %51, %cst_89 {dimension_numbers = #tpu.dot_dimension_numbers<[1], [0], [0], [1], [0, 0, 1, 1], [], []>} : vector<8x64xf32>, vector<64x256xf32>, vector<8x256xf32> -> vector<8x256xf32>
    %380 = arith.addf %378, %379 : vector<8x256xf32>
    %381 = vector.extract_strided_slice %380 {offsets = [0, 0], sizes = [8, 128], strides = [1, 1]} : vector<8x256xf32> to vector<8x128xf32>
    %382 = arith.negf %381 : vector<8x128xf32>
    %383 = math.exp %382 : vector<8x128xf32>
    %cst_90 = arith.constant 1.000000e+00 : f32
    %384 = vector.broadcast %cst_90 : f32 to vector<8x128xf32>
    %385 = arith.addf %384, %383 : vector<8x128xf32>
    %386 = arith.divf %384, %385 : vector<8x128xf32>
    %387 = vector.extract_strided_slice %386 {offsets = [0, 0], sizes = [8, 32], strides = [1, 1]} : vector<8x128xf32> to vector<8x32xf32>
    %388 = vector.extract_strided_slice %386 {offsets = [0, 32], sizes = [8, 32], strides = [1, 1]} : vector<8x128xf32> to vector<8x32xf32>
    %389 = vector.extract_strided_slice %386 {offsets = [0, 96], sizes = [8, 32], strides = [1, 1]} : vector<8x128xf32> to vector<8x32xf32>
    %390 = vector.extract_strided_slice %381 {offsets = [0, 64], sizes = [8, 32], strides = [1, 1]} : vector<8x128xf32> to vector<8x32xf32>
    %391 = math.tanh %390 : vector<8x32xf32>
    %392 = arith.mulf %388, %349 : vector<8x32xf32>
    %393 = arith.mulf %387, %391 : vector<8x32xf32>
    %394 = arith.addf %392, %393 : vector<8x32xf32>
    %395 = math.tanh %394 : vector<8x32xf32>
    %396 = arith.mulf %389, %395 : vector<8x32xf32>
    %397 = vector.extract_strided_slice %380 {offsets = [0, 128], sizes = [8, 128], strides = [1, 1]} : vector<8x256xf32> to vector<8x128xf32>
    %398 = arith.negf %397 : vector<8x128xf32>
    %399 = math.exp %398 : vector<8x128xf32>
    %cst_91 = arith.constant 1.000000e+00 : f32
    %400 = vector.broadcast %cst_91 : f32 to vector<8x128xf32>
    %401 = arith.addf %400, %399 : vector<8x128xf32>
    %402 = arith.divf %400, %401 : vector<8x128xf32>
    %403 = vector.extract_strided_slice %402 {offsets = [0, 0], sizes = [8, 32], strides = [1, 1]} : vector<8x128xf32> to vector<8x32xf32>
    %404 = vector.extract_strided_slice %402 {offsets = [0, 32], sizes = [8, 32], strides = [1, 1]} : vector<8x128xf32> to vector<8x32xf32>
    %405 = vector.extract_strided_slice %402 {offsets = [0, 96], sizes = [8, 32], strides = [1, 1]} : vector<8x128xf32> to vector<8x32xf32>
    %406 = vector.extract_strided_slice %397 {offsets = [0, 64], sizes = [8, 32], strides = [1, 1]} : vector<8x128xf32> to vector<8x32xf32>
    %407 = math.tanh %406 : vector<8x32xf32>
    %408 = arith.mulf %404, %365 : vector<8x32xf32>
    %409 = arith.mulf %403, %407 : vector<8x32xf32>
    %410 = arith.addf %408, %409 : vector<8x32xf32>
    %411 = math.tanh %410 : vector<8x32xf32>
    %412 = arith.mulf %405, %411 : vector<8x32xf32>
    %413 = tpu.concatenate %396, %412 in 1 : vector<8x32xf32>, vector<8x32xf32> -> vector<8x64xf32>
    %c8_i32_92 = arith.constant 8 : i32
    %c0_93 = arith.constant 0 : index
    %c0_94 = arith.constant 0 : index
    %414 = vector.load %arg8[%c0_93, %c0_94] : memref<64x32xf32, #tpu.memory_space<vmem>>, vector<64x32xf32>
    %cst_95 = arith.constant dense<0.000000e+00> : vector<8x32xf32>
    %415 = tpu.matmul %413, %414, %cst_95 {dimension_numbers = #tpu.dot_dimension_numbers<[1], [0], [0], [1], [0, 0, 1, 1], [], []>} : vector<8x64xf32>, vector<64x32xf32>, vector<8x32xf32> -> vector<8x32xf32>
    %c0_96 = arith.constant 0 : index
    %c0_97 = arith.constant 0 : index
    %416 = vector.load %arg9[%c0_96, %c0_97] : memref<1x32xf32, #tpu.memory_space<vmem>>, vector<1x32xf32>
    %417 = vector.broadcast %416 : vector<1x32xf32> to vector<8x32xf32>
    %418 = arith.addf %415, %417 : vector<8x32xf32>
    %419 = vector.extract_strided_slice %418 {offsets = [0, 0], sizes = [8, 16], strides = [1, 1]} : vector<8x32xf32> to vector<8x16xf32>
    %420 = vector.extract_strided_slice %418 {offsets = [0, 16], sizes = [8, 16], strides = [1, 1]} : vector<8x32xf32> to vector<8x16xf32>
    %c0_98 = arith.constant 0 : index
    %c0_99 = arith.constant 0 : index
    %421 = vector.load %arg2[%c0_98, %c0_99] : memref<8x16xf32, #tpu.memory_space<vmem>>, vector<8x16xf32>
    %cst_100 = arith.constant 5.000000e-01 : f32
    %422 = vector.broadcast %cst_100 : f32 to vector<8x16xf32>
    %423 = arith.mulf %422, %420 : vector<8x16xf32>
    %424 = math.exp %423 : vector<8x16xf32>
    %425 = arith.mulf %421, %424 : vector<8x16xf32>
    %426 = arith.addf %419, %425 : vector<8x16xf32>
    %427 = tpu.iota {dimensions = array<i32: 0>} : vector<8x1xi32>
    %c2_i32_101 = arith.constant 2 : i32
    %428 = vector.broadcast %c2_i32_101 : i32 to vector<8x1xi32>
    %429 = arith.cmpi slt, %427, %428 : vector<8x1xi32>
    %430 = arith.extui %429 : vector<8x1xi1> to vector<8x1xi32>
    %431 = arith.sitofp %430 : vector<8x1xi32> to vector<8x1xf32>
    %432 = arith.mulf %419, %419 : vector<8x16xf32>
    %433 = arith.subf %420, %432 : vector<8x16xf32>
    %434 = math.exp %420 : vector<8x16xf32>
    %435 = arith.subf %433, %434 : vector<8x16xf32>
    %cst_102 = arith.constant 1.000000e+00 : f32
    %436 = vector.broadcast %cst_102 : f32 to vector<8x16xf32>
    %437 = arith.addf %435, %436 : vector<8x16xf32>
    %cst_103 = arith.constant dense<0.000000e+00> : vector<8xf32>
    %438 = vector.multi_reduction <add>, %437, %cst_103 [1] : vector<8x16xf32> to vector<8xf32>
    %439 = vector.shape_cast %438 : vector<8xf32> to vector<8x1xf32>
    %440 = arith.mulf %439, %431 : vector<8x1xf32>
    %cst_104 = arith.constant dense<0.000000e+00> : vector<1xf32>
    %441 = vector.multi_reduction <add>, %440, %cst_104 [0] : vector<8x1xf32> to vector<1xf32>
    %442 = vector.shape_cast %441 : vector<1xf32> to vector<1x1xf32>
    %cst_105 = arith.constant -2.500000e-01 : f32
    %443 = vector.broadcast %cst_105 : f32 to vector<1x1xf32>
    %444 = arith.mulf %443, %442 : vector<1x1xf32>
    %c0_106 = arith.constant 0 : index
    %c0_107 = arith.constant 0 : index
    %445 = vector.load %arg22[%c0_106, %c0_107] : memref<1x1xf32, #tpu.memory_space<vmem>>, vector<1x1xf32>
    tpu.vector_store %arg22[%c0_106, %c0_107], %444 {strides = array<i32>} : memref<1x1xf32, #tpu.memory_space<vmem>>, vector<1x1xf32>,
    %c0_108 = arith.constant 0 : index
    %c0_109 = arith.constant 0 : index
    %446 = vector.load %arg1[%c0_108, %c0_109] : memref<64x32xf32, #tpu.memory_space<vmem>>, vector<64x32xf32>
    %c0_110 = arith.constant 0 : index
    %c0_111 = arith.constant 0 : index
    %447 = vector.load %arg10[%c0_110, %c0_111] : memref<32x128xf32, #tpu.memory_space<vmem>>, vector<32x128xf32>
    %cst_112 = arith.constant dense<0.000000e+00> : vector<64x128xf32>
    %448 = tpu.matmul %446, %447, %cst_112 {dimension_numbers = #tpu.dot_dimension_numbers<[1], [0], [0], [1], [0, 0, 1, 1], [], []>} : vector<64x32xf32>, vector<32x128xf32>, vector<64x128xf32> -> vector<64x128xf32>
    %c0_113 = arith.constant 0 : index
    %c0_114 = arith.constant 0 : index
    %449 = vector.load %arg24[%c0_113, %c0_114] : memref<64x128xf32, #tpu.memory_space<vmem>>, vector<64x128xf32>
    tpu.vector_store %arg24[%c0_113, %c0_114], %448 {strides = array<i32>} : memref<64x128xf32, #tpu.memory_space<vmem>>, vector<64x128xf32>,
    %c0_115 = arith.constant 0 : index
    %c0_116 = arith.constant 0 : index
    %450 = vector.load %arg11[%c0_115, %c0_116] : memref<16x128xf32, #tpu.memory_space<vmem>>, vector<16x128xf32>
    %cst_117 = arith.constant dense<0.000000e+00> : vector<8x128xf32>
    %451 = tpu.matmul %426, %450, %cst_117 {dimension_numbers = #tpu.dot_dimension_numbers<[1], [0], [0], [1], [0, 0, 1, 1], [], []>} : vector<8x16xf32>, vector<16x128xf32>, vector<8x128xf32> -> vector<8x128xf32>
    %c0_118 = arith.constant 0 : index
    %c0_119 = arith.constant 0 : index
    %452 = vector.load %arg13[%c0_118, %c0_119] : memref<1x128xf32, #tpu.memory_space<vmem>>, vector<1x128xf32>
    %453 = vector.broadcast %452 : vector<1x128xf32> to vector<8x128xf32>
    %454 = arith.addf %451, %453 : vector<8x128xf32>
    %c0_120 = arith.constant 0 : index
    %c0_121 = arith.constant 0 : index
    %455 = vector.load %arg12[%c0_120, %c0_121] : memref<32x128xf32, #tpu.memory_space<vmem>>, vector<32x128xf32>
    %c0_122 = arith.constant 0 : index
    %c0_123 = arith.constant 0 : index
    %c0_124 = arith.constant 0 : index
    %456 = vector.load %arg14[%c0_122, %c0_123, %c0_124] : memref<1x32x128xf32, #tpu.memory_space<vmem>>, vector<1x32x128xf32>
    %457 = vector.shape_cast %456 : vector<1x32x128xf32> to vector<32x128xf32>
    %c0_125 = arith.constant 0 : index
    %c0_126 = arith.constant 0 : index
    %c0_127 = arith.constant 0 : index
    %458 = vector.load %arg15[%c0_125, %c0_126, %c0_127] : memref<1x32x128xf32, #tpu.memory_space<vmem>>, vector<1x32x128xf32>
    %459 = vector.shape_cast %458 : vector<1x32x128xf32> to vector<32x128xf32>
    %c0_128 = arith.constant 0 : index
    %c0_129 = arith.constant 0 : index
    %c0_130 = arith.constant 0 : index
    %460 = vector.load %arg16[%c0_128, %c0_129, %c0_130] : memref<1x1x128xf32, #tpu.memory_space<vmem>>, vector<1x1x128xf32>
    %461 = vector.shape_cast %460 : vector<1x1x128xf32> to vector<1x128xf32>
    %cst_131 = arith.constant 0.000000e+00 : f32
    %462 = vector.broadcast %cst_131 : f32 to vector<8x32xf32>
    %cst_132 = arith.constant 0.000000e+00 : f32
    %463 = vector.broadcast %cst_132 : f32 to vector<8x32xf32>
    %cst_133 = arith.constant 0.000000e+00 : f32
    %464 = vector.broadcast %cst_133 : f32 to vector<8x32xf32>
    %cst_134 = arith.constant 0.000000e+00 : f32
    %465 = vector.broadcast %cst_134 : f32 to vector<8x32xf32>
    %c0_i32_135 = arith.constant 0 : i32
    %c8_i32_136 = arith.constant 8 : i32
    %466 = arith.muli %c0_i32_135, %c8_i32_136 : i32
    %467 = tpu.assume_multiple %466, 8 : i32
    %468 = arith.index_cast %467 : i32 to index
    %c0_137 = arith.constant 0 : index
    %469 = vector.load %arg24[%468, %c0_137] : memref<64x128xf32, #tpu.memory_space<vmem>>, vector<8x128xf32>
    %470 = arith.addf %469, %454 : vector<8x128xf32>
    %cst_138 = arith.constant dense<0.000000e+00> : vector<8x128xf32>
    %471 = tpu.matmul %462, %455, %cst_138 {dimension_numbers = #tpu.dot_dimension_numbers<[1], [0], [0], [1], [0, 0, 1, 1], [], []>} : vector<8x32xf32>, vector<32x128xf32>, vector<8x128xf32> -> vector<8x128xf32>
    %472 = arith.addf %470, %471 : vector<8x128xf32>
    %473 = arith.negf %472 : vector<8x128xf32>
    %474 = math.exp %473 : vector<8x128xf32>
    %cst_139 = arith.constant 1.000000e+00 : f32
    %475 = vector.broadcast %cst_139 : f32 to vector<8x128xf32>
    %476 = arith.addf %475, %474 : vector<8x128xf32>
    %477 = arith.divf %475, %476 : vector<8x128xf32>
    %478 = vector.extract_strided_slice %477 {offsets = [0, 0], sizes = [8, 32], strides = [1, 1]} : vector<8x128xf32> to vector<8x32xf32>
    %479 = vector.extract_strided_slice %477 {offsets = [0, 32], sizes = [8, 32], strides = [1, 1]} : vector<8x128xf32> to vector<8x32xf32>
    %480 = vector.extract_strided_slice %477 {offsets = [0, 96], sizes = [8, 32], strides = [1, 1]} : vector<8x128xf32> to vector<8x32xf32>
    %481 = vector.extract_strided_slice %472 {offsets = [0, 64], sizes = [8, 32], strides = [1, 1]} : vector<8x128xf32> to vector<8x32xf32>
    %482 = math.tanh %481 : vector<8x32xf32>
    %483 = arith.mulf %479, %464 : vector<8x32xf32>
    %484 = arith.mulf %478, %482 : vector<8x32xf32>
    %485 = arith.addf %483, %484 : vector<8x32xf32>
    %486 = math.tanh %485 : vector<8x32xf32>
    %487 = arith.mulf %480, %486 : vector<8x32xf32>
    %cst_140 = arith.constant dense<0.000000e+00> : vector<8x128xf32>
    %488 = tpu.matmul %463, %459, %cst_140 {dimension_numbers = #tpu.dot_dimension_numbers<[1], [0], [0], [1], [0, 0, 1, 1], [], []>} : vector<8x32xf32>, vector<32x128xf32>, vector<8x128xf32> -> vector<8x128xf32>
    %cst_141 = arith.constant dense<0.000000e+00> : vector<8x128xf32>
    %489 = tpu.matmul %487, %457, %cst_141 {dimension_numbers = #tpu.dot_dimension_numbers<[1], [0], [0], [1], [0, 0, 1, 1], [], []>} : vector<8x32xf32>, vector<32x128xf32>, vector<8x128xf32> -> vector<8x128xf32>
    %490 = arith.addf %488, %489 : vector<8x128xf32>
    %491 = vector.broadcast %461 : vector<1x128xf32> to vector<8x128xf32>
    %492 = arith.addf %490, %491 : vector<8x128xf32>
    %493 = arith.negf %492 : vector<8x128xf32>
    %494 = math.exp %493 : vector<8x128xf32>
    %cst_142 = arith.constant 1.000000e+00 : f32
    %495 = vector.broadcast %cst_142 : f32 to vector<8x128xf32>
    %496 = arith.addf %495, %494 : vector<8x128xf32>
    %497 = arith.divf %495, %496 : vector<8x128xf32>
    %498 = vector.extract_strided_slice %497 {offsets = [0, 0], sizes = [8, 32], strides = [1, 1]} : vector<8x128xf32> to vector<8x32xf32>
    %499 = vector.extract_strided_slice %497 {offsets = [0, 32], sizes = [8, 32], strides = [1, 1]} : vector<8x128xf32> to vector<8x32xf32>
    %500 = vector.extract_strided_slice %497 {offsets = [0, 96], sizes = [8, 32], strides = [1, 1]} : vector<8x128xf32> to vector<8x32xf32>
    %501 = vector.extract_strided_slice %492 {offsets = [0, 64], sizes = [8, 32], strides = [1, 1]} : vector<8x128xf32> to vector<8x32xf32>
    %502 = math.tanh %501 : vector<8x32xf32>
    %503 = arith.mulf %499, %465 : vector<8x32xf32>
    %504 = arith.mulf %498, %502 : vector<8x32xf32>
    %505 = arith.addf %503, %504 : vector<8x32xf32>
    %506 = math.tanh %505 : vector<8x32xf32>
    %507 = arith.mulf %500, %506 : vector<8x32xf32>
    %508 = arith.index_cast %467 : i32 to index
    %c0_143 = arith.constant 0 : index
    %509 = vector.load %arg25[%508, %c0_143] : memref<64x32xf32, #tpu.memory_space<vmem>>, vector<8x32xf32>
    tpu.vector_store %arg25[%508, %c0_143], %507 {strides = array<i32>} : memref<64x32xf32, #tpu.memory_space<vmem>>, vector<8x32xf32>,
    %c1_i32_144 = arith.constant 1 : i32
    %c8_i32_145 = arith.constant 8 : i32
    %510 = arith.muli %c1_i32_144, %c8_i32_145 : i32
    %511 = tpu.assume_multiple %510, 8 : i32
    %512 = arith.index_cast %511 : i32 to index
    %c0_146 = arith.constant 0 : index
    %513 = vector.load %arg24[%512, %c0_146] : memref<64x128xf32, #tpu.memory_space<vmem>>, vector<8x128xf32>
    %514 = arith.addf %513, %454 : vector<8x128xf32>
    %cst_147 = arith.constant dense<0.000000e+00> : vector<8x128xf32>
    %515 = tpu.matmul %487, %455, %cst_147 {dimension_numbers = #tpu.dot_dimension_numbers<[1], [0], [0], [1], [0, 0, 1, 1], [], []>} : vector<8x32xf32>, vector<32x128xf32>, vector<8x128xf32> -> vector<8x128xf32>
    %516 = arith.addf %514, %515 : vector<8x128xf32>
    %517 = arith.negf %516 : vector<8x128xf32>
    %518 = math.exp %517 : vector<8x128xf32>
    %cst_148 = arith.constant 1.000000e+00 : f32
    %519 = vector.broadcast %cst_148 : f32 to vector<8x128xf32>
    %520 = arith.addf %519, %518 : vector<8x128xf32>
    %521 = arith.divf %519, %520 : vector<8x128xf32>
    %522 = vector.extract_strided_slice %521 {offsets = [0, 0], sizes = [8, 32], strides = [1, 1]} : vector<8x128xf32> to vector<8x32xf32>
    %523 = vector.extract_strided_slice %521 {offsets = [0, 32], sizes = [8, 32], strides = [1, 1]} : vector<8x128xf32> to vector<8x32xf32>
    %524 = vector.extract_strided_slice %521 {offsets = [0, 96], sizes = [8, 32], strides = [1, 1]} : vector<8x128xf32> to vector<8x32xf32>
    %525 = vector.extract_strided_slice %516 {offsets = [0, 64], sizes = [8, 32], strides = [1, 1]} : vector<8x128xf32> to vector<8x32xf32>
    %526 = math.tanh %525 : vector<8x32xf32>
    %527 = arith.mulf %523, %485 : vector<8x32xf32>
    %528 = arith.mulf %522, %526 : vector<8x32xf32>
    %529 = arith.addf %527, %528 : vector<8x32xf32>
    %530 = math.tanh %529 : vector<8x32xf32>
    %531 = arith.mulf %524, %530 : vector<8x32xf32>
    %cst_149 = arith.constant dense<0.000000e+00> : vector<8x128xf32>
    %532 = tpu.matmul %507, %459, %cst_149 {dimension_numbers = #tpu.dot_dimension_numbers<[1], [0], [0], [1], [0, 0, 1, 1], [], []>} : vector<8x32xf32>, vector<32x128xf32>, vector<8x128xf32> -> vector<8x128xf32>
    %cst_150 = arith.constant dense<0.000000e+00> : vector<8x128xf32>
    %533 = tpu.matmul %531, %457, %cst_150 {dimension_numbers = #tpu.dot_dimension_numbers<[1], [0], [0], [1], [0, 0, 1, 1], [], []>} : vector<8x32xf32>, vector<32x128xf32>, vector<8x128xf32> -> vector<8x128xf32>
    %534 = arith.addf %532, %533 : vector<8x128xf32>
    %535 = vector.broadcast %461 : vector<1x128xf32> to vector<8x128xf32>
    %536 = arith.addf %534, %535 : vector<8x128xf32>
    %537 = arith.negf %536 : vector<8x128xf32>
    %538 = math.exp %537 : vector<8x128xf32>
    %cst_151 = arith.constant 1.000000e+00 : f32
    %539 = vector.broadcast %cst_151 : f32 to vector<8x128xf32>
    %540 = arith.addf %539, %538 : vector<8x128xf32>
    %541 = arith.divf %539, %540 : vector<8x128xf32>
    %542 = vector.extract_strided_slice %541 {offsets = [0, 0], sizes = [8, 32], strides = [1, 1]} : vector<8x128xf32> to vector<8x32xf32>
    %543 = vector.extract_strided_slice %541 {offsets = [0, 32], sizes = [8, 32], strides = [1, 1]} : vector<8x128xf32> to vector<8x32xf32>
    %544 = vector.extract_strided_slice %541 {offsets = [0, 96], sizes = [8, 32], strides = [1, 1]} : vector<8x128xf32> to vector<8x32xf32>
    %545 = vector.extract_strided_slice %536 {offsets = [0, 64], sizes = [8, 32], strides = [1, 1]} : vector<8x128xf32> to vector<8x32xf32>
    %546 = math.tanh %545 : vector<8x32xf32>
    %547 = arith.mulf %543, %505 : vector<8x32xf32>
    %548 = arith.mulf %542, %546 : vector<8x32xf32>
    %549 = arith.addf %547, %548 : vector<8x32xf32>
    %550 = math.tanh %549 : vector<8x32xf32>
    %551 = arith.mulf %544, %550 : vector<8x32xf32>
    %552 = arith.index_cast %511 : i32 to index
    %c0_152 = arith.constant 0 : index
    %553 = vector.load %arg25[%552, %c0_152] : memref<64x32xf32, #tpu.memory_space<vmem>>, vector<8x32xf32>
    tpu.vector_store %arg25[%552, %c0_152], %551 {strides = array<i32>} : memref<64x32xf32, #tpu.memory_space<vmem>>, vector<8x32xf32>,
    %c2_i32_153 = arith.constant 2 : i32
    %c8_i32_154 = arith.constant 8 : i32
    %554 = arith.muli %c2_i32_153, %c8_i32_154 : i32
    %555 = tpu.assume_multiple %554, 8 : i32
    %556 = arith.index_cast %555 : i32 to index
    %c0_155 = arith.constant 0 : index
    %557 = vector.load %arg24[%556, %c0_155] : memref<64x128xf32, #tpu.memory_space<vmem>>, vector<8x128xf32>
    %558 = arith.addf %557, %454 : vector<8x128xf32>
    %cst_156 = arith.constant dense<0.000000e+00> : vector<8x128xf32>
    %559 = tpu.matmul %531, %455, %cst_156 {dimension_numbers = #tpu.dot_dimension_numbers<[1], [0], [0], [1], [0, 0, 1, 1], [], []>} : vector<8x32xf32>, vector<32x128xf32>, vector<8x128xf32> -> vector<8x128xf32>
    %560 = arith.addf %558, %559 : vector<8x128xf32>
    %561 = arith.negf %560 : vector<8x128xf32>
    %562 = math.exp %561 : vector<8x128xf32>
    %cst_157 = arith.constant 1.000000e+00 : f32
    %563 = vector.broadcast %cst_157 : f32 to vector<8x128xf32>
    %564 = arith.addf %563, %562 : vector<8x128xf32>
    %565 = arith.divf %563, %564 : vector<8x128xf32>
    %566 = vector.extract_strided_slice %565 {offsets = [0, 0], sizes = [8, 32], strides = [1, 1]} : vector<8x128xf32> to vector<8x32xf32>
    %567 = vector.extract_strided_slice %565 {offsets = [0, 32], sizes = [8, 32], strides = [1, 1]} : vector<8x128xf32> to vector<8x32xf32>
    %568 = vector.extract_strided_slice %565 {offsets = [0, 96], sizes = [8, 32], strides = [1, 1]} : vector<8x128xf32> to vector<8x32xf32>
    %569 = vector.extract_strided_slice %560 {offsets = [0, 64], sizes = [8, 32], strides = [1, 1]} : vector<8x128xf32> to vector<8x32xf32>
    %570 = math.tanh %569 : vector<8x32xf32>
    %571 = arith.mulf %567, %529 : vector<8x32xf32>
    %572 = arith.mulf %566, %570 : vector<8x32xf32>
    %573 = arith.addf %571, %572 : vector<8x32xf32>
    %574 = math.tanh %573 : vector<8x32xf32>
    %575 = arith.mulf %568, %574 : vector<8x32xf32>
    %cst_158 = arith.constant dense<0.000000e+00> : vector<8x128xf32>
    %576 = tpu.matmul %551, %459, %cst_158 {dimension_numbers = #tpu.dot_dimension_numbers<[1], [0], [0], [1], [0, 0, 1, 1], [], []>} : vector<8x32xf32>, vector<32x128xf32>, vector<8x128xf32> -> vector<8x128xf32>
    %cst_159 = arith.constant dense<0.000000e+00> : vector<8x128xf32>
    %577 = tpu.matmul %575, %457, %cst_159 {dimension_numbers = #tpu.dot_dimension_numbers<[1], [0], [0], [1], [0, 0, 1, 1], [], []>} : vector<8x32xf32>, vector<32x128xf32>, vector<8x128xf32> -> vector<8x128xf32>
    %578 = arith.addf %576, %577 : vector<8x128xf32>
    %579 = vector.broadcast %461 : vector<1x128xf32> to vector<8x128xf32>
    %580 = arith.addf %578, %579 : vector<8x128xf32>
    %581 = arith.negf %580 : vector<8x128xf32>
    %582 = math.exp %581 : vector<8x128xf32>
    %cst_160 = arith.constant 1.000000e+00 : f32
    %583 = vector.broadcast %cst_160 : f32 to vector<8x128xf32>
    %584 = arith.addf %583, %582 : vector<8x128xf32>
    %585 = arith.divf %583, %584 : vector<8x128xf32>
    %586 = vector.extract_strided_slice %585 {offsets = [0, 0], sizes = [8, 32], strides = [1, 1]} : vector<8x128xf32> to vector<8x32xf32>
    %587 = vector.extract_strided_slice %585 {offsets = [0, 32], sizes = [8, 32], strides = [1, 1]} : vector<8x128xf32> to vector<8x32xf32>
    %588 = vector.extract_strided_slice %585 {offsets = [0, 96], sizes = [8, 32], strides = [1, 1]} : vector<8x128xf32> to vector<8x32xf32>
    %589 = vector.extract_strided_slice %580 {offsets = [0, 64], sizes = [8, 32], strides = [1, 1]} : vector<8x128xf32> to vector<8x32xf32>
    %590 = math.tanh %589 : vector<8x32xf32>
    %591 = arith.mulf %587, %549 : vector<8x32xf32>
    %592 = arith.mulf %586, %590 : vector<8x32xf32>
    %593 = arith.addf %591, %592 : vector<8x32xf32>
    %594 = math.tanh %593 : vector<8x32xf32>
    %595 = arith.mulf %588, %594 : vector<8x32xf32>
    %596 = arith.index_cast %555 : i32 to index
    %c0_161 = arith.constant 0 : index
    %597 = vector.load %arg25[%596, %c0_161] : memref<64x32xf32, #tpu.memory_space<vmem>>, vector<8x32xf32>
    tpu.vector_store %arg25[%596, %c0_161], %595 {strides = array<i32>} : memref<64x32xf32, #tpu.memory_space<vmem>>, vector<8x32xf32>,
    %c3_i32_162 = arith.constant 3 : i32
    %c8_i32_163 = arith.constant 8 : i32
    %598 = arith.muli %c3_i32_162, %c8_i32_163 : i32
    %599 = tpu.assume_multiple %598, 8 : i32
    %600 = arith.index_cast %599 : i32 to index
    %c0_164 = arith.constant 0 : index
    %601 = vector.load %arg24[%600, %c0_164] : memref<64x128xf32, #tpu.memory_space<vmem>>, vector<8x128xf32>
    %602 = arith.addf %601, %454 : vector<8x128xf32>
    %cst_165 = arith.constant dense<0.000000e+00> : vector<8x128xf32>
    %603 = tpu.matmul %575, %455, %cst_165 {dimension_numbers = #tpu.dot_dimension_numbers<[1], [0], [0], [1], [0, 0, 1, 1], [], []>} : vector<8x32xf32>, vector<32x128xf32>, vector<8x128xf32> -> vector<8x128xf32>
    %604 = arith.addf %602, %603 : vector<8x128xf32>
    %605 = arith.negf %604 : vector<8x128xf32>
    %606 = math.exp %605 : vector<8x128xf32>
    %cst_166 = arith.constant 1.000000e+00 : f32
    %607 = vector.broadcast %cst_166 : f32 to vector<8x128xf32>
    %608 = arith.addf %607, %606 : vector<8x128xf32>
    %609 = arith.divf %607, %608 : vector<8x128xf32>
    %610 = vector.extract_strided_slice %609 {offsets = [0, 0], sizes = [8, 32], strides = [1, 1]} : vector<8x128xf32> to vector<8x32xf32>
    %611 = vector.extract_strided_slice %609 {offsets = [0, 32], sizes = [8, 32], strides = [1, 1]} : vector<8x128xf32> to vector<8x32xf32>
    %612 = vector.extract_strided_slice %609 {offsets = [0, 96], sizes = [8, 32], strides = [1, 1]} : vector<8x128xf32> to vector<8x32xf32>
    %613 = vector.extract_strided_slice %604 {offsets = [0, 64], sizes = [8, 32], strides = [1, 1]} : vector<8x128xf32> to vector<8x32xf32>
    %614 = math.tanh %613 : vector<8x32xf32>
    %615 = arith.mulf %611, %573 : vector<8x32xf32>
    %616 = arith.mulf %610, %614 : vector<8x32xf32>
    %617 = arith.addf %615, %616 : vector<8x32xf32>
    %618 = math.tanh %617 : vector<8x32xf32>
    %619 = arith.mulf %612, %618 : vector<8x32xf32>
    %cst_167 = arith.constant dense<0.000000e+00> : vector<8x128xf32>
    %620 = tpu.matmul %595, %459, %cst_167 {dimension_numbers = #tpu.dot_dimension_numbers<[1], [0], [0], [1], [0, 0, 1, 1], [], []>} : vector<8x32xf32>, vector<32x128xf32>, vector<8x128xf32> -> vector<8x128xf32>
    %cst_168 = arith.constant dense<0.000000e+00> : vector<8x128xf32>
    %621 = tpu.matmul %619, %457, %cst_168 {dimension_numbers = #tpu.dot_dimension_numbers<[1], [0], [0], [1], [0, 0, 1, 1], [], []>} : vector<8x32xf32>, vector<32x128xf32>, vector<8x128xf32> -> vector<8x128xf32>
    %622 = arith.addf %620, %621 : vector<8x128xf32>
    %623 = vector.broadcast %461 : vector<1x128xf32> to vector<8x128xf32>
    %624 = arith.addf %622, %623 : vector<8x128xf32>
    %625 = arith.negf %624 : vector<8x128xf32>
    %626 = math.exp %625 : vector<8x128xf32>
    %cst_169 = arith.constant 1.000000e+00 : f32
    %627 = vector.broadcast %cst_169 : f32 to vector<8x128xf32>
    %628 = arith.addf %627, %626 : vector<8x128xf32>
    %629 = arith.divf %627, %628 : vector<8x128xf32>
    %630 = vector.extract_strided_slice %629 {offsets = [0, 0], sizes = [8, 32], strides = [1, 1]} : vector<8x128xf32> to vector<8x32xf32>
    %631 = vector.extract_strided_slice %629 {offsets = [0, 32], sizes = [8, 32], strides = [1, 1]} : vector<8x128xf32> to vector<8x32xf32>
    %632 = vector.extract_strided_slice %629 {offsets = [0, 96], sizes = [8, 32], strides = [1, 1]} : vector<8x128xf32> to vector<8x32xf32>
    %633 = vector.extract_strided_slice %624 {offsets = [0, 64], sizes = [8, 32], strides = [1, 1]} : vector<8x128xf32> to vector<8x32xf32>
    %634 = math.tanh %633 : vector<8x32xf32>
    %635 = arith.mulf %631, %593 : vector<8x32xf32>
    %636 = arith.mulf %630, %634 : vector<8x32xf32>
    %637 = arith.addf %635, %636 : vector<8x32xf32>
    %638 = math.tanh %637 : vector<8x32xf32>
    %639 = arith.mulf %632, %638 : vector<8x32xf32>
    %640 = arith.index_cast %599 : i32 to index
    %c0_170 = arith.constant 0 : index
    %641 = vector.load %arg25[%640, %c0_170] : memref<64x32xf32, #tpu.memory_space<vmem>>, vector<8x32xf32>
    tpu.vector_store %arg25[%640, %c0_170], %639 {strides = array<i32>} : memref<64x32xf32, #tpu.memory_space<vmem>>, vector<8x32xf32>,
    %c4_i32_171 = arith.constant 4 : i32
    %c8_i32_172 = arith.constant 8 : i32
    %642 = arith.muli %c4_i32_171, %c8_i32_172 : i32
    %643 = tpu.assume_multiple %642, 8 : i32
    %644 = arith.index_cast %643 : i32 to index
    %c0_173 = arith.constant 0 : index
    %645 = vector.load %arg24[%644, %c0_173] : memref<64x128xf32, #tpu.memory_space<vmem>>, vector<8x128xf32>
    %646 = arith.addf %645, %454 : vector<8x128xf32>
    %cst_174 = arith.constant dense<0.000000e+00> : vector<8x128xf32>
    %647 = tpu.matmul %619, %455, %cst_174 {dimension_numbers = #tpu.dot_dimension_numbers<[1], [0], [0], [1], [0, 0, 1, 1], [], []>} : vector<8x32xf32>, vector<32x128xf32>, vector<8x128xf32> -> vector<8x128xf32>
    %648 = arith.addf %646, %647 : vector<8x128xf32>
    %649 = arith.negf %648 : vector<8x128xf32>
    %650 = math.exp %649 : vector<8x128xf32>
    %cst_175 = arith.constant 1.000000e+00 : f32
    %651 = vector.broadcast %cst_175 : f32 to vector<8x128xf32>
    %652 = arith.addf %651, %650 : vector<8x128xf32>
    %653 = arith.divf %651, %652 : vector<8x128xf32>
    %654 = vector.extract_strided_slice %653 {offsets = [0, 0], sizes = [8, 32], strides = [1, 1]} : vector<8x128xf32> to vector<8x32xf32>
    %655 = vector.extract_strided_slice %653 {offsets = [0, 32], sizes = [8, 32], strides = [1, 1]} : vector<8x128xf32> to vector<8x32xf32>
    %656 = vector.extract_strided_slice %653 {offsets = [0, 96], sizes = [8, 32], strides = [1, 1]} : vector<8x128xf32> to vector<8x32xf32>
    %657 = vector.extract_strided_slice %648 {offsets = [0, 64], sizes = [8, 32], strides = [1, 1]} : vector<8x128xf32> to vector<8x32xf32>
    %658 = math.tanh %657 : vector<8x32xf32>
    %659 = arith.mulf %655, %617 : vector<8x32xf32>
    %660 = arith.mulf %654, %658 : vector<8x32xf32>
    %661 = arith.addf %659, %660 : vector<8x32xf32>
    %662 = math.tanh %661 : vector<8x32xf32>
    %663 = arith.mulf %656, %662 : vector<8x32xf32>
    %cst_176 = arith.constant dense<0.000000e+00> : vector<8x128xf32>
    %664 = tpu.matmul %639, %459, %cst_176 {dimension_numbers = #tpu.dot_dimension_numbers<[1], [0], [0], [1], [0, 0, 1, 1], [], []>} : vector<8x32xf32>, vector<32x128xf32>, vector<8x128xf32> -> vector<8x128xf32>
    %cst_177 = arith.constant dense<0.000000e+00> : vector<8x128xf32>
    %665 = tpu.matmul %663, %457, %cst_177 {dimension_numbers = #tpu.dot_dimension_numbers<[1], [0], [0], [1], [0, 0, 1, 1], [], []>} : vector<8x32xf32>, vector<32x128xf32>, vector<8x128xf32> -> vector<8x128xf32>
    %666 = arith.addf %664, %665 : vector<8x128xf32>
    %667 = vector.broadcast %461 : vector<1x128xf32> to vector<8x128xf32>
    %668 = arith.addf %666, %667 : vector<8x128xf32>
    %669 = arith.negf %668 : vector<8x128xf32>
    %670 = math.exp %669 : vector<8x128xf32>
    %cst_178 = arith.constant 1.000000e+00 : f32
    %671 = vector.broadcast %cst_178 : f32 to vector<8x128xf32>
    %672 = arith.addf %671, %670 : vector<8x128xf32>
    %673 = arith.divf %671, %672 : vector<8x128xf32>
    %674 = vector.extract_strided_slice %673 {offsets = [0, 0], sizes = [8, 32], strides = [1, 1]} : vector<8x128xf32> to vector<8x32xf32>
    %675 = vector.extract_strided_slice %673 {offsets = [0, 32], sizes = [8, 32], strides = [1, 1]} : vector<8x128xf32> to vector<8x32xf32>
    %676 = vector.extract_strided_slice %673 {offsets = [0, 96], sizes = [8, 32], strides = [1, 1]} : vector<8x128xf32> to vector<8x32xf32>
    %677 = vector.extract_strided_slice %668 {offsets = [0, 64], sizes = [8, 32], strides = [1, 1]} : vector<8x128xf32> to vector<8x32xf32>
    %678 = math.tanh %677 : vector<8x32xf32>
    %679 = arith.mulf %675, %637 : vector<8x32xf32>
    %680 = arith.mulf %674, %678 : vector<8x32xf32>
    %681 = arith.addf %679, %680 : vector<8x32xf32>
    %682 = math.tanh %681 : vector<8x32xf32>
    %683 = arith.mulf %676, %682 : vector<8x32xf32>
    %684 = arith.index_cast %643 : i32 to index
    %c0_179 = arith.constant 0 : index
    %685 = vector.load %arg25[%684, %c0_179] : memref<64x32xf32, #tpu.memory_space<vmem>>, vector<8x32xf32>
    tpu.vector_store %arg25[%684, %c0_179], %683 {strides = array<i32>} : memref<64x32xf32, #tpu.memory_space<vmem>>, vector<8x32xf32>,
    %c5_i32_180 = arith.constant 5 : i32
    %c8_i32_181 = arith.constant 8 : i32
    %686 = arith.muli %c5_i32_180, %c8_i32_181 : i32
    %687 = tpu.assume_multiple %686, 8 : i32
    %688 = arith.index_cast %687 : i32 to index
    %c0_182 = arith.constant 0 : index
    %689 = vector.load %arg24[%688, %c0_182] : memref<64x128xf32, #tpu.memory_space<vmem>>, vector<8x128xf32>
    %690 = arith.addf %689, %454 : vector<8x128xf32>
    %cst_183 = arith.constant dense<0.000000e+00> : vector<8x128xf32>
    %691 = tpu.matmul %663, %455, %cst_183 {dimension_numbers = #tpu.dot_dimension_numbers<[1], [0], [0], [1], [0, 0, 1, 1], [], []>} : vector<8x32xf32>, vector<32x128xf32>, vector<8x128xf32> -> vector<8x128xf32>
    %692 = arith.addf %690, %691 : vector<8x128xf32>
    %693 = arith.negf %692 : vector<8x128xf32>
    %694 = math.exp %693 : vector<8x128xf32>
    %cst_184 = arith.constant 1.000000e+00 : f32
    %695 = vector.broadcast %cst_184 : f32 to vector<8x128xf32>
    %696 = arith.addf %695, %694 : vector<8x128xf32>
    %697 = arith.divf %695, %696 : vector<8x128xf32>
    %698 = vector.extract_strided_slice %697 {offsets = [0, 0], sizes = [8, 32], strides = [1, 1]} : vector<8x128xf32> to vector<8x32xf32>
    %699 = vector.extract_strided_slice %697 {offsets = [0, 32], sizes = [8, 32], strides = [1, 1]} : vector<8x128xf32> to vector<8x32xf32>
    %700 = vector.extract_strided_slice %697 {offsets = [0, 96], sizes = [8, 32], strides = [1, 1]} : vector<8x128xf32> to vector<8x32xf32>
    %701 = vector.extract_strided_slice %692 {offsets = [0, 64], sizes = [8, 32], strides = [1, 1]} : vector<8x128xf32> to vector<8x32xf32>
    %702 = math.tanh %701 : vector<8x32xf32>
    %703 = arith.mulf %699, %661 : vector<8x32xf32>
    %704 = arith.mulf %698, %702 : vector<8x32xf32>
    %705 = arith.addf %703, %704 : vector<8x32xf32>
    %706 = math.tanh %705 : vector<8x32xf32>
    %707 = arith.mulf %700, %706 : vector<8x32xf32>
    %cst_185 = arith.constant dense<0.000000e+00> : vector<8x128xf32>
    %708 = tpu.matmul %683, %459, %cst_185 {dimension_numbers = #tpu.dot_dimension_numbers<[1], [0], [0], [1], [0, 0, 1, 1], [], []>} : vector<8x32xf32>, vector<32x128xf32>, vector<8x128xf32> -> vector<8x128xf32>
    %cst_186 = arith.constant dense<0.000000e+00> : vector<8x128xf32>
    %709 = tpu.matmul %707, %457, %cst_186 {dimension_numbers = #tpu.dot_dimension_numbers<[1], [0], [0], [1], [0, 0, 1, 1], [], []>} : vector<8x32xf32>, vector<32x128xf32>, vector<8x128xf32> -> vector<8x128xf32>
    %710 = arith.addf %708, %709 : vector<8x128xf32>
    %711 = vector.broadcast %461 : vector<1x128xf32> to vector<8x128xf32>
    %712 = arith.addf %710, %711 : vector<8x128xf32>
    %713 = arith.negf %712 : vector<8x128xf32>
    %714 = math.exp %713 : vector<8x128xf32>
    %cst_187 = arith.constant 1.000000e+00 : f32
    %715 = vector.broadcast %cst_187 : f32 to vector<8x128xf32>
    %716 = arith.addf %715, %714 : vector<8x128xf32>
    %717 = arith.divf %715, %716 : vector<8x128xf32>
    %718 = vector.extract_strided_slice %717 {offsets = [0, 0], sizes = [8, 32], strides = [1, 1]} : vector<8x128xf32> to vector<8x32xf32>
    %719 = vector.extract_strided_slice %717 {offsets = [0, 32], sizes = [8, 32], strides = [1, 1]} : vector<8x128xf32> to vector<8x32xf32>
    %720 = vector.extract_strided_slice %717 {offsets = [0, 96], sizes = [8, 32], strides = [1, 1]} : vector<8x128xf32> to vector<8x32xf32>
    %721 = vector.extract_strided_slice %712 {offsets = [0, 64], sizes = [8, 32], strides = [1, 1]} : vector<8x128xf32> to vector<8x32xf32>
    %722 = math.tanh %721 : vector<8x32xf32>
    %723 = arith.mulf %719, %681 : vector<8x32xf32>
    %724 = arith.mulf %718, %722 : vector<8x32xf32>
    %725 = arith.addf %723, %724 : vector<8x32xf32>
    %726 = math.tanh %725 : vector<8x32xf32>
    %727 = arith.mulf %720, %726 : vector<8x32xf32>
    %728 = arith.index_cast %687 : i32 to index
    %c0_188 = arith.constant 0 : index
    %729 = vector.load %arg25[%728, %c0_188] : memref<64x32xf32, #tpu.memory_space<vmem>>, vector<8x32xf32>
    tpu.vector_store %arg25[%728, %c0_188], %727 {strides = array<i32>} : memref<64x32xf32, #tpu.memory_space<vmem>>, vector<8x32xf32>,
    %c6_i32_189 = arith.constant 6 : i32
    %c8_i32_190 = arith.constant 8 : i32
    %730 = arith.muli %c6_i32_189, %c8_i32_190 : i32
    %731 = tpu.assume_multiple %730, 8 : i32
    %732 = arith.index_cast %731 : i32 to index
    %c0_191 = arith.constant 0 : index
    %733 = vector.load %arg24[%732, %c0_191] : memref<64x128xf32, #tpu.memory_space<vmem>>, vector<8x128xf32>
    %734 = arith.addf %733, %454 : vector<8x128xf32>
    %cst_192 = arith.constant dense<0.000000e+00> : vector<8x128xf32>
    %735 = tpu.matmul %707, %455, %cst_192 {dimension_numbers = #tpu.dot_dimension_numbers<[1], [0], [0], [1], [0, 0, 1, 1], [], []>} : vector<8x32xf32>, vector<32x128xf32>, vector<8x128xf32> -> vector<8x128xf32>
    %736 = arith.addf %734, %735 : vector<8x128xf32>
    %737 = arith.negf %736 : vector<8x128xf32>
    %738 = math.exp %737 : vector<8x128xf32>
    %cst_193 = arith.constant 1.000000e+00 : f32
    %739 = vector.broadcast %cst_193 : f32 to vector<8x128xf32>
    %740 = arith.addf %739, %738 : vector<8x128xf32>
    %741 = arith.divf %739, %740 : vector<8x128xf32>
    %742 = vector.extract_strided_slice %741 {offsets = [0, 0], sizes = [8, 32], strides = [1, 1]} : vector<8x128xf32> to vector<8x32xf32>
    %743 = vector.extract_strided_slice %741 {offsets = [0, 32], sizes = [8, 32], strides = [1, 1]} : vector<8x128xf32> to vector<8x32xf32>
    %744 = vector.extract_strided_slice %741 {offsets = [0, 96], sizes = [8, 32], strides = [1, 1]} : vector<8x128xf32> to vector<8x32xf32>
    %745 = vector.extract_strided_slice %736 {offsets = [0, 64], sizes = [8, 32], strides = [1, 1]} : vector<8x128xf32> to vector<8x32xf32>
    %746 = math.tanh %745 : vector<8x32xf32>
    %747 = arith.mulf %743, %705 : vector<8x32xf32>
    %748 = arith.mulf %742, %746 : vector<8x32xf32>
    %749 = arith.addf %747, %748 : vector<8x32xf32>
    %750 = math.tanh %749 : vector<8x32xf32>
    %751 = arith.mulf %744, %750 : vector<8x32xf32>
    %cst_194 = arith.constant dense<0.000000e+00> : vector<8x128xf32>
    %752 = tpu.matmul %727, %459, %cst_194 {dimension_numbers = #tpu.dot_dimension_numbers<[1], [0], [0], [1], [0, 0, 1, 1], [], []>} : vector<8x32xf32>, vector<32x128xf32>, vector<8x128xf32> -> vector<8x128xf32>
    %cst_195 = arith.constant dense<0.000000e+00> : vector<8x128xf32>
    %753 = tpu.matmul %751, %457, %cst_195 {dimension_numbers = #tpu.dot_dimension_numbers<[1], [0], [0], [1], [0, 0, 1, 1], [], []>} : vector<8x32xf32>, vector<32x128xf32>, vector<8x128xf32> -> vector<8x128xf32>
    %754 = arith.addf %752, %753 : vector<8x128xf32>
    %755 = vector.broadcast %461 : vector<1x128xf32> to vector<8x128xf32>
    %756 = arith.addf %754, %755 : vector<8x128xf32>
    %757 = arith.negf %756 : vector<8x128xf32>
    %758 = math.exp %757 : vector<8x128xf32>
    %cst_196 = arith.constant 1.000000e+00 : f32
    %759 = vector.broadcast %cst_196 : f32 to vector<8x128xf32>
    %760 = arith.addf %759, %758 : vector<8x128xf32>
    %761 = arith.divf %759, %760 : vector<8x128xf32>
    %762 = vector.extract_strided_slice %761 {offsets = [0, 0], sizes = [8, 32], strides = [1, 1]} : vector<8x128xf32> to vector<8x32xf32>
    %763 = vector.extract_strided_slice %761 {offsets = [0, 32], sizes = [8, 32], strides = [1, 1]} : vector<8x128xf32> to vector<8x32xf32>
    %764 = vector.extract_strided_slice %761 {offsets = [0, 96], sizes = [8, 32], strides = [1, 1]} : vector<8x128xf32> to vector<8x32xf32>
    %765 = vector.extract_strided_slice %756 {offsets = [0, 64], sizes = [8, 32], strides = [1, 1]} : vector<8x128xf32> to vector<8x32xf32>
    %766 = math.tanh %765 : vector<8x32xf32>
    %767 = arith.mulf %763, %725 : vector<8x32xf32>
    %768 = arith.mulf %762, %766 : vector<8x32xf32>
    %769 = arith.addf %767, %768 : vector<8x32xf32>
    %770 = math.tanh %769 : vector<8x32xf32>
    %771 = arith.mulf %764, %770 : vector<8x32xf32>
    %772 = arith.index_cast %731 : i32 to index
    %c0_197 = arith.constant 0 : index
    %773 = vector.load %arg25[%772, %c0_197] : memref<64x32xf32, #tpu.memory_space<vmem>>, vector<8x32xf32>
    tpu.vector_store %arg25[%772, %c0_197], %771 {strides = array<i32>} : memref<64x32xf32, #tpu.memory_space<vmem>>, vector<8x32xf32>,
    %c7_i32_198 = arith.constant 7 : i32
    %c8_i32_199 = arith.constant 8 : i32
    %774 = arith.muli %c7_i32_198, %c8_i32_199 : i32
    %775 = tpu.assume_multiple %774, 8 : i32
    %776 = arith.index_cast %775 : i32 to index
    %c0_200 = arith.constant 0 : index
    %777 = vector.load %arg24[%776, %c0_200] : memref<64x128xf32, #tpu.memory_space<vmem>>, vector<8x128xf32>
    %778 = arith.addf %777, %454 : vector<8x128xf32>
    %cst_201 = arith.constant dense<0.000000e+00> : vector<8x128xf32>
    %779 = tpu.matmul %751, %455, %cst_201 {dimension_numbers = #tpu.dot_dimension_numbers<[1], [0], [0], [1], [0, 0, 1, 1], [], []>} : vector<8x32xf32>, vector<32x128xf32>, vector<8x128xf32> -> vector<8x128xf32>
    %780 = arith.addf %778, %779 : vector<8x128xf32>
    %781 = arith.negf %780 : vector<8x128xf32>
    %782 = math.exp %781 : vector<8x128xf32>
    %cst_202 = arith.constant 1.000000e+00 : f32
    %783 = vector.broadcast %cst_202 : f32 to vector<8x128xf32>
    %784 = arith.addf %783, %782 : vector<8x128xf32>
    %785 = arith.divf %783, %784 : vector<8x128xf32>
    %786 = vector.extract_strided_slice %785 {offsets = [0, 0], sizes = [8, 32], strides = [1, 1]} : vector<8x128xf32> to vector<8x32xf32>
    %787 = vector.extract_strided_slice %785 {offsets = [0, 32], sizes = [8, 32], strides = [1, 1]} : vector<8x128xf32> to vector<8x32xf32>
    %788 = vector.extract_strided_slice %785 {offsets = [0, 96], sizes = [8, 32], strides = [1, 1]} : vector<8x128xf32> to vector<8x32xf32>
    %789 = vector.extract_strided_slice %780 {offsets = [0, 64], sizes = [8, 32], strides = [1, 1]} : vector<8x128xf32> to vector<8x32xf32>
    %790 = math.tanh %789 : vector<8x32xf32>
    %791 = arith.mulf %787, %749 : vector<8x32xf32>
    %792 = arith.mulf %786, %790 : vector<8x32xf32>
    %793 = arith.addf %791, %792 : vector<8x32xf32>
    %794 = math.tanh %793 : vector<8x32xf32>
    %795 = arith.mulf %788, %794 : vector<8x32xf32>
    %cst_203 = arith.constant dense<0.000000e+00> : vector<8x128xf32>
    %796 = tpu.matmul %771, %459, %cst_203 {dimension_numbers = #tpu.dot_dimension_numbers<[1], [0], [0], [1], [0, 0, 1, 1], [], []>} : vector<8x32xf32>, vector<32x128xf32>, vector<8x128xf32> -> vector<8x128xf32>
    %cst_204 = arith.constant dense<0.000000e+00> : vector<8x128xf32>
    %797 = tpu.matmul %795, %457, %cst_204 {dimension_numbers = #tpu.dot_dimension_numbers<[1], [0], [0], [1], [0, 0, 1, 1], [], []>} : vector<8x32xf32>, vector<32x128xf32>, vector<8x128xf32> -> vector<8x128xf32>
    %798 = arith.addf %796, %797 : vector<8x128xf32>
    %799 = vector.broadcast %461 : vector<1x128xf32> to vector<8x128xf32>
    %800 = arith.addf %798, %799 : vector<8x128xf32>
    %801 = arith.negf %800 : vector<8x128xf32>
    %802 = math.exp %801 : vector<8x128xf32>
    %cst_205 = arith.constant 1.000000e+00 : f32
    %803 = vector.broadcast %cst_205 : f32 to vector<8x128xf32>
    %804 = arith.addf %803, %802 : vector<8x128xf32>
    %805 = arith.divf %803, %804 : vector<8x128xf32>
    %806 = vector.extract_strided_slice %805 {offsets = [0, 0], sizes = [8, 32], strides = [1, 1]} : vector<8x128xf32> to vector<8x32xf32>
    %807 = vector.extract_strided_slice %805 {offsets = [0, 32], sizes = [8, 32], strides = [1, 1]} : vector<8x128xf32> to vector<8x32xf32>
    %808 = vector.extract_strided_slice %805 {offsets = [0, 96], sizes = [8, 32], strides = [1, 1]} : vector<8x128xf32> to vector<8x32xf32>
    %809 = vector.extract_strided_slice %800 {offsets = [0, 64], sizes = [8, 32], strides = [1, 1]} : vector<8x128xf32> to vector<8x32xf32>
    %810 = math.tanh %809 : vector<8x32xf32>
    %811 = arith.mulf %807, %769 : vector<8x32xf32>
    %812 = arith.mulf %806, %810 : vector<8x32xf32>
    %813 = arith.addf %811, %812 : vector<8x32xf32>
    %814 = math.tanh %813 : vector<8x32xf32>
    %815 = arith.mulf %808, %814 : vector<8x32xf32>
    %816 = arith.index_cast %775 : i32 to index
    %c0_206 = arith.constant 0 : index
    %817 = vector.load %arg25[%816, %c0_206] : memref<64x32xf32, #tpu.memory_space<vmem>>, vector<8x32xf32>
    tpu.vector_store %arg25[%816, %c0_206], %815 {strides = array<i32>} : memref<64x32xf32, #tpu.memory_space<vmem>>, vector<8x32xf32>,
    %c8_i32_207 = arith.constant 8 : i32
    %c0_208 = arith.constant 0 : index
    %c0_209 = arith.constant 0 : index
    %c0_210 = arith.constant 0 : index
    %818 = vector.load %arg20[%c0_208, %c0_209, %c0_210] : memref<2x8x32xf32, #tpu.memory_space<vmem>>, vector<1x8x32xf32>
    %819 = vector.shape_cast %818 : vector<1x8x32xf32> to vector<8x32xf32>
    %820 = vector.shape_cast %795 : vector<8x32xf32> to vector<1x8x32xf32>
    tpu.vector_store %arg20[%c0_208, %c0_209, %c0_210], %820 {strides = array<i32>} : memref<2x8x32xf32, #tpu.memory_space<vmem>>, vector<1x8x32xf32>,
    %c0_211 = arith.constant 0 : index
    %c0_212 = arith.constant 0 : index
    %c0_213 = arith.constant 0 : index
    %821 = vector.load %arg21[%c0_211, %c0_212, %c0_213] : memref<2x8x32xf32, #tpu.memory_space<vmem>>, vector<1x8x32xf32>
    %822 = vector.shape_cast %821 : vector<1x8x32xf32> to vector<8x32xf32>
    %823 = vector.shape_cast %793 : vector<8x32xf32> to vector<1x8x32xf32>
    tpu.vector_store %arg21[%c0_211, %c0_212, %c0_213], %823 {strides = array<i32>} : memref<2x8x32xf32, #tpu.memory_space<vmem>>, vector<1x8x32xf32>,
    %c1_214 = arith.constant 1 : index
    %c0_215 = arith.constant 0 : index
    %c0_216 = arith.constant 0 : index
    %824 = vector.load %arg20[%c1_214, %c0_215, %c0_216] : memref<2x8x32xf32, #tpu.memory_space<vmem>>, vector<1x8x32xf32>
    %825 = vector.shape_cast %824 : vector<1x8x32xf32> to vector<8x32xf32>
    %826 = vector.shape_cast %815 : vector<8x32xf32> to vector<1x8x32xf32>
    tpu.vector_store %arg20[%c1_214, %c0_215, %c0_216], %826 {strides = array<i32>} : memref<2x8x32xf32, #tpu.memory_space<vmem>>, vector<1x8x32xf32>,
    %c1_217 = arith.constant 1 : index
    %c0_218 = arith.constant 0 : index
    %c0_219 = arith.constant 0 : index
    %827 = vector.load %arg21[%c1_217, %c0_218, %c0_219] : memref<2x8x32xf32, #tpu.memory_space<vmem>>, vector<1x8x32xf32>
    %828 = vector.shape_cast %827 : vector<1x8x32xf32> to vector<8x32xf32>
    %829 = vector.shape_cast %813 : vector<8x32xf32> to vector<1x8x32xf32>
    tpu.vector_store %arg21[%c1_217, %c0_218, %c0_219], %829 {strides = array<i32>} : memref<2x8x32xf32, #tpu.memory_space<vmem>>, vector<1x8x32xf32>,
    %c0_220 = arith.constant 0 : index
    %c0_221 = arith.constant 0 : index
    %830 = vector.load %arg25[%c0_220, %c0_221] : memref<64x32xf32, #tpu.memory_space<vmem>>, vector<64x32xf32>
    %c0_222 = arith.constant 0 : index
    %c0_223 = arith.constant 0 : index
    %831 = vector.load %arg17[%c0_222, %c0_223] : memref<32x128xf32, #tpu.memory_space<vmem>>, vector<32x128xf32>
    %cst_224 = arith.constant dense<0.000000e+00> : vector<64x128xf32>
    %832 = tpu.matmul %830, %831, %cst_224 {dimension_numbers = #tpu.dot_dimension_numbers<[1], [0], [0], [1], [0, 0, 1, 1], [], []>} : vector<64x32xf32>, vector<32x128xf32>, vector<64x128xf32> -> vector<64x128xf32>
    %c0_225 = arith.constant 0 : index
    %c0_226 = arith.constant 0 : index
    %833 = vector.load %arg18[%c0_225, %c0_226] : memref<1x128xf32, #tpu.memory_space<vmem>>, vector<1x128xf32>
    %834 = vector.broadcast %833 : vector<1x128xf32> to vector<64x128xf32>
    %835 = arith.addf %832, %834 : vector<64x128xf32>
    %c0_227 = arith.constant 0 : index
    %c0_228 = arith.constant 0 : index
    %836 = vector.load %arg19[%c0_227, %c0_228] : memref<64x128xf32, #tpu.memory_space<vmem>>, vector<64x128xf32>
    tpu.vector_store %arg19[%c0_227, %c0_228], %835 {strides = array<i32>} : memref<64x128xf32, #tpu.memory_space<vmem>>, vector<64x128xf32>,
    return
  }
}

</mosaic_0001>

<bundles_post_ra>
// kernel: vae_forward.1
= control target key start
LH: loop header
LB: loop body
LE: loop exit
PB: predicated region body
PF: predicated region fallthrough
CT: control target
= control target key end

     0   :  { %s7224_s0 = inlined_call_operand.vmem [shape: f32[64,32], index: 0, kind: input, shape index: {}]   ;;  %s7225_s1 = inlined_call_operand.vmem [shape: f32[64,32], index: 1, kind: input, shape index: {}]   ;;  %s7226_s2 = inlined_call_operand.vmem [shape: f32[8,16], index: 2, kind: input, shape index: {}]   ;;  %s7227_s3 = inlined_call_operand.vmem [shape: f32[2,32,96], index: 3, kind: input, shape index: {}]   ;;  %s7228_s4 = inlined_call_operand.vmem [shape: f32[2,1,96], index: 4, kind: input, shape index: {}]   ;;  %s7229_s5 = inlined_call_operand.vmem [shape: f32[32,256], index: 5, kind: input, shape index: {}]   ;;  %s7230_s6 = inlined_call_operand.vmem [shape: f32[1,256], index: 6, kind: input, shape index: {}]   ;;  %s7231_s7 = inlined_call_operand.vmem [shape: f32[64,256], index: 7, kind: input, shape index: {}]   ;;  %s7232_s8 = inlined_call_operand.vmem [shape: f32[64,32], index: 8, kind: input, shape index: {}]   ;;  %s7233_s9 = inlined_call_operand.vmem [shape: f32[1,32], index: 9, kind: input, shape index: {}]   ;;  %s7234_s10 = inlined_call_operand.vmem [shape: f32[32,128], index: 10, kind: input, shape index: {}]   ;;  %s7235_s11 = inlined_call_operand.vmem [shape: f32[16,128], index: 11, kind: input, shape index: {}]   ;;  %s7236_s12 = inlined_call_operand.vmem [shape: f32[32,128], index: 12, kind: input, shape index: {}]   ;;  %s7237_s13 = inlined_call_operand.vmem [shape: f32[1,128], index: 13, kind: input, shape index: {}]   ;;  %s7238_s14 = inlined_call_operand.vmem [shape: f32[1,32,128], index: 14, kind: input, shape index: {}]   ;;  %s7239_s15 = inlined_call_operand.vmem [shape: f32[1,32,128], index: 15, kind: input, shape index: {}]   ;;  %s7240_s16 = inlined_call_operand.vmem [shape: f32[1,1,128], index: 16, kind: input, shape index: {}]   ;;  %s7241_s17 = inlined_call_operand.vmem [shape: f32[32,128], index: 17, kind: input, shape index: {}]   ;;  %s7242_s18 = inlined_call_operand.vmem [shape: f32[1,128], index: 18, kind: input, shape index: {}]   ;;  %s7243_s19 = inlined_call_operand.vmem [shape: f32[64,128], index: 19, kind: output, shape index: {0}]   ;;  %s7244_s20 = inlined_call_operand.vmem [shape: f32[2,8,32], index: 20, kind: output, shape index: {1}]   ;;  %s7245_s21 = inlined_call_operand.vmem [shape: f32[2,8,32], index: 21, kind: output, shape index: {2}]   ;;  %s7246_s22 = inlined_call_operand.hbm [shape: f32[1,1], index: 22, kind: output, shape index: {3}]  }
   0x1   :  { %7252 = sst [smem:[#allocation8_spill]] %s7224_s0 }
   0x2   :  { %7253 = sst [smem:[#allocation9_spill]] %s7225_s1 }
   0x3   :  { %7254 = sst [smem:[#allocation10_spill]] %s7226_s2 }
   0x4   :  { %7255 = sst [smem:[#allocation11_spill]] %s7227_s3 }
   0x5   :  { %7256 = sst [smem:[#allocation12_spill]] %s7228_s4 }
   0x6   :  { %7257 = sst [smem:[#allocation13_spill]] %s7229_s5 }
   0x7   :  { %7258 = sst [smem:[#allocation14_spill]] %s7230_s6 }
   0x8   :  { %s7259_s29 = sld [smem:[#allocation11_spill]]  ;;  %vm86_vm0 = vcmask 261120   ;;  %s7260_s25 = sld [smem:[#allocation8_spill]] }
   0xe   :  { %v75_v0 = vld [vmem:[%s7259_s29] sm:$0xff]  ;;  %v76_v1 = vld [vmem:[%s7259_s29 + $0x8] sm:$0xff]  ;;  %v77_v2 = vld [vmem:[%s7259_s29 + $0x10] sm:$0xff] }
   0xf   :  { %v5430_v3 = vpack.c.bf16 %v76_v1, %v75_v0  ;;  %v78_v4 = vld [vmem:[%s7259_s29 + $0x18] sm:$0xff]  ;;  %v67_v5 = vld [vmem:[%s7260_s25] sm:$0xff] }
  0x10   :  { %v5434_v6 = vpack.c.bf16 %v78_v4, %v77_v2  ;;  %5068 = vmatprep.mubr.msk.f32.mxu0 %vm86_vm0, %v67_v5 }
  0x11   :  { %5431 = vmatprep.subr.bf16.mxu0 %v5430_v3 }
  0x12   :  { %5433 = vmatpush3.bf16.msra.mxu0 %v5430_v3 }
  0x13   :  { %28 = vsyncpa [#allocation6], 0  ;;  %5435 = vmatprep.subr.bf16.mxu0 %v5434_v6  ;;  %v68_v7 = vld [vmem:[%s7260_s25 + $0x8] sm:$0xff]  ;;  %v69_v8 = vld [vmem:[%s7260_s25 + $0x10] sm:$0xff]  ;;  %s7261_s5 = sld [smem:[#allocation12_spill]]  ;;  %s6115_s24 = smov 96  }
  0x14   :  { %v70_v9 = vld [vmem:[%s7260_s25 + $0x18] sm:$0xff]  ;;  %v71_v10 = vld [vmem:[%s7260_s25 + $0x20] sm:$0xff]  ;;  %v72_v11 = vld [vmem:[%s7260_s25 + $0x28] sm:$0xff]  ;;  %s7262_s2 = sld [smem:[#allocation13_spill]]  ;;  %s7263_s28 = sld [smem:[#allocation14_spill]]  ;;  %vm859_vm1 = vcmask 523264  }
  0x15   :  { %v73_v12 = vld [vmem:[%s7260_s25 + $0x30] sm:$0xff]  ;;  %v74_v13 = vld [vmem:[%s7260_s25 + $0x38] sm:$0xff]  ;;  %v4764_v14 = vld [vmem:[%s7259_s29 + $0x20] sm:$0xff]  ;;  %s6118_s30 = smov 32   ;;  %vm6120_vm2 = vmmov 0   ;;  %s7265_s6 = sld [smem:[#allocation10_spill]] }
  0x16   :  { %5437 = vmatpush3.bf16.msra.mxu0 %v5434_v6  ;;  %v4765_v15 = vld [vmem:[%s7259_s29 + $0x28] sm:$0xff]  ;;  %v4766_v17 = vld [vmem:[%s7259_s29 + $0x30] sm:$0xff]  ;;  %v4767_v18 = vld [vmem:[%s7259_s29 + $0x38] sm:$0xff]  ;;  %s6116_s29 = smov 64   ;;  %vm2073_vm3 = vcmask 130048   ;;  %vm2085_vm5 = vcmask 0  }
  0x17   :  { %v5438_v16 = vpack.c.bf16 %v4765_v15, %v4764_v14  ;;  %v5442_v19 = vpack.c.bf16 %v4767_v18, %v4766_v17 }
  0x19   :  { %5069 = vmatmul.mubr.msk.f32.vlgmr.msra.gmra.mrb[0].mxu0 %vm86_vm0, %v68_v7  ;;  %5439 = vmatprep.subr.bf16.mxu1 %v5438_v16  ;;  %v4747_v20 = vld [vmem:[%s7261_s5] ss:$0 sm:$0xff] }
  0x1a   :  { %5071 = vmatprep.mubr.msk.f32.mxu0 %vm86_vm0, %v69_v8  ;;  %5441 = vmatpush3.bf16.msra.mxu1 %v5438_v16 }
  0x1b   :  { %5443 = vmatprep.subr.bf16.mxu1 %v5442_v19 }
  0x1d   :  { %5072 = vmatmul.mubr.msk.f32.gmra.mrb[2].mxu0 %vm86_vm0, %v70_v9 }
  0x1e   :  { %5074 = vmatprep.mubr.msk.f32.mxu0 %vm86_vm0, %v71_v10  ;;  %5445 = vmatpush3.bf16.msra.mxu1 %v5442_v19 }
  0x21   :  { %5075 = vmatmul.mubr.msk.f32.gmra.mrb[4].mxu0 %vm86_vm0, %v72_v11 }
  0x22   :  { %5077 = vmatprep.mubr.msk.f32.mxu0 %vm86_vm0, %v73_v12 }
  0x25   :  { %5078 = vmatmul.mubr.msk.f32.gmra.mrb[6].mxu0 %vm86_vm0, %v74_v13 }
  0xec   :  { %v5070_v21 = vpop.f32.mrb[0].mxu0 }
  0xed   :  { %v183_v22 = vadd.f32 %v5070_v21, %v4747_v20  ;;  %v177_v23 = vpop.f32.mrb[1].mxu0 }
  0xee   :  { %v178_v24 = vadd.f32 %v4747_v20, %v177_v23 }
  0xef   :  { %v265_v25 = vmax.f32 %v183_v22, 0.0  ;;  %v4757_v45 = vmul.f32 -1.442695, %v183_v22 }
  0xf0   :  { %v264_v26 = vmax.f32 %v178_v24, 0.0  ;;  %v5073_v27 = vpop.f32.mrb[2].mxu0  ;;  %v4756_v46 = vmul.f32 -1.442695, %v178_v24 }
  0xf1   :  { %282 = vrot.lane.b32.xlu1 %v265_v25, %s6115_s24  ;;  %v187_v28 = vpop.f32.mrb[3].mxu0  ;;  %v193_v33 = vadd.f32 %v5073_v27, %v4747_v20  ;;  %5766 = vpow2.f32 %v4757_v45 }
  0xf2   :  { %280 = vrot.lane.b32.xlu0 %v264_v26, %s6115_s24  ;;  %v188_v29 = vadd.f32 %v4747_v20, %v187_v28  ;;  %5768 = vpow2.f32 %v4756_v46 }
  0xf3   :  { %v267_v37 = vmax.f32 %v193_v33, 0.0  ;;  %v4759_v48 = vmul.f32 -1.442695, %v193_v33 }
  0xf4   :  { %v5076_v30 = vpop.f32.mrb[4].mxu0  ;;  %v266_v32 = vmax.f32 %v188_v29, 0.0  ;;  %v4758_v47 = vmul.f32 -1.442695, %v188_v29 }
  0xf5   :  { %330 = vrot.lane.b32.xlu1 %v183_v22, %s6116_s29  ;;  %v197_v31 = vpop.f32.mrb[5].mxu0  ;;  %v203_v39 = vadd.f32 %v5076_v30, %v4747_v20 }
  0xf6   :  { %328 = vrot.lane.b32.xlu0 %v178_v24, %s6116_s29  ;;  %v198_v36 = vadd.f32 %v4747_v20, %v197_v31  ;;  %5770 = vpow2.f32 %v4758_v47 }
  0xf7   :  { %v269_v41 = vmax.f32 %v203_v39, 0.0  ;;  %5772 = vpow2.f32 %v4759_v48  ;;  %v4761_v52 = vmul.f32 -1.442695, %v203_v39 }
  0xf8   :  { %v5079_v34 = vpop.f32.mrb[6].mxu0  ;;  %v268_v38 = vmax.f32 %v198_v36, 0.0  ;;  %v4760_v49 = vmul.f32 -1.442695, %v198_v36 }
  0xf9   :  { %332 = vrot.lane.b32.xlu1 %v188_v29, %s6116_s29  ;;  %v207_v35 = vpop.f32.mrb[7].mxu0  ;;  %v213_v43 = vadd.f32 %v5079_v34, %v4747_v20 }
  0xfa   :  { %284 = vrot.lane.b32.xlu0 %v266_v32, %s6115_s24  ;;  %v208_v40 = vadd.f32 %v4747_v20, %v207_v35  ;;  %5774 = vpow2.f32 %v4760_v49 }
  0xfb   :  { %v271_v44 = vmax.f32 %v213_v43, 0.0  ;;  %v5767_v50 = vpop.eup %5766  ;;  %5776 = vpow2.f32 %v4761_v52  ;;  %v4763_v59 = vmul.f32 -1.442695, %v213_v43 }
  0xfc   :  { %v270_v42 = vmax.f32 %v208_v40, 0.0  ;;  %v5769_v51 = vpop.eup %5768  ;;  %v241_v53 = vadd.f32 1.0, %v5767_v50  ;;  %v4762_v56 = vmul.f32 -1.442695, %v208_v40 }
  0xfd   :  { %334 = vrot.lane.b32.xlu1 %v193_v33, %s6116_s29  ;;  %v240_v55 = vadd.f32 1.0, %v5769_v51 }
  0xfe   :  { %286 = vrot.lane.b32.xlu0 %v267_v37, %s6115_s24  ;;  %5778 = vrcp.f32 %v241_v53 }
  0xff   :  { %5780 = vrcp.f32 %v240_v55 }
 0x100   :  { %v5771_v54 = vpop.eup %5770  ;;  %5782 = vpow2.f32 %v4762_v56 }
 0x101   :  { %336 = vrot.lane.b32.xlu1 %v198_v36, %s6116_s29  ;;  %v242_v57 = vadd.f32 1.0, %v5771_v54  ;;  %v5773_v58 = vpop.eup %5772 }
 0x102   :  { %288 = vrot.lane.b32.xlu0 %v268_v38, %s6115_s24  ;;  %v243_v60 = vadd.f32 1.0, %v5773_v58 }
 0x103   :  { %5784 = vrcp.f32 %v242_v57 }
 0x104   :  { %v5775_v61 = vpop.eup %5774  ;;  %5786 = vpow2.f32 %v4763_v59 }
 0x105   :  { %338 = vrot.lane.b32.xlu1 %v203_v39, %s6116_s29  ;;  %5788 = vrcp.f32 %v243_v60  ;;  %v244_v62 = vadd.f32 1.0, %v5775_v61  ;;  %v5777_v63 = vpop.eup %5776  ;;  %v663_v61 = vld [vmem:[%s7262_s2 + $0x8] sm:$0xff] }
 0x106   :  { %290 = vrot.lane.b32.xlu0 %v269_v41, %s6115_s24  ;;  %v245_v4 = vadd.f32 1.0, %v5777_v63  ;;  %v662_v63 = vld [vmem:[%s7262_s2] sm:$0xff] }
 0x107   :  { %5790 = vrcp.f32 %v244_v62  ;;  %v665_v62 = vld [vmem:[%s7262_s2 + $0x18] sm:$0xff] }
 0x108   :  { %v5779_v0 = vpop.eup %5778  ;;  %5792 = vrcp.f32 %v245_v4 }
 0x109   :  { %340 = vrot.lane.b32.xlu1 %v208_v40, %s6116_s29  ;;  %v5781_v2 = vpop.eup %5780  ;;  %v313_v6 = vsub.f32 1.0, %v5779_v0 }
 0x10a   :  { %292 = vrot.lane.b32.xlu0 %v270_v42, %s6115_s24  ;;  %v5783_v5 = vpop.eup %5782  ;;  %v312_v9 = vsub.f32 1.0, %v5781_v2 }
 0x10b   :  { %v246_v12 = vadd.f32 1.0, %v5783_v5 }
 0x10d   :  { %342 = vrot.lane.b32.xlu1 %v213_v43, %s6116_s29  ;;  %v5785_v7 = vpop.eup %5784  ;;  %5794 = vrcp.f32 %v246_v12  ;;  %v669_v12 = vld [vmem:[%s7262_s2 + $0x38] sm:$0xff] }
 0x10e   :  { %294 = vrot.lane.b32.xlu0 %v271_v44, %s6115_s24  ;;  %v5787_v15 = vpop.eup %5786  ;;  %v314_v17 = vsub.f32 1.0, %v5785_v7 }
 0x10f   :  { %v5789_v18 = vpop.eup %5788  ;;  %v247_v24 = vadd.f32 1.0, %v5787_v15  ;;  %v839_v15 = vld [vmem:[%s7231_s7 + $0x20] sm:$0xff] }
 0x110   :  { %v315_v26 = vsub.f32 1.0, %v5789_v18 }
 0x111   :  { %v5791_v27 = vpop.eup %5790  ;;  %5796 = vrcp.f32 %v247_v24  ;;  %v843_v24 = vld [vmem:[%s7231_s7 + $0x40] sm:$0xff] }
 0x112   :  { %v316_v33 = vsub.f32 1.0, %v5791_v27  ;;  %v5793_v34 = vpop.eup %5792 }
 0x113   :  { %v317_v40 = vsub.f32 1.0, %v5793_v34 }
 0x117   :  { %v5795_v41 = vpop.eup %5794 }
 0x118   :  { %v318_v47 = vsub.f32 1.0, %v5795_v41 }
 0x11b   :  { %v5797_v48 = vpop.eup %5796 }
 0x11c   :  { %v319_v54 = vsub.f32 1.0, %v5797_v48 }
 0x163   :  { %v283_v1 = vpop.permute.xlu1 %282 }
 0x164   :  { %v281_v3 = vpop.permute.xlu0 %280  ;;  %v305_v16 = vmul.f32 %v5779_v0, %v283_v1  ;;  %v5446_v0 = vpack.c.bf16 %v665_v62, %v663_v61  ;;  %v664_v1 = vld [vmem:[%s7262_s2 + $0x10] sm:$0xff] }
 0x165   :  { %v304_v13 = vmul.f32 %v5781_v2, %v281_v3  ;;  %v836_v2 = vld [vmem:[%s7231_s7 + $0x8] sm:$0xff]  ;;  %v838_v3 = vld [vmem:[%s7231_s7 + $0x18] sm:$0xff]  ;;  %v5448_v4 = vpack.c.bf16 %v664_v1, %v662_v63 }
 0x166   :  { %v6340_v5 = vpack.c.bf16 %v838_v3, %v836_v2  ;;  %5447 = vmatprep.subr.bf16.mxu0 %v5446_v0 }
 0x167   :  { %v331_v8 = vpop.permute.xlu1 %330  ;;  %5449 = vmatpush1.bf16.msra.mxu0 %v5448_v4 }
 0x168   :  { %v353_v10 = vmul.f32 %v331_v8, %v313_v6  ;;  %v329_v11 = vpop.permute.xlu0 %328  ;;  %v835_v6 = vld [vmem:[%s7231_s7] sm:$0xff]  ;;  %v840_v8 = vld [vmem:[%s7231_s7 + $0x28] sm:$0xff]  ;;  %5455 = vmatprep.subr.bf16.mxu1 %v6340_v5 }
 0x169   :  { %v352_v14 = vmul.f32 %v329_v11, %v312_v9  ;;  %v667_v11 = vld [vmem:[%s7262_s2 + $0x28] sm:$0xff] }
 0x16a   :  { %v361_v21 = vadd.f32 %v353_v10, %v305_v16  ;;  %v842_v10 = vld [vmem:[%s7231_s7 + $0x38] sm:$0xff]  ;;  %v841_v16 = vld [vmem:[%s7231_s7 + $0x30] sm:$0xff] }
 0x16b   :  { %v333_v19 = vpop.permute.xlu1 %332  ;;  %v360_v20 = vadd.f32 %v352_v14, %v304_v13  ;;  %v6363_v13 = vpack.c.bf16 %v842_v10, %v840_v8  ;;  %v5450_v14 = vpack.c.bf16 %v669_v12, %v667_v11 }
 0x16c   :  { %v354_v22 = vmul.f32 %v333_v19, %v314_v17  ;;  %v285_v23 = vpop.permute.xlu0 %284  ;;  %v666_v17 = vld [vmem:[%s7262_s2 + $0x20] sm:$0xff]  ;;  %v668_v19 = vld [vmem:[%s7262_s2 + $0x30] sm:$0xff] }
 0x16d   :  { %v306_v25 = vmul.f32 %v5785_v7, %v285_v23  ;;  %5088 = vmatprep.mubr.msk.f32.mxu1 %vm86_vm0, %v360_v20  ;;  %v837_v7 = vld [vmem:[%s7231_s7 + $0x10] sm:$0xff]  ;;  %5451 = vmatprep.subr.bf16.mxu0 %v5450_v14  ;;  %v5452_v20 = vpack.c.bf16 %v668_v19, %v666_v17 }
 0x16e   :  { %5089 = vmatmul.mubr.msk.f32.vlgmr.msra.gmra.mrb[0].mxu1 %vm86_vm0, %v361_v21  ;;  %v6351_v9 = vpack.c.bf16 %v837_v7, %v835_v6  ;;  %v844_v21 = vld [vmem:[%s7231_s7 + $0x48] sm:$0xff] }
 0x16f   :  { %v362_v28 = vadd.f32 %v354_v22, %v306_v25  ;;  %v335_v29 = vpop.permute.xlu1 %334  ;;  %5453 = vmatpush1.bf16.msra.mxu0 %v5452_v20  ;;  %v846_v22 = vld [vmem:[%s7231_s7 + $0x58] sm:$0xff]  ;;  %v845_v25 = vld [vmem:[%s7231_s7 + $0x50] sm:$0xff] }
 0x170   :  { %v355_v30 = vmul.f32 %v335_v29, %v315_v26  ;;  %v287_v31 = vpop.permute.xlu0 %286  ;;  %5457 = vmatpush1.bf16.msra.mxu1 %v6351_v9  ;;  %5487 = vmatprep.subr.bf16.mxu0 %v6340_v5  ;;  %v6389_v23 = vpack.c.bf16 %v846_v22, %v844_v21  ;;  %v6397_v26 = vpack.c.bf16 %v845_v25, %v843_v24 }
 0x171   :  { %v307_v32 = vmul.f32 %v5789_v18, %v287_v31  ;;  %5091 = vmatprep.mubr.msk.f32.mxu1 %vm86_vm0, %v362_v28  ;;  %v6375_v18 = vpack.c.bf16 %v841_v16, %v839_v15  ;;  %5459 = vmatprep.subr.bf16.mxu1 %v6363_v13  ;;  %v850_v28 = vld [vmem:[%s7231_s7 + $0x78] sm:$0xff]  ;;  %v849_v31 = vld [vmem:[%s7231_s7 + $0x70] sm:$0xff] }
 0x173   :  { %v363_v35 = vadd.f32 %v355_v30, %v307_v32  ;;  %v337_v36 = vpop.permute.xlu1 %336  ;;  %v847_v30 = vld [vmem:[%s7231_s7 + $0x60] sm:$0xff] }
 0x174   :  { %v356_v37 = vmul.f32 %v337_v36, %v316_v33  ;;  %v289_v38 = vpop.permute.xlu0 %288  ;;  %5461 = vmatpush1.bf16.msra.mxu1 %v6375_v18  ;;  %v6415_v32 = vpack.c.bf16 %v849_v31, %v847_v30  ;;  %v6117_v33 = vmov 0.0  }
 0x175   :  { %v308_v39 = vmul.f32 %v5791_v27, %v289_v38  ;;  %5092 = vmatmul.mubr.msk.f32.gmra.mrb[2].mxu1 %vm86_vm0, %v363_v35  ;;  %5463 = vmatprep.subr.bf16.mxu1 %v6389_v23  ;;  %v848_v27 = vld [vmem:[%s7231_s7 + $0x68] sm:$0xff] }
 0x176   :  { %v6407_v29 = vpack.c.bf16 %v850_v28, %v848_v27  ;;  %770 = vmatprep.mubr.f32.mxu0 %v6117_v33 }
 0x177   :  { %v364_v42 = vadd.f32 %v356_v37, %v308_v39  ;;  %v339_v43 = vpop.permute.xlu1 %338 }
 0x178   :  { %v357_v44 = vmul.f32 %v339_v43, %v317_v40  ;;  %v291_v45 = vpop.permute.xlu0 %290  ;;  %5465 = vmatpush1.bf16.msra.mxu1 %v6397_v26 }
 0x179   :  { %v309_v46 = vmul.f32 %v5793_v34, %v291_v45  ;;  %5094 = vmatprep.mubr.msk.f32.mxu1 %vm86_vm0, %v364_v42  ;;  %5467 = vmatprep.subr.bf16.mxu1 %v6407_v29  ;;  %v4769_v34 = vld [vmem:[%s7261_s5 + $0x1] ss:$0 sm:$0xff] }
 0x17b   :  { %v365_v49 = vadd.f32 %v357_v44, %v309_v46  ;;  %v341_v50 = vpop.permute.xlu1 %340 }
 0x17c   :  { %v358_v51 = vmul.f32 %v341_v50, %v318_v47  ;;  %v293_v52 = vpop.permute.xlu0 %292  ;;  %5469 = vmatpush1.bf16.msra.mxu1 %v6415_v32 }
 0x17d   :  { %v310_v53 = vmul.f32 %v5795_v41, %v293_v52  ;;  %5095 = vmatmul.mubr.msk.f32.gmra.mrb[4].mxu1 %vm86_vm0, %v365_v49  ;;  %5471 = vmatprep.subr.bf16.mxu1 %v6340_v5 }
 0x17f   :  { %v366_v55 = vadd.f32 %v358_v51, %v310_v53  ;;  %v343_v56 = vpop.permute.xlu1 %342 }
 0x180   :  { %v359_v57 = vmul.f32 %v343_v56, %v319_v54  ;;  %v295_v58 = vpop.permute.xlu0 %294 }
 0x181   :  { %v311_v59 = vmul.f32 %v5797_v48, %v295_v58  ;;  %5097 = vmatprep.mubr.msk.f32.mxu1 %vm86_vm0, %v366_v55 }
 0x183   :  { %v367_v60 = vadd.f32 %v359_v57, %v311_v59 }
 0x185   :  { %5098 = vmatmul.mubr.msk.f32.gmra.mrb[6].mxu1 %vm86_vm0, %v367_v60 }
 0x186   :  { %927 = vmatprep.mubr.f32.mxu1 %v6117_v33 }
 0x189   :  { %928 = vmatmul.mubr.f32.vlgmr.msra.gmra.mrb[8].mxu1 %v6117_v33 }
 0x18a   :  { %5473 = vmatpush1.bf16.msra.mxu1 %v6351_v9  ;;  %1068 = vmatprep.mubr.f32.mxu1 %v6117_v33 }
 0x18b   :  { %5475 = vmatprep.subr.bf16.mxu1 %v6363_v13 }
 0x18e   :  { %5477 = vmatpush1.bf16.msra.mxu1 %v6375_v18 }
 0x18f   :  { %5479 = vmatprep.subr.bf16.mxu1 %v6389_v23 }
 0x192   :  { %5481 = vmatpush1.bf16.msra.mxu1 %v6397_v26 }
 0x193   :  { %5483 = vmatprep.subr.bf16.mxu1 %v6407_v29 }
 0x196   :  { %5485 = vmatpush1.bf16.msra.mxu1 %v6415_v32 }
 0x197   :  { %5503 = vmatprep.subr.bf16.mxu1 %v6340_v5 }
 0x241   :  { %v5090_v35 = vpop.f32.mrb[0].mxu1 }
 0x242   :  { %v471_v36 = vpop.f32.mrb[1].mxu1  ;;  %v477_v38 = vadd.f32 %v5090_v35, %v4769_v34 }
 0x243   :  { %v472_v37 = vadd.f32 %v4769_v34, %v471_v36 }
 0x244   :  { %v559_v42 = vmax.f32 %v477_v38, 0.0  ;;  %v4779_v60 = vmul.f32 -1.442695, %v477_v38 }
 0x245   :  { %622 = vrot.lane.b32.xlu1 %v472_v37, %s6116_s29  ;;  %v558_v39 = vmax.f32 %v472_v37, 0.0  ;;  %v4778_v59 = vmul.f32 -1.442695, %v472_v37 }
 0x247   :  { %574 = vrot.lane.b32.xlu0 %v558_v39, %s6115_s24  ;;  %5798 = vpow2.f32 %v4778_v59 }
 0x248   :  { %v5093_v40 = vpop.f32.mrb[2].mxu1  ;;  %5800 = vpow2.f32 %v4779_v60 }
 0x249   :  { %v481_v41 = vpop.f32.mrb[3].mxu1  ;;  %624 = vrot.lane.b32.xlu1 %v477_v38, %s6116_s29  ;;  %v487_v45 = vadd.f32 %v5093_v40, %v4769_v34 }
 0x24a   :  { %v482_v43 = vadd.f32 %v4769_v34, %v481_v41 }
 0x24b   :  { %576 = vrot.lane.b32.xlu0 %v559_v42, %s6115_s24  ;;  %v561_v48 = vmax.f32 %v487_v45, 0.0  ;;  %v4781_v62 = vmul.f32 -1.442695, %v487_v45 }
 0x24c   :  { %v560_v44 = vmax.f32 %v482_v43, 0.0  ;;  %v4780_v61 = vmul.f32 -1.442695, %v482_v43 }
 0x24d   :  { %626 = vrot.lane.b32.xlu1 %v482_v43, %s6116_s29 }
 0x24e   :  { %5802 = vpow2.f32 %v4780_v61 }
 0x24f   :  { %578 = vrot.lane.b32.xlu0 %v560_v44, %s6115_s24  ;;  %5804 = vpow2.f32 %v4781_v62 }
 0x250   :  { %v5096_v46 = vpop.f32.mrb[4].mxu1 }
 0x251   :  { %v491_v47 = vpop.f32.mrb[5].mxu1  ;;  %628 = vrot.lane.b32.xlu1 %v487_v45, %s6116_s29  ;;  %v497_v51 = vadd.f32 %v5096_v46, %v4769_v34  ;;  %v5799_v63 = vpop.eup %5798 }
 0x252   :  { %v492_v49 = vadd.f32 %v4769_v34, %v491_v47  ;;  %v534_v1 = vadd.f32 1.0, %v5799_v63  ;;  %v5801_v2 = vpop.eup %5800 }
 0x253   :  { %580 = vrot.lane.b32.xlu0 %v561_v48, %s6115_s24  ;;  %v563_v54 = vmax.f32 %v497_v51, 0.0  ;;  %v4783_v3 = vmul.f32 -1.442695, %v497_v51  ;;  %v535_v4 = vadd.f32 1.0, %v5801_v2 }
 0x254   :  { %v562_v50 = vmax.f32 %v492_v49, 0.0  ;;  %v4782_v0 = vmul.f32 -1.442695, %v492_v49 }
 0x255   :  { %630 = vrot.lane.b32.xlu1 %v492_v49, %s6116_s29 }
 0x256   :  { %5806 = vpow2.f32 %v4782_v0 }
 0x257   :  { %582 = vrot.lane.b32.xlu0 %v562_v50, %s6115_s24  ;;  %5808 = vrcp.f32 %v534_v1 }
 0x258   :  { %v5099_v52 = vpop.f32.mrb[6].mxu1  ;;  %v5803_v6 = vpop.eup %5802  ;;  %5810 = vpow2.f32 %v4783_v3 }
 0x259   :  { %v501_v53 = vpop.f32.mrb[7].mxu1  ;;  %632 = vrot.lane.b32.xlu1 %v497_v51, %s6116_s29  ;;  %v507_v57 = vadd.f32 %v5099_v52, %v4769_v34  ;;  %5812 = vrcp.f32 %v535_v4  ;;  %v536_v8 = vadd.f32 1.0, %v5803_v6  ;;  %v5805_v10 = vpop.eup %5804 }
 0x25a   :  { %v502_v55 = vadd.f32 %v4769_v34, %v501_v53  ;;  %v537_v12 = vadd.f32 1.0, %v5805_v10 }
 0x25b   :  { %584 = vrot.lane.b32.xlu0 %v563_v54, %s6115_s24  ;;  %v565_v58 = vmax.f32 %v507_v57, 0.0  ;;  %v4785_v11 = vmul.f32 -1.442695, %v507_v57 }
 0x25c   :  { %v564_v56 = vmax.f32 %v502_v55, 0.0  ;;  %v4784_v7 = vmul.f32 -1.442695, %v502_v55 }
 0x25d   :  { %634 = vrot.lane.b32.xlu1 %v502_v55, %s6116_s29 }
 0x25e   :  { %5814 = vpow2.f32 %v4784_v7 }
 0x25f   :  { %586 = vrot.lane.b32.xlu0 %v564_v56, %s6115_s24  ;;  %5816 = vrcp.f32 %v536_v8 }
 0x260   :  { %v5807_v14 = vpop.eup %5806  ;;  %5818 = vpow2.f32 %v4785_v11 }
 0x261   :  { %636 = vrot.lane.b32.xlu1 %v507_v57, %s6116_s29  ;;  %v5809_v15 = vpop.eup %5808  ;;  %5820 = vrcp.f32 %v537_v12  ;;  %v538_v16 = vadd.f32 1.0, %v5807_v14 }
 0x262   :  { %v5811_v19 = vpop.eup %5810  ;;  %v606_v20 = vsub.f32 1.0, %v5809_v15 }
 0x263   :  { %588 = vrot.lane.b32.xlu0 %v565_v58, %s6115_s24  ;;  %v5813_v21 = vpop.eup %5812  ;;  %v539_v27 = vadd.f32 1.0, %v5811_v19  ;;  %5822 = vrcp.f32 %v538_v16 }
 0x264   :  { %v607_v34 = vsub.f32 1.0, %v5813_v21 }
 0x265   :  { %5824 = vrcp.f32 %v539_v27 }
 0x268   :  { %v5815_v30 = vpop.eup %5814 }
 0x269   :  { %v5817_v35 = vpop.eup %5816  ;;  %v540_v39 = vadd.f32 1.0, %v5815_v30 }
 0x26a   :  { %v5819_v41 = vpop.eup %5818  ;;  %v608_v43 = vsub.f32 1.0, %v5817_v35 }
 0x26b   :  { %v5821_v44 = vpop.eup %5820  ;;  %v541_v48 = vadd.f32 1.0, %v5819_v41  ;;  %5826 = vrcp.f32 %v540_v39 }
 0x26c   :  { %v609_v51 = vsub.f32 1.0, %v5821_v44 }
 0x26d   :  { %v5823_v52 = vpop.eup %5822  ;;  %5828 = vrcp.f32 %v541_v48 }
 0x26e   :  { %v610_v58 = vsub.f32 1.0, %v5823_v52 }
 0x26f   :  { %v5825_v59 = vpop.eup %5824 }
 0x270   :  { %v611_v1 = vsub.f32 1.0, %v5825_v59 }
 0x275   :  { %v5827_v2 = vpop.eup %5826 }
 0x276   :  { %v612_v10 = vsub.f32 1.0, %v5827_v2 }
 0x277   :  { %v5829_v11 = vpop.eup %5828 }
 0x278   :  { %v613_v19 = vsub.f32 1.0, %v5829_v11 }
 0x2b7   :  { %v623_v17 = vpop.permute.xlu1 %622 }
 0x2b8   :  { %v646_v24 = vmul.f32 %v623_v17, %v606_v20 }
 0x2b9   :  { %v575_v22 = vpop.permute.xlu0 %574 }
 0x2ba   :  { %v598_v25 = vmul.f32 %v5809_v15, %v575_v22 }
 0x2bb   :  { %v625_v28 = vpop.permute.xlu1 %624 }
 0x2bc   :  { %v654_v31 = vadd.f32 %v646_v24, %v598_v25  ;;  %v647_v37 = vmul.f32 %v625_v28, %v607_v34  ;;  %v929_v25 = vpop.f32.mrb[8].mxu1  ;;  %v672_v28 = vlaneseq  ;;  %v670_v34 = vld [vmem:[%s7263_s28] sm:$0x3]  ;;  %s7264_s28 = sld [smem:[#allocation9_spill]] }
 0x2bd   :  { %v577_v36 = vpop.permute.xlu0 %576  ;;  %v931_v27 = vpop.f32.mrb[9].mxu1 }
 0x2be   :  { %v599_v38 = vmul.f32 %v5813_v21, %v577_v36  ;;  %4786 = vmatmul.mubr.msk.f32.vlgmr.msra.gmra.mrb[8].mxu0 %vm86_vm0, %v654_v31  ;;  %v6475_v30 = vshrl.u32 %v672_v28, 7 }
 0x2bf   :  { %v627_v40 = vpop.permute.xlu1 %626  ;;  %776 = vmatprep.mubr.f32.mxu0 %v6117_v33  ;;  %5489 = vmatpush1.bf16.msra.mxu0 %v6351_v9 }
 0x2c0   :  { %v655_v42 = vadd.f32 %v647_v37, %v599_v38  ;;  %5491 = vmatprep.subr.bf16.mxu0 %v6363_v13  ;;  %v648_v46 = vmul.f32 %v627_v40, %v608_v43  ;;  %v674_v31 = vsub.s32 0, %v6475_v30  ;;  %vm2056_vm4 = vcmp.lt.s32.totalorder %v6475_v30, 2 }
 0x2c1   :  { %v579_v45 = vpop.permute.xlu0 %578 }
 0x2c2   :  { %v600_v47 = vmul.f32 %v5817_v35, %v579_v45  ;;  %4787 = vmatmul.mubr.msk.f32.gmra.mrb[10].mxu0 %vm86_vm0, %v655_v42  ;;  %v678_v35 = vsub.s32 1, %v6475_v30  ;;  %v675_v36 = vrot.slane %v670_v34, %v674_v31 }
 0x2c3   :  { %v629_v49 = vpop.permute.xlu1 %628  ;;  %782 = vmatprep.mubr.f32.mxu0 %v6117_v33  ;;  %5493 = vmatpush1.bf16.msra.mxu0 %v6375_v18 }
 0x2c4   :  { %v656_v50 = vadd.f32 %v648_v46, %v600_v47  ;;  %5495 = vmatprep.subr.bf16.mxu0 %v6389_v23  ;;  %v649_v54 = vmul.f32 %v629_v49, %v609_v51  ;;  %v679_v37 = vrot.slane %v670_v34, %v678_v35 }
 0x2c5   :  { %v581_v53 = vpop.permute.xlu0 %580 }
 0x2c6   :  { %v601_v55 = vmul.f32 %v5821_v44, %v581_v53  ;;  %4788 = vmatmul.mubr.msk.f32.gmra.mrb[12].mxu0 %vm86_vm0, %v656_v50 }
 0x2c7   :  { %v631_v56 = vpop.permute.xlu1 %630  ;;  %788 = vmatprep.mubr.f32.mxu0 %v6117_v33  ;;  %5497 = vmatpush1.bf16.msra.mxu0 %v6397_v26 }
 0x2c8   :  { %v657_v57 = vadd.f32 %v649_v54, %v601_v55  ;;  %5499 = vmatprep.subr.bf16.mxu0 %v6407_v29  ;;  %v650_v61 = vmul.f32 %v631_v56, %v610_v58 }
 0x2c9   :  { %v583_v60 = vpop.permute.xlu0 %582 }
 0x2ca   :  { %v602_v62 = vmul.f32 %v5823_v52, %v583_v60  ;;  %4789 = vmatmul.mubr.msk.f32.gmra.mrb[14].mxu0 %vm86_vm0, %v657_v57 }
 0x2cb   :  { %v633_v63 = vpop.permute.xlu1 %632  ;;  %794 = vmatprep.mubr.f32.mxu0 %v6117_v33  ;;  %5501 = vmatpush1.bf16.msra.mxu0 %v6415_v32 }
 0x2cc   :  { %v658_v0 = vadd.f32 %v650_v61, %v602_v62  ;;  %5519 = vmatprep.subr.bf16.mxu0 %v6340_v5  ;;  %v651_v4 = vmul.f32 %v633_v63, %v611_v1 }
 0x2cd   :  { %v585_v3 = vpop.permute.xlu0 %584 }
 0x2ce   :  { %v603_v6 = vmul.f32 %v5825_v59, %v585_v3  ;;  %4790 = vmatmul.mubr.msk.f32.gmra.mrb[16].mxu0 %vm86_vm0, %v658_v0 }
 0x2cf   :  { %v635_v7 = vpop.permute.xlu1 %634  ;;  %800 = vmatprep.mubr.f32.mxu0 %v6117_v33 }
 0x2d0   :  { %v659_v8 = vadd.f32 %v651_v4, %v603_v6  ;;  %v652_v14 = vmul.f32 %v635_v7, %v612_v10 }
 0x2d1   :  { %v587_v12 = vpop.permute.xlu0 %586 }
 0x2d2   :  { %v604_v15 = vmul.f32 %v5827_v2, %v587_v12  ;;  %4791 = vmatmul.mubr.msk.f32.gmra.mrb[18].mxu0 %vm86_vm0, %v659_v8 }
 0x2d3   :  { %v637_v16 = vpop.permute.xlu1 %636  ;;  %806 = vmatprep.mubr.f32.mxu0 %v6117_v33 }
 0x2d4   :  { %v660_v17 = vadd.f32 %v652_v14, %v604_v15  ;;  %v653_v21 = vmul.f32 %v637_v16, %v613_v19 }
 0x2d5   :  { %v589_v20 = vpop.permute.xlu0 %588 }
 0x2d6   :  { %v605_v22 = vmul.f32 %v5829_v11, %v589_v20  ;;  %4792 = vmatmul.mubr.msk.f32.gmra.mrb[20].mxu0 %vm86_vm0, %v660_v17 }
 0x2d7   :  { %812 = vmatprep.mubr.f32.mxu0 %v6117_v33 }
 0x2d8   :  { %v661_v24 = vadd.f32 %v653_v21, %v605_v22 }
 0x2da   :  { %4793 = vmatmul.mubr.msk.f32.gmra.mrb[22].mxu0 %vm86_vm0, %v661_v24 }
 0x2db   :  { %1209 = vmatprep.mubr.f32.mxu0 %v6117_v33 }
 0x391   :  { %v772_v38 = vpop.f32.mrb[8].mxu0 }
 0x392   :  { %v773_v39 = vadd.f32 %v772_v38, %v675_v36  ;;  %v774_v40 = vpop.f32.mrb[9].mxu0 }
 0x393   :  { %v6482_v41 = vadd.f32 %v774_v40, %v679_v37 }
 0x394   :  { %v934_v42 = vadd.f32 %v929_v25, %v773_v39 }
 0x395   :  { %v778_v43 = vpop.f32.mrb[10].mxu0 }
 0x396   :  { %5830 = vtanh.f32 %v934_v42  ;;  %v6484_v44 = vadd.f32 %v778_v43, %v675_v36  ;;  %v780_v45 = vpop.f32.mrb[11].mxu0  ;;  %v4794_v12 = vmul.f32 -1.442695, %v934_v42 }
 0x397   :  { %v6486_v46 = vadd.f32 %v780_v45, %v679_v37 }
 0x399   :  { %v784_v47 = vpop.f32.mrb[12].mxu0 }
 0x39a   :  { %v6488_v48 = vadd.f32 %v784_v47, %v675_v36  ;;  %v786_v49 = vpop.f32.mrb[13].mxu0 }
 0x39b   :  { %v6490_v50 = vadd.f32 %v786_v49, %v679_v37 }
 0x39d   :  { %v790_v51 = vpop.f32.mrb[14].mxu0 }
 0x39e   :  { %v6492_v52 = vadd.f32 %v790_v51, %v675_v36  ;;  %v792_v53 = vpop.f32.mrb[15].mxu0 }
 0x39f   :  { %v6494_v54 = vadd.f32 %v792_v53, %v679_v37 }
 0x3a0   :  { %v5831_v55 = vpop.eup %5830 }
 0x3a1   :  { %v796_v56 = vpop.f32.mrb[16].mxu0  ;;  %945 = vrot.lane.b32.xlu0 %v5831_v55, %s6116_s29 }
 0x3a2   :  { %v6497_v57 = vadd.f32 %v796_v56, %v675_v36  ;;  %v798_v58 = vpop.f32.mrb[17].mxu0 }
 0x3a3   :  { %v6499_v59 = vadd.f32 %v798_v58, %v679_v37 }
 0x3a5   :  { %v802_v60 = vpop.f32.mrb[18].mxu0 }
 0x3a6   :  { %v6501_v61 = vadd.f32 %v802_v60, %v675_v36  ;;  %v804_v62 = vpop.f32.mrb[19].mxu0 }
 0x3a7   :  { %v6503_v63 = vadd.f32 %v804_v62, %v679_v37 }
 0x3a9   :  { %v808_v0 = vpop.f32.mrb[20].mxu0 }
 0x3aa   :  { %v6505_v1 = vadd.f32 %v808_v0, %v675_v36  ;;  %v810_v2 = vpop.f32.mrb[21].mxu0 }
 0x3ab   :  { %v6507_v3 = vadd.f32 %v810_v2, %v679_v37 }
 0x3ad   :  { %v814_v4 = vpop.f32.mrb[22].mxu0 }
 0x3ae   :  { %v6509_v6 = vadd.f32 %v814_v4, %v675_v36  ;;  %v816_v7 = vpop.f32.mrb[23].mxu0 }
 0x3af   :  { %v817_v8 = vadd.f32 %v816_v7, %v679_v37 }
 0x3b1   :  { %v935_v10 = vadd.f32 %v931_v27, %v817_v8 }
 0x3b3   :  { %5832 = vtanh.f32 %v935_v10  ;;  %v4795_v16 = vmul.f32 -1.442695, %v935_v10 }
 0x3b4   :  { %5834 = vpow2.f32 %v4794_v12 }
 0x3bd   :  { %v5833_v11 = vpop.eup %5832 }
 0x3be   :  { %969 = vrot.lane.b32.xlu1 %v5833_v11, %s6116_s29  ;;  %v5835_v14 = vpop.eup %5834 }
 0x3bf   :  { %v939_v15 = vadd.f32 1.0, %v5835_v14 }
 0x3c1   :  { %5836 = vrcp.f32 %v939_v15 }
 0x3c2   :  { %5838 = vpow2.f32 %v4795_v16 }
 0x3cb   :  { %v5837_v17 = vpop.eup %5836 }
 0x3cc   :  { %v5839_v21 = vpop.eup %5838  ;;  %v943_v28 = vmul.f32 0.0, %v5837_v17 }
 0x3cd   :  { %v963_v22 = vadd.f32 1.0, %v5839_v21 }
 0x3cf   :  { %5840 = vrcp.f32 %v963_v22 }
 0x3d9   :  { %v5841_v24 = vpop.eup %5840 }
 0x3da   :  { %v967_v36 = vmul.f32 0.0, %v5841_v24 }
 0x413   :  { %v946_v19 = vpop.permute.xlu0 %945 }
 0x414   :  { %v948_v20 = vmul.f32 %v5837_v17, %v946_v19 }
 0x416   :  { %950 = vrot.lane.b32.xlu0 %v948_v20, %s6118_s30 }
 0x430   :  { %v970_v25 = vpop.permute.xlu1 %969 }
 0x431   :  { %v972_v27 = vmul.f32 %v5841_v24, %v970_v25 }
 0x433   :  { %974 = vrot.lane.b32.xlu1 %v972_v27, %s6118_s30 }
 0x488   :  { %v951_v31 = vpop.permute.xlu0 %950 }
 0x489   :  { %v953_v34 = vadd.f32 %v951_v31, %v943_v28 }
 0x48b   :  { %5842 = vtanh.f32 %v953_v34 }
 0x495   :  { %v5843_v35 = vpop.eup %5842 }
 0x496   :  { %956 = vrot.lane.b32.xlu0 %v5843_v35, %s6116_s29 }
 0x4a5   :  { %v975_v37 = vpop.permute.xlu1 %974 }
 0x4a6   :  { %v977_v38 = vadd.f32 %v975_v37, %v967_v36 }
 0x4a8   :  { %5844 = vtanh.f32 %v977_v38 }
 0x4b2   :  { %v5845_v39 = vpop.eup %5844 }
 0x4b3   :  { %980 = vrot.lane.b32.xlu1 %v5845_v39, %s6116_s29 }
 0x508   :  { %v957_v40 = vpop.permute.xlu0 %956 }
 0x509   :  { %v959_v42 = vmul.f32 %v5837_v17, %v957_v40 }
 0x50b   :  { %985 = vrot.lane.b32.xlu0 %v959_v42, %s6118_s30 }
 0x525   :  { %v981_v43 = vpop.permute.xlu1 %980 }
 0x526   :  { %v983_v45 = vmul.f32 %v5841_v24, %v981_v43 }
 0x528   :  { %989 = vrot.lane.b32.xlu1 %v983_v45, %s6116_s29 }
 0x57d   :  { %v986_v47 = vpop.permute.xlu0 %985 }
 0x59a   :  { %v990_v49 = vpop.permute.xlu1 %989 }
 0x59b   :  { %v992_v51 = vsel %vm86_vm0, %v986_v47, %v990_v49 }
 0x59c   :  { %4796 = vmatmul.mubr.msk.f32.vlgmr.msra.gmra.mrb[10].mxu1 %vm859_vm1, %v992_v51 }
 0x59d   :  { %5505 = vmatpush1.bf16.msra.mxu1 %v6351_v9  ;;  %1350 = vmatprep.mubr.f32.mxu1 %v6117_v33 }
 0x59e   :  { %5507 = vmatprep.subr.bf16.mxu1 %v6363_v13 }
 0x5a1   :  { %5509 = vmatpush1.bf16.msra.mxu1 %v6375_v18 }
 0x5a2   :  { %5511 = vmatprep.subr.bf16.mxu1 %v6389_v23 }
 0x5a5   :  { %5513 = vmatpush1.bf16.msra.mxu1 %v6397_v26 }
 0x5a6   :  { %5515 = vmatprep.subr.bf16.mxu1 %v6407_v29 }
 0x5a9   :  { %5517 = vmatpush1.bf16.msra.mxu1 %v6415_v32 }
 0x5aa   :  { %5535 = vmatprep.subr.bf16.mxu1 %v6340_v5 }
 0x66f   :  { %v1070_v53 = vpop.f32.mrb[10].mxu1 }
 0x670   :  { %v1075_v55 = vadd.f32 %v1070_v53, %v6484_v44  ;;  %v1072_v56 = vpop.f32.mrb[11].mxu1 }
 0x671   :  { %v1076_v58 = vadd.f32 %v1072_v56, %v6507_v3 }
 0x672   :  { %5846 = vtanh.f32 %v1075_v55  ;;  %v4797_v0 = vmul.f32 -1.442695, %v1075_v55 }
 0x673   :  { %5848 = vtanh.f32 %v1076_v58  ;;  %v4798_v2 = vmul.f32 -1.442695, %v1076_v58 }
 0x674   :  { %5850 = vpow2.f32 %v4797_v0 }
 0x675   :  { %5852 = vpow2.f32 %v4798_v2 }
 0x67c   :  { %v5847_v60 = vpop.eup %5846 }
 0x67d   :  { %v5849_v62 = vpop.eup %5848  ;;  %1086 = vrot.lane.b32.xlu0 %v5847_v60, %s6116_s29 }
 0x67e   :  { %1110 = vrot.lane.b32.xlu1 %v5849_v62, %s6116_s29  ;;  %v5851_v4 = vpop.eup %5850 }
 0x67f   :  { %v5853_v7 = vpop.eup %5852  ;;  %v1080_v8 = vadd.f32 1.0, %v5851_v4 }
 0x680   :  { %v1104_v10 = vadd.f32 1.0, %v5853_v7 }
 0x681   :  { %5854 = vrcp.f32 %v1080_v8 }
 0x682   :  { %5856 = vrcp.f32 %v1104_v10 }
 0x68b   :  { %v5855_v44 = vpop.eup %5854 }
 0x68c   :  { %v5857_v11 = vpop.eup %5856  ;;  %v1084_v16 = vmul.f32 %v5855_v44, %v953_v34 }
 0x68d   :  { %v1108_v19 = vmul.f32 %v5857_v11, %v977_v38 }
 0x6ef   :  { %v1087_v3 = vpop.permute.xlu0 %1086 }
 0x6f0   :  { %v1089_v12 = vmul.f32 %v5855_v44, %v1087_v3  ;;  %v1111_v14 = vpop.permute.xlu1 %1110 }
 0x6f1   :  { %v1113_v15 = vmul.f32 %v5857_v11, %v1111_v14 }
 0x6f2   :  { %1091 = vrot.lane.b32.xlu0 %v1089_v12, %s6118_s30 }
 0x6f3   :  { %1115 = vrot.lane.b32.xlu1 %v1113_v15, %s6118_s30 }
 0x764   :  { %v1092_v17 = vpop.permute.xlu0 %1091 }
 0x765   :  { %v1094_v20 = vadd.f32 %v1092_v17, %v1084_v16  ;;  %v1116_v21 = vpop.permute.xlu1 %1115 }
 0x766   :  { %v1118_v22 = vadd.f32 %v1116_v21, %v1108_v19 }
 0x767   :  { %5858 = vtanh.f32 %v1094_v20 }
 0x768   :  { %5860 = vtanh.f32 %v1118_v22 }
 0x771   :  { %v5859_v24 = vpop.eup %5858 }
 0x772   :  { %v5861_v25 = vpop.eup %5860  ;;  %1097 = vrot.lane.b32.xlu0 %v5859_v24, %s6116_s29 }
 0x773   :  { %1121 = vrot.lane.b32.xlu1 %v5861_v25, %s6116_s29 }
 0x7e4   :  { %v1098_v27 = vpop.permute.xlu0 %1097 }
 0x7e5   :  { %v1100_v28 = vmul.f32 %v5855_v44, %v1098_v27  ;;  %v1122_v31 = vpop.permute.xlu1 %1121 }
 0x7e6   :  { %v1124_v35 = vmul.f32 %v5857_v11, %v1122_v31 }
 0x7e7   :  { %1126 = vrot.lane.b32.xlu0 %v1100_v28, %s6118_s30 }
 0x7e8   :  { %1130 = vrot.lane.b32.xlu1 %v1124_v35, %s6116_s29 }
 0x859   :  { %v1127_v34 = vpop.permute.xlu0 %1126 }
 0x85a   :  { %v1131_v36 = vpop.permute.xlu1 %1130 }
 0x85b   :  { %v1133_v37 = vsel %vm86_vm0, %v1127_v34, %v1131_v36 }
 0x85c   :  { %4799 = vmatmul.mubr.msk.f32.vlgmr.msra.gmra.mrb[24].mxu0 %vm859_vm1, %v1133_v37 }
 0x85d   :  { %5521 = vmatpush1.bf16.msra.mxu0 %v6351_v9  ;;  %1485 = vmatprep.mubr.f32.mxu0 %v6117_v33 }
 0x85e   :  { %5523 = vmatprep.subr.bf16.mxu0 %v6363_v13 }
 0x861   :  { %5525 = vmatpush1.bf16.msra.mxu0 %v6375_v18 }
 0x862   :  { %5527 = vmatprep.subr.bf16.mxu0 %v6389_v23 }
 0x865   :  { %5529 = vmatpush1.bf16.msra.mxu0 %v6397_v26 }
 0x866   :  { %5531 = vmatprep.subr.bf16.mxu0 %v6407_v29 }
 0x869   :  { %5533 = vmatpush1.bf16.msra.mxu0 %v6415_v32 }
 0x86a   :  { %5551 = vmatprep.subr.bf16.mxu0 %v6340_v5 }
 0x92f   :  { %v1211_v38 = vpop.f32.mrb[24].mxu0 }
 0x930   :  { %v1216_v39 = vadd.f32 %v1211_v38, %v6488_v48  ;;  %v1213_v40 = vpop.f32.mrb[25].mxu0 }
 0x931   :  { %v1217_v42 = vadd.f32 %v1213_v40, %v6503_v63 }
 0x932   :  { %5862 = vtanh.f32 %v1216_v39  ;;  %v4800_v47 = vmul.f32 -1.442695, %v1216_v39 }
 0x933   :  { %5864 = vtanh.f32 %v1217_v42  ;;  %v4801_v49 = vmul.f32 -1.442695, %v1217_v42 }
 0x934   :  { %5866 = vpow2.f32 %v4800_v47 }
 0x935   :  { %5868 = vpow2.f32 %v4801_v49 }
 0x93c   :  { %v5863_v43 = vpop.eup %5862 }
 0x93d   :  { %v5865_v45 = vpop.eup %5864  ;;  %1227 = vrot.lane.b32.xlu0 %v5863_v43, %s6116_s29 }
 0x93e   :  { %1251 = vrot.lane.b32.xlu1 %v5865_v45, %s6116_s29  ;;  %v5867_v51 = vpop.eup %5866 }
 0x93f   :  { %v5869_v53 = vpop.eup %5868  ;;  %v1221_v55 = vadd.f32 1.0, %v5867_v51 }
 0x940   :  { %v1245_v56 = vadd.f32 1.0, %v5869_v53 }
 0x941   :  { %5870 = vrcp.f32 %v1221_v55 }
 0x942   :  { %5872 = vrcp.f32 %v1245_v56 }
 0x94b   :  { %v5871_v48 = vpop.eup %5870 }
 0x94c   :  { %v5873_v58 = vpop.eup %5872  ;;  %v1225_v2 = vmul.f32 %v5871_v48, %v1094_v20 }
 0x94d   :  { %v1249_v7 = vmul.f32 %v5873_v58, %v1118_v22 }
 0x9af   :  { %v1228_v63 = vpop.permute.xlu0 %1227 }
 0x9b0   :  { %v1230_v60 = vmul.f32 %v5871_v48, %v1228_v63  ;;  %v1252_v62 = vpop.permute.xlu1 %1251 }
 0x9b1   :  { %v1254_v0 = vmul.f32 %v5873_v58, %v1252_v62 }
 0x9b2   :  { %1232 = vrot.lane.b32.xlu0 %v1230_v60, %s6118_s30 }
 0x9b3   :  { %1256 = vrot.lane.b32.xlu1 %v1254_v0, %s6118_s30 }
 0xa24   :  { %v1233_v4 = vpop.permute.xlu0 %1232 }
 0xa25   :  { %v1235_v8 = vadd.f32 %v1233_v4, %v1225_v2  ;;  %v1257_v10 = vpop.permute.xlu1 %1256 }
 0xa26   :  { %v1259_v44 = vadd.f32 %v1257_v10, %v1249_v7 }
 0xa27   :  { %5874 = vtanh.f32 %v1235_v8 }
 0xa28   :  { %5876 = vtanh.f32 %v1259_v44 }
 0xa31   :  { %v5875_v3 = vpop.eup %5874 }
 0xa32   :  { %v5877_v11 = vpop.eup %5876  ;;  %1238 = vrot.lane.b32.xlu0 %v5875_v3, %s6116_s29 }
 0xa33   :  { %1262 = vrot.lane.b32.xlu1 %v5877_v11, %s6116_s29 }
 0xaa4   :  { %v1239_v12 = vpop.permute.xlu0 %1238 }
 0xaa5   :  { %v1241_v14 = vmul.f32 %v5871_v48, %v1239_v12  ;;  %v1263_v15 = vpop.permute.xlu1 %1262 }
 0xaa6   :  { %v1265_v16 = vmul.f32 %v5873_v58, %v1263_v15 }
 0xaa7   :  { %1267 = vrot.lane.b32.xlu0 %v1241_v14, %s6118_s30 }
 0xaa8   :  { %1271 = vrot.lane.b32.xlu1 %v1265_v16, %s6116_s29 }
 0xb19   :  { %v1268_v17 = vpop.permute.xlu0 %1267 }
 0xb1a   :  { %v1272_v19 = vpop.permute.xlu1 %1271 }
 0xb1b   :  { %v1274_v20 = vsel %vm86_vm0, %v1268_v17, %v1272_v19 }
 0xb1c   :  { %4802 = vmatmul.mubr.msk.f32.vlgmr.msra.gmra.mrb[12].mxu1 %vm859_vm1, %v1274_v20 }
 0xb1d   :  { %5537 = vmatpush1.bf16.msra.mxu1 %v6351_v9  ;;  %1620 = vmatprep.mubr.f32.mxu1 %v6117_v33 }
 0xb1e   :  { %5539 = vmatprep.subr.bf16.mxu1 %v6363_v13 }
 0xb21   :  { %5541 = vmatpush1.bf16.msra.mxu1 %v6375_v18 }
 0xb22   :  { %5543 = vmatprep.subr.bf16.mxu1 %v6389_v23 }
 0xb25   :  { %5545 = vmatpush1.bf16.msra.mxu1 %v6397_v26 }
 0xb26   :  { %5547 = vmatprep.subr.bf16.mxu1 %v6407_v29 }
 0xb29   :  { %5549 = vmatpush1.bf16.msra.mxu1 %v6415_v32 }
 0xb2a   :  { %5567 = vmatprep.subr.bf16.mxu1 %v6340_v5 }
 0xbef   :  { %v1352_v21 = vpop.f32.mrb[12].mxu1 }
 0xbf0   :  { %v1357_v22 = vadd.f32 %v1352_v21, %v6492_v52  ;;  %v1354_v24 = vpop.f32.mrb[13].mxu1 }
 0xbf1   :  { %v1358_v25 = vadd.f32 %v1354_v24, %v6499_v59 }
 0xbf2   :  { %5878 = vtanh.f32 %v1357_v22  ;;  %v4803_v31 = vmul.f32 -1.442695, %v1357_v22 }
 0xbf3   :  { %5880 = vtanh.f32 %v1358_v25  ;;  %v4804_v35 = vmul.f32 -1.442695, %v1358_v25 }
 0xbf4   :  { %5882 = vpow2.f32 %v4803_v31 }
 0xbf5   :  { %5884 = vpow2.f32 %v4804_v35 }
 0xbfc   :  { %v5879_v27 = vpop.eup %5878 }
 0xbfd   :  { %v5881_v28 = vpop.eup %5880  ;;  %1368 = vrot.lane.b32.xlu0 %v5879_v27, %s6116_s29 }
 0xbfe   :  { %1392 = vrot.lane.b32.xlu1 %v5881_v28, %s6116_s29  ;;  %v5883_v34 = vpop.eup %5882 }
 0xbff   :  { %v5885_v5 = vpop.eup %5884  ;;  %v1362_v36 = vadd.f32 1.0, %v5883_v34 }
 0xc00   :  { %v1386_v37 = vadd.f32 1.0, %v5885_v5 }
 0xc01   :  { %5886 = vrcp.f32 %v1362_v36 }
 0xc02   :  { %5888 = vrcp.f32 %v1386_v37 }
 0xc0b   :  { %v5887_v52 = vpop.eup %5886 }
 0xc0c   :  { %v5889_v38 = vpop.eup %5888  ;;  %v1366_v43 = vmul.f32 %v5887_v52, %v1235_v8 }
 0xc0d   :  { %v1390_v47 = vmul.f32 %v5889_v38, %v1259_v44 }
 0xc6f   :  { %v1369_v59 = vpop.permute.xlu0 %1368 }
 0xc70   :  { %v1371_v39 = vmul.f32 %v5887_v52, %v1369_v59  ;;  %v1393_v40 = vpop.permute.xlu1 %1392 }
 0xc71   :  { %v1395_v42 = vmul.f32 %v5889_v38, %v1393_v40 }
 0xc72   :  { %1373 = vrot.lane.b32.xlu0 %v1371_v39, %s6118_s30 }
 0xc73   :  { %1397 = vrot.lane.b32.xlu1 %v1395_v42, %s6118_s30 }
 0xce4   :  { %v1374_v45 = vpop.permute.xlu0 %1373 }
 0xce5   :  { %v1376_v49 = vadd.f32 %v1374_v45, %v1366_v43  ;;  %v1398_v51 = vpop.permute.xlu1 %1397 }
 0xce6   :  { %v1400_v53 = vadd.f32 %v1398_v51, %v1390_v47 }
 0xce7   :  { %5890 = vtanh.f32 %v1376_v49 }
 0xce8   :  { %5892 = vtanh.f32 %v1400_v53 }
 0xcf1   :  { %v5891_v55 = vpop.eup %5890 }
 0xcf2   :  { %v5893_v56 = vpop.eup %5892  ;;  %1379 = vrot.lane.b32.xlu0 %v5891_v55, %s6116_s29 }
 0xcf3   :  { %1403 = vrot.lane.b32.xlu1 %v5893_v56, %s6116_s29 }
 0xd64   :  { %v1380_v48 = vpop.permute.xlu0 %1379 }
 0xd65   :  { %v1382_v63 = vmul.f32 %v5887_v52, %v1380_v48  ;;  %v1404_v58 = vpop.permute.xlu1 %1403 }
 0xd66   :  { %v1406_v60 = vmul.f32 %v5889_v38, %v1404_v58 }
 0xd67   :  { %1408 = vrot.lane.b32.xlu0 %v1382_v63, %s6118_s30 }
 0xd68   :  { %1412 = vrot.lane.b32.xlu1 %v1406_v60, %s6116_s29 }
 0xdd9   :  { %v1409_v62 = vpop.permute.xlu0 %1408 }
 0xdda   :  { %v1413_v0 = vpop.permute.xlu1 %1412 }
 0xddb   :  { %v1415_v2 = vsel %vm86_vm0, %v1409_v62, %v1413_v0 }
 0xddc   :  { %4805 = vmatmul.mubr.msk.f32.vlgmr.msra.gmra.mrb[26].mxu0 %vm859_vm1, %v1415_v2 }
 0xddd   :  { %5553 = vmatpush1.bf16.msra.mxu0 %v6351_v9  ;;  %1755 = vmatprep.mubr.f32.mxu0 %v6117_v33 }
 0xdde   :  { %5555 = vmatprep.subr.bf16.mxu0 %v6363_v13 }
 0xde1   :  { %5557 = vmatpush1.bf16.msra.mxu0 %v6375_v18 }
 0xde2   :  { %5559 = vmatprep.subr.bf16.mxu0 %v6389_v23 }
 0xde5   :  { %5561 = vmatpush1.bf16.msra.mxu0 %v6397_v26 }
 0xde6   :  { %5563 = vmatprep.subr.bf16.mxu0 %v6407_v29 }
 0xde9   :  { %5565 = vmatpush1.bf16.msra.mxu0 %v6415_v32 }
 0xeaf   :  { %v1487_v4 = vpop.f32.mrb[26].mxu0 }
 0xeb0   :  { %v1492_v7 = vadd.f32 %v1487_v4, %v6497_v57  ;;  %v1489_v8 = vpop.f32.mrb[27].mxu0 }
 0xeb1   :  { %v1493_v10 = vadd.f32 %v1489_v8, %v6494_v54 }
 0xeb2   :  { %5894 = vtanh.f32 %v1492_v7  ;;  %v4806_v11 = vmul.f32 -1.442695, %v1492_v7 }
 0xeb3   :  { %5896 = vtanh.f32 %v1493_v10  ;;  %v4807_v12 = vmul.f32 -1.442695, %v1493_v10 }
 0xeb4   :  { %5898 = vpow2.f32 %v4806_v11 }
 0xeb5   :  { %5900 = vpow2.f32 %v4807_v12 }
 0xebc   :  { %v5895_v44 = vpop.eup %5894 }
 0xebd   :  { %v5897_v3 = vpop.eup %5896  ;;  %1503 = vrot.lane.b32.xlu0 %v5895_v44, %s6116_s29 }
 0xebe   :  { %1527 = vrot.lane.b32.xlu1 %v5897_v3, %s6116_s29  ;;  %v5899_v14 = vpop.eup %5898 }
 0xebf   :  { %v5901_v15 = vpop.eup %5900  ;;  %v1497_v16 = vadd.f32 1.0, %v5899_v14 }
 0xec0   :  { %v1521_v17 = vadd.f32 1.0, %v5901_v15 }
 0xec1   :  { %5902 = vrcp.f32 %v1497_v16 }
 0xec2   :  { %5904 = vrcp.f32 %v1521_v17 }
 0xecb   :  { %v5903_v57 = vpop.eup %5902 }
 0xecc   :  { %v5905_v19 = vpop.eup %5904  ;;  %v1501_v24 = vmul.f32 %v5903_v57, %v1376_v49 }
 0xecd   :  { %v1525_v27 = vmul.f32 %v5905_v19, %v1400_v53 }
 0xf2f   :  { %v1504_v54 = vpop.permute.xlu0 %1503 }
 0xf30   :  { %v1506_v20 = vmul.f32 %v5903_v57, %v1504_v54  ;;  %v1528_v21 = vpop.permute.xlu1 %1527 }
 0xf31   :  { %v1530_v22 = vmul.f32 %v5905_v19, %v1528_v21 }
 0xf32   :  { %1508 = vrot.lane.b32.xlu0 %v1506_v20, %s6118_s30 }
 0xf33   :  { %1532 = vrot.lane.b32.xlu1 %v1530_v22, %s6118_s30 }
 0xfa4   :  { %v1509_v25 = vpop.permute.xlu0 %1508 }
 0xfa5   :  { %v1511_v28 = vadd.f32 %v1509_v25, %v1501_v24  ;;  %v1533_v31 = vpop.permute.xlu1 %1532 }
 0xfa6   :  { %v1535_v35 = vadd.f32 %v1533_v31, %v1525_v27 }
 0xfa7   :  { %5906 = vtanh.f32 %v1511_v28 }
 0xfa8   :  { %5908 = vtanh.f32 %v1535_v35 }
 0xfb1   :  { %v5907_v34 = vpop.eup %5906 }
 0xfb2   :  { %v5909_v5 = vpop.eup %5908  ;;  %1514 = vrot.lane.b32.xlu0 %v5907_v34, %s6116_s29 }
 0xfb3   :  { %1538 = vrot.lane.b32.xlu1 %v5909_v5, %s6116_s29 }
0x1024   :  { %v1515_v36 = vpop.permute.xlu0 %1514 }
0x1025   :  { %v1517_v37 = vmul.f32 %v5903_v57, %v1515_v36  ;;  %v1539_v52 = vpop.permute.xlu1 %1538 }
0x1026   :  { %v1541_v59 = vmul.f32 %v5905_v19, %v1539_v52 }
0x1027   :  { %1543 = vrot.lane.b32.xlu0 %v1517_v37, %s6118_s30 }
0x1028   :  { %1547 = vrot.lane.b32.xlu1 %v1541_v59, %s6116_s29 }
0x1099   :  { %v1544_v38 = vpop.permute.xlu0 %1543 }
0x109a   :  { %v1548_v39 = vpop.permute.xlu1 %1547 }
0x109b   :  { %v1550_v40 = vsel %vm86_vm0, %v1544_v38, %v1548_v39 }
0x109c   :  { %4808 = vmatmul.mubr.msk.f32.vlgmr.msra.gmra.mrb[14].mxu1 %vm859_vm1, %v1550_v40 }
0x109d   :  { %5569 = vmatpush1.bf16.msra.mxu1 %v6351_v9  ;;  %1890 = vmatprep.mubr.f32.mxu1 %v6117_v33 }
0x109e   :  { %5571 = vmatprep.subr.bf16.mxu1 %v6363_v13 }
0x10a1   :  { %5573 = vmatpush1.bf16.msra.mxu1 %v6375_v18 }
0x10a2   :  { %5575 = vmatprep.subr.bf16.mxu1 %v6389_v23 }
0x10a5   :  { %5577 = vmatpush1.bf16.msra.mxu1 %v6397_v26 }
0x10a6   :  { %5579 = vmatprep.subr.bf16.mxu1 %v6407_v29 }
0x10a9   :  { %5581 = vmatpush1.bf16.msra.mxu1 %v6415_v32 }
0x116f   :  { %v1622_v42 = vpop.f32.mrb[14].mxu1 }
0x1170   :  { %v1627_v43 = vadd.f32 %v1622_v42, %v6501_v61  ;;  %v1624_v45 = vpop.f32.mrb[15].mxu1 }
0x1171   :  { %v1628_v9 = vadd.f32 %v1624_v45, %v6490_v50 }
0x1172   :  { %5910 = vtanh.f32 %v1627_v43  ;;  %v4809_v18 = vmul.f32 -1.442695, %v1627_v43 }
0x1173   :  { %5912 = vtanh.f32 %v1628_v9  ;;  %v4810_v23 = vmul.f32 -1.442695, %v1628_v9 }
0x1174   :  { %5914 = vpow2.f32 %v4809_v18 }
0x1175   :  { %5916 = vpow2.f32 %v4810_v23 }
0x117c   :  { %v5911_v47 = vpop.eup %5910 }
0x117d   :  { %v5913_v13 = vpop.eup %5912  ;;  %1638 = vrot.lane.b32.xlu0 %v5911_v47, %s6116_s29 }
0x117e   :  { %1662 = vrot.lane.b32.xlu1 %v5913_v13, %s6116_s29  ;;  %v5915_v26 = vpop.eup %5914 }
0x117f   :  { %v5917_v29 = vpop.eup %5916  ;;  %v1632_v32 = vadd.f32 1.0, %v5915_v26 }
0x1180   :  { %v1656_v49 = vadd.f32 1.0, %v5917_v29 }
0x1181   :  { %5918 = vrcp.f32 %v1632_v32 }
0x1182   :  { %5920 = vrcp.f32 %v1656_v49 }
0x118b   :  { %v5919_v61 = vpop.eup %5918 }
0x118c   :  { %v5921_v51 = vpop.eup %5920  ;;  %v1636_v48 = vmul.f32 %v5919_v61, %v1511_v28 }
0x118d   :  { %v1660_v58 = vmul.f32 %v5921_v51, %v1535_v35 }
0x11ef   :  { %v1639_v50 = vpop.permute.xlu0 %1638 }
0x11f0   :  { %v1641_v53 = vmul.f32 %v5919_v61, %v1639_v50  ;;  %v1663_v55 = vpop.permute.xlu1 %1662 }
0x11f1   :  { %v1665_v56 = vmul.f32 %v5921_v51, %v1663_v55 }
0x11f2   :  { %1643 = vrot.lane.b32.xlu0 %v1641_v53, %s6118_s30 }
0x11f3   :  { %1667 = vrot.lane.b32.xlu1 %v1665_v56, %s6118_s30 }
0x1264   :  { %v1644_v63 = vpop.permute.xlu0 %1643 }
0x1265   :  { %v1646_v60 = vadd.f32 %v1644_v63, %v1636_v48  ;;  %v1668_v62 = vpop.permute.xlu1 %1667 }
0x1266   :  { %v1670_v0 = vadd.f32 %v1668_v62, %v1660_v58 }
0x1267   :  { %5922 = vtanh.f32 %v1646_v60 }
0x1268   :  { %5924 = vtanh.f32 %v1670_v0 }
0x1271   :  { %v5923_v2 = vpop.eup %5922 }
0x1272   :  { %v5925_v4 = vpop.eup %5924  ;;  %1649 = vrot.lane.b32.xlu0 %v5923_v2, %s6116_s29 }
0x1273   :  { %1673 = vrot.lane.b32.xlu1 %v5925_v4, %s6116_s29 }
0x12e4   :  { %v1650_v7 = vpop.permute.xlu0 %1649 }
0x12e5   :  { %v1652_v8 = vmul.f32 %v5919_v61, %v1650_v7  ;;  %v1674_v10 = vpop.permute.xlu1 %1673 }
0x12e6   :  { %v1676_v44 = vmul.f32 %v5921_v51, %v1674_v10  ;;  %v1956_v10 = vld [vmem:[%s7232_s8] sm:$0xff] }
0x12e7   :  { %1678 = vrot.lane.b32.xlu0 %v1652_v8, %s6118_s30 }
0x12e8   :  { %1682 = vrot.lane.b32.xlu1 %v1676_v44, %s6116_s29  ;;  %v1957_v44 = vld [vmem:[%s7232_s8 + $0x8] sm:$0xff] }
0x1359   :  { %v1679_v3 = vpop.permute.xlu0 %1678 }
0x135a   :  { %v1683_v11 = vpop.permute.xlu1 %1682 }
0x135b   :  { %v1685_v12 = vsel %vm86_vm0, %v1679_v3, %v1683_v11  ;;  %v1958_v3 = vld [vmem:[%s7232_s8 + $0x10] sm:$0xff]  ;;  %v6119_v11 = vmov 0.0|0.0  }
0x135c   :  { %4811 = vmatmul.mubr.msk.f32.vlgmr.msra.gmra.mrb[28].mxu0 %vm859_vm1, %v1685_v12  ;;  %5582 = vmatprep.subr.bf16.mxu0 %v6119_v11  ;;  %v5583_v12 = vpack.c.bf16 %v1957_v44, %v1956_v10 }
0x135d   :  { %5116 = vmatprep.mubr.msk.f32.mxu0 %vm6120_vm2, %v6117_v33 }
0x135e   :  { %5584 = vmatpush3.bf16.msra.mxu0 %v5583_v12 }
0x135f   :  { %5585 = vmatprep.subr.bf16.mxu0 %v6119_v11 }
0x142f   :  { %v1757_v14 = vpop.f32.mrb[28].mxu0 }
0x1430   :  { %v1762_v15 = vadd.f32 %v1757_v14, %v6505_v1  ;;  %v1759_v16 = vpop.f32.mrb[29].mxu0  ;;  %v1959_v14 = vld [vmem:[%s7232_s8 + $0x18] sm:$0xff] }
0x1431   :  { %v1763_v17 = vadd.f32 %v1759_v16, %v6486_v46  ;;  %v1960_v16 = vld [vmem:[%s7232_s8 + $0x20] sm:$0xff] }
0x1432   :  { %5926 = vtanh.f32 %v1762_v15  ;;  %v4812_v19 = vmul.f32 -1.442695, %v1762_v15  ;;  %v5586_v15 = vpack.c.bf16 %v1959_v14, %v1958_v3  ;;  %v4828_v3 = vld [vmem:[%s7237_s13] ss:$0 sm:$0xff] }
0x1433   :  { %5928 = vtanh.f32 %v1763_v17  ;;  %v4813_v20 = vmul.f32 -1.442695, %v1763_v17  ;;  %v1961_v17 = vld [vmem:[%s7232_s8 + $0x28] sm:$0xff] }
0x1434   :  { %5930 = vpow2.f32 %v4812_v19  ;;  %5587 = vmatpush3.bf16.msra.mxu0 %v5586_v15  ;;  %v1963_v19 = vld [vmem:[%s7232_s8 + $0x38] sm:$0xff] }
0x1435   :  { %5932 = vpow2.f32 %v4813_v20  ;;  %5588 = vmatprep.subr.bf16.mxu0 %v6119_v11 }
0x143c   :  { %v5927_v57 = vpop.eup %5926 }
0x143d   :  { %v5929_v54 = vpop.eup %5928  ;;  %1773 = vrot.lane.b32.xlu0 %v5927_v57, %s6116_s29  ;;  %v5589_v57 = vpack.c.bf16 %v1961_v17, %v1960_v16 }
0x143e   :  { %1797 = vrot.lane.b32.xlu1 %v5929_v54, %s6116_s29  ;;  %v5931_v21 = vpop.eup %5930  ;;  %v1962_v54 = vld [vmem:[%s7232_s8 + $0x30] sm:$0xff] }
0x143f   :  { %v5933_v22 = vpop.eup %5932  ;;  %v1767_v24 = vadd.f32 1.0, %v5931_v21  ;;  %5590 = vmatpush3.bf16.msra.mxu0 %v5589_v57 }
0x1440   :  { %v1791_v25 = vadd.f32 1.0, %v5933_v22  ;;  %v5592_v22 = vpack.c.bf16 %v1963_v19, %v1962_v54  ;;  %5591 = vmatprep.subr.bf16.mxu0 %v6119_v11 }
0x1441   :  { %5934 = vrcp.f32 %v1767_v24 }
0x1442   :  { %5936 = vrcp.f32 %v1791_v25 }
0x1443   :  { %5593 = vmatpush3.bf16.msra.mxu0 %v5592_v22 }
0x1444   :  { %5602 = vmatprep.subr.bf16.mxu0 %v6119_v11 }
0x144b   :  { %v5935_v1 = vpop.eup %5934 }
0x144c   :  { %v5937_v27 = vpop.eup %5936  ;;  %v1771_v34 = vmul.f32 %v5935_v1, %v1646_v60 }
0x144d   :  { %v1795_v36 = vmul.f32 %v5937_v27, %v1670_v0 }
0x14af   :  { %v1774_v46 = vpop.permute.xlu0 %1773 }
0x14b0   :  { %v1776_v28 = vmul.f32 %v5935_v1, %v1774_v46  ;;  %v1798_v31 = vpop.permute.xlu1 %1797 }
0x14b1   :  { %v1800_v35 = vmul.f32 %v5937_v27, %v1798_v31 }
0x14b2   :  { %1778 = vrot.lane.b32.xlu0 %v1776_v28, %s6118_s30 }
0x14b3   :  { %1802 = vrot.lane.b32.xlu1 %v1800_v35, %s6118_s30  ;;  %v2095_v35 = vld [vmem:[%s7234_s10] sm:$0xff] }
0x1524   :  { %v1779_v5 = vpop.permute.xlu0 %1778 }
0x1525   :  { %v1781_v37 = vadd.f32 %v1779_v5, %v1771_v34  ;;  %v1803_v52 = vpop.permute.xlu1 %1802  ;;  %v2096_v34 = vld [vmem:[%s7234_s10 + $0x8] sm:$0xff]  ;;  %v2097_v5 = vld [vmem:[%s7234_s10 + $0x10] sm:$0xff] }
0x1526   :  { %v1805_v59 = vadd.f32 %v1803_v52, %v1795_v36  ;;  %v5594_v36 = vpack.c.bf16 %v2096_v34, %v2095_v35  ;;  %v2087_v52 = vld [vmem:[%s7264_s28] sm:$0xff] }
0x1527   :  { %5938 = vtanh.f32 %v1781_v37 }
0x1528   :  { %5940 = vtanh.f32 %v1805_v59  ;;  %5595 = vmatprep.subr.bf16.mxu1 %v5594_v36 }
0x1531   :  { %v5939_v38 = vpop.eup %5938 }
0x1532   :  { %v5941_v39 = vpop.eup %5940  ;;  %1784 = vrot.lane.b32.xlu0 %v5939_v38, %s6116_s29  ;;  %v2088_v38 = vld [vmem:[%s7264_s28 + $0x8] sm:$0xff] }
0x1533   :  { %1808 = vrot.lane.b32.xlu1 %v5941_v39, %s6116_s29  ;;  %v2089_v39 = vld [vmem:[%s7264_s28 + $0x10] sm:$0xff] }
0x15a4   :  { %v1785_v40 = vpop.permute.xlu0 %1784 }
0x15a5   :  { %v1787_v42 = vmul.f32 %v5935_v1, %v1785_v40  ;;  %v1809_v43 = vpop.permute.xlu1 %1808  ;;  %v2090_v40 = vld [vmem:[%s7264_s28 + $0x18] sm:$0xff] }
0x15a6   :  { %v1811_v45 = vmul.f32 %v5937_v27, %v1809_v43 }
0x15a7   :  { %1813 = vrot.lane.b32.xlu0 %v1787_v42, %s6118_s30  ;;  %v4817_v42 = vld [vmem:[%s7233_s9] ss:$0 sm:$0xff] }
0x15a8   :  { %1817 = vrot.lane.b32.xlu1 %v1811_v45, %s6116_s29 }
0x1619   :  { %v1814_v9 = vpop.permute.xlu0 %1813 }
0x161a   :  { %v1818_v47 = vpop.permute.xlu1 %1817 }
0x161b   :  { %v1820_v13 = vsel %vm86_vm0, %v1814_v9, %v1818_v47  ;;  %v2236_v47 = vld [vmem:[%s7235_s11] sm:$0xff] }
0x161c   :  { %4814 = vmatmul.mubr.msk.f32.vlgmr.msra.gmra.mrb[16].mxu1 %vm859_vm1, %v1820_v13  ;;  %v2237_v13 = vld [vmem:[%s7235_s11 + $0x8] sm:$0xff]  ;;  %s6122_s11 = smov 16  }
0x161d   :  { %5127 = vmatprep.mubr.msk.f32.mxu1 %vm86_vm0, %v2087_v52  ;;  %5597 = vmatpush3.bf16.msra.mxu1 %v5594_v36 }
0x16ef   :  { %v1892_v18 = vpop.f32.mrb[16].mxu1 }
0x16f0   :  { %v1897_v23 = vadd.f32 %v1892_v18, %v6509_v6  ;;  %v1894_v26 = vpop.f32.mrb[17].mxu1 }
0x16f1   :  { %v1898_v29 = vadd.f32 %v1894_v26, %v6482_v41  ;;  %v2091_v26 = vld [vmem:[%s7264_s28 + $0x20] sm:$0xff] }
0x16f2   :  { %5942 = vtanh.f32 %v1897_v23  ;;  %v4815_v61 = vmul.f32 -1.442695, %v1897_v23  ;;  %v5603_v23 = vpack.c.bf16 %v2237_v13, %v2236_v47  ;;  %v2328_v13 = vld [vmem:[%s7239_s15 + $0x10] sm:$0xff] }
0x16f3   :  { %5944 = vtanh.f32 %v1898_v29  ;;  %v4816_v50 = vmul.f32 -1.442695, %v1898_v29 }
0x16f4   :  { %5946 = vpow2.f32 %v4815_v61  ;;  %v2094_v61 = vld [vmem:[%s7264_s28 + $0x38] sm:$0xff] }
0x16f5   :  { %5948 = vpow2.f32 %v4816_v50 }
0x16fc   :  { %v5943_v32 = vpop.eup %5942 }
0x16fd   :  { %v5945_v49 = vpop.eup %5944  ;;  %1908 = vrot.lane.b32.xlu0 %v5943_v32, %s6116_s29  ;;  %v2092_v32 = vld [vmem:[%s7264_s28 + $0x28] sm:$0xff] }
0x16fe   :  { %1932 = vrot.lane.b32.xlu1 %v5945_v49, %s6116_s29  ;;  %v5947_v51 = vpop.eup %5946  ;;  %v2093_v49 = vld [vmem:[%s7264_s28 + $0x30] sm:$0xff] }
0x16ff   :  { %v5949_v53 = vpop.eup %5948  ;;  %v1902_v55 = vadd.f32 1.0, %v5947_v51 }
0x1700   :  { %v1926_v56 = vadd.f32 1.0, %v5949_v53 }
0x1701   :  { %5950 = vrcp.f32 %v1902_v55 }
0x1702   :  { %5952 = vrcp.f32 %v1926_v56 }
0x170b   :  { %v5951_v6 = vpop.eup %5950 }
0x170c   :  { %v5953_v48 = vpop.eup %5952  ;;  %v1906_v62 = vmul.f32 %v5951_v6, %v1781_v37  ;;  %v2098_v37 = vld [vmem:[%s7234_s10 + $0x18] sm:$0xff]  ;;  %s6121_s10 = smov 112  }
0x170d   :  { %v1930_v2 = vmul.f32 %v5953_v48, %v1805_v59  ;;  %v5598_v59 = vpack.c.bf16 %v2098_v37, %v2097_v5 }
0x170f   :  { %5599 = vmatprep.subr.bf16.mxu1 %v5598_v59 }
0x1710   :  { %5601 = vmatpush3.bf16.msra.mxu1 %v5598_v59  ;;  %v2322_v59 = vld [vmem:[%s7238_s14] sm:$0xff] }
0x1711   :  { %5617 = vmatprep.subr.bf16.mxu1 %v6119_v11 }
0x1713   :  { %5128 = vmatmul.mubr.msk.f32.vlgmr.msra.gmra.mrb[18].mxu1 %vm86_vm0, %v2088_v38  ;;  %v2323_v38 = vld [vmem:[%s7238_s14 + $0x8] sm:$0xff] }
0x1714   :  { %5130 = vmatprep.mubr.msk.f32.mxu1 %vm86_vm0, %v2089_v39  ;;  %v2326_v39 = vld [vmem:[%s7239_s15] sm:$0xff] }
0x1717   :  { %5131 = vmatmul.mubr.msk.f32.gmra.mrb[20].mxu1 %vm86_vm0, %v2090_v40  ;;  %v6802_v40 = vpack.c.bf16 %v2323_v38, %v2322_v59 }
0x1718   :  { %5133 = vmatprep.mubr.msk.f32.mxu1 %vm86_vm0, %v2091_v26 }
0x171b   :  { %5134 = vmatmul.mubr.msk.f32.gmra.mrb[22].mxu1 %vm86_vm0, %v2092_v32 }
0x171c   :  { %5136 = vmatprep.mubr.msk.f32.mxu1 %vm86_vm0, %v2093_v49 }
0x171f   :  { %5137 = vmatmul.mubr.msk.f32.gmra.mrb[24].mxu1 %vm86_vm0, %v2094_v61 }
0x1720   :  { %5176 = vmatprep.mubr.msk.f32.mxu1 %vm6120_vm2, %v6117_v33 }
0x176f   :  { %v1909_v41 = vpop.permute.xlu0 %1908 }
0x1770   :  { %v1911_v63 = vmul.f32 %v5951_v6, %v1909_v41  ;;  %v1933_v58 = vpop.permute.xlu1 %1932  ;;  %v2318_v41 = vld [vmem:[%s7236_s12] sm:$0xff] }
0x1771   :  { %v1935_v60 = vmul.f32 %v5953_v48, %v1933_v58 }
0x1772   :  { %1913 = vrot.lane.b32.xlu0 %v1911_v63, %s6118_s30 }
0x1773   :  { %1937 = vrot.lane.b32.xlu1 %v1935_v60, %s6118_s30 }
0x17e4   :  { %v1914_v0 = vpop.permute.xlu0 %1913 }
0x17e5   :  { %v1916_v4 = vadd.f32 %v1914_v0, %v1906_v62  ;;  %v1938_v7 = vpop.permute.xlu1 %1937  ;;  %v2320_v0 = vld [vmem:[%s7236_s12 + $0x10] sm:$0xff] }
0x17e6   :  { %v1940_v8 = vadd.f32 %v1938_v7, %v1930_v2  ;;  %v5129_v51 = vpop.f32.mrb[18].mxu1  ;;  %v2321_v2 = vld [vmem:[%s7236_s12 + $0x18] sm:$0xff] }
0x17e7   :  { %5954 = vtanh.f32 %v1916_v4  ;;  %v2189_v53 = vpop.f32.mrb[19].mxu1  ;;  %v6761_v4 = vpack.c.bf16 %v2321_v2, %v2320_v0 }
0x17e8   :  { %5956 = vtanh.f32 %v1940_v8 }
0x17ea   :  { %v5132_v55 = vpop.f32.mrb[20].mxu1 }
0x17eb   :  { %v2199_v56 = vpop.f32.mrb[21].mxu1 }
0x17ee   :  { %v5135_v7 = vpop.f32.mrb[22].mxu1 }
0x17ef   :  { %v2209_v8 = vpop.f32.mrb[23].mxu1 }
0x17f1   :  { %v5955_v20 = vpop.eup %5954 }
0x17f2   :  { %v5957_v21 = vpop.eup %5956  ;;  %1919 = vrot.lane.b32.xlu0 %v5955_v20, %s6116_s29  ;;  %v5138_v10 = vpop.f32.mrb[24].mxu1 }
0x17f3   :  { %1943 = vrot.lane.b32.xlu1 %v5957_v21, %s6116_s29  ;;  %v2219_v44 = vpop.f32.mrb[25].mxu1 }
0x1864   :  { %v1920_v24 = vpop.permute.xlu0 %1919 }
0x1865   :  { %v1922_v25 = vmul.f32 %v5951_v6, %v1920_v24  ;;  %v1944_v1 = vpop.permute.xlu1 %1943  ;;  %v2044_v6 = vld [vmem:[%s7265_s6] sm:$0xff] }
0x1866   :  { %v1946_v46 = vmul.f32 %v5953_v48, %v1944_v1  ;;  %v2319_v48 = vld [vmem:[%s7236_s12 + $0x8] sm:$0xff] }
0x1867   :  { %1948 = vrot.lane.b32.xlu0 %v1922_v25, %s6118_s30  ;;  %v6750_v60 = vpack.c.bf16 %v2319_v48, %v2318_v41 }
0x1868   :  { %1952 = vrot.lane.b32.xlu1 %v1946_v46, %s6116_s29 }
0x18d9   :  { %v1949_v27 = vpop.permute.xlu0 %1948 }
0x18da   :  { %v1953_v28 = vpop.permute.xlu1 %1952 }
0x18db   :  { %v1955_v31 = vsel %vm86_vm0, %v1949_v27, %v1953_v28 }
0x18dc   :  { %5117 = vmatmul.mubr.msk.f32.vlgmr.msra.gmra.mrb[30].mxu0 %vm859_vm1, %v1955_v31 }
0x18dd   :  { %5143 = vmatprep.mubr.msk.f32.mxu0 %vm6120_vm2, %v6117_v33  ;;  %5604 = vmatpush3.bf16.msra.mxu0 %v5603_v23 }
0x18de   :  { %5605 = vmatprep.subr.bf16.mxu0 %v6119_v11 }
0x19af   :  { %v2040_v43 = vpop.f32.mrb[30].mxu0 }
0x19b0   :  { %v6712_v45 = vadd.f32 %v4817_v42, %v2040_v43  ;;  %v5118_v9 = vpop.f32.mrb[31].mxu0  ;;  %v2327_v42 = vld [vmem:[%s7239_s15 + $0x8] sm:$0xff]  ;;  %v2324_v43 = vld [vmem:[%s7238_s14 + $0x10] sm:$0xff] }
0x19b1   :  { %v2325_v9 = vld [vmem:[%s7238_s14 + $0x18] sm:$0xff]  ;;  %v6813_v47 = vpack.c.bf16 %v2327_v42, %v2326_v39 }
0x19b2   :  { %v2045_v18 = vmul.f32 0.5, %v6712_v45  ;;  %v6822_v23 = vpack.c.bf16 %v2325_v9, %v2324_v43 }
0x19b3   :  { %5619 = vmatpush3.bf16.msra.mxu1 %v6813_v47 }
0x19b4   :  { %v2046_v29 = vmul.f32 1.442695, %v2045_v18  ;;  %v2329_v18 = vld [vmem:[%s7239_s15 + $0x18] sm:$0xff]  ;;  %5620 = vmatprep.subr.bf16.mxu1 %v6119_v11 }
0x19b5   :  { %v6826_v26 = vpack.c.bf16 %v2329_v18, %v2328_v13 }
0x19b6   :  { %5958 = vpow2.f32 %v2046_v29 }
0x19b7   :  { %5622 = vmatpush3.bf16.msra.mxu1 %v6826_v26 }
0x19b8   :  { %5629 = vmatprep.subr.bf16.mxu1 %v6119_v11 }
0x19ba   :  { %5177 = vmatmul.mubr.f32.vlgmr.msra.gmra.mrb[26].mxu1 %v6117_v33 }
0x19bb   :  { %5631 = vmatpush3.bf16.msra.mxu1 %v6802_v40  ;;  %5198 = vmatprep.mubr.msk.f32.mxu1 %vm6120_vm2, %v6117_v33 }
0x19bc   :  { %5632 = vmatprep.subr.bf16.mxu1 %v6119_v11 }
0x19bf   :  { %5634 = vmatpush3.bf16.msra.mxu1 %v6822_v23 }
0x19c0   :  { %v5959_v50 = vpop.eup %5958  ;;  %5641 = vmatprep.subr.bf16.mxu1 %v6119_v11 }
0x19c1   :  { %2049 = vrot.lane.b32.xlu0 %v5959_v50, %s6121_s10 }
0x1a33   :  { %v2050_v63 = vpop.permute.xlu0 %2049 }
0x1a34   :  { %v2052_v58 = vmul.f32 %v2050_v63, %v2044_v6 }
0x1a36   :  { %v2053_v62 = vadd.f32 %v2052_v58, %v6712_v45 }
0x1a38   :  { %5144 = vmatmul.mubr.msk.f32.vlgmr.msra.gmra.mrb[32].mxu0 %vm2073_vm3, %v2053_v62 }
0x1a39   :  { %5607 = vmatpush3.bf16.msra.mxu0 %v6750_v60  ;;  %5154 = vmatprep.mubr.msk.f32.mxu0 %vm6120_vm2, %v6117_v33 }
0x1a3a   :  { %5608 = vmatprep.subr.bf16.mxu0 %v6119_v11 }
0x1a3d   :  { %5610 = vmatpush3.bf16.msra.mxu0 %v6761_v4 }
0x1a3e   :  { %5611 = vmatprep.subr.bf16.mxu0 %v6119_v11 }
0x1a40   :  { %5155 = vmatmul.mubr.f32.vlgmr.msra.gmra.mrb[34].mxu0 %v6117_v33 }
0x1a41   :  { %5165 = vmatprep.mubr.msk.f32.mxu0 %vm6120_vm2, %v6117_v33  ;;  %5613 = vmatpush3.bf16.msra.mxu0 %v6802_v40 }
0x1a42   :  { %5614 = vmatprep.subr.bf16.mxu0 %v6119_v11 }
0x1a45   :  { %5616 = vmatpush3.bf16.msra.mxu0 %v6822_v23 }
0x1a46   :  { %5623 = vmatprep.subr.bf16.mxu0 %v6119_v11 }
0x1a8d   :  { %v2571_v50 = vpop.f32.mrb[26].mxu1 }
0x1b0b   :  { %v2314_v12 = vpop.f32.mrb[32].mxu0 }
0x1b0c   :  { %v2315_v14 = vadd.f32 %v4828_v3, %v2314_v12  ;;  %v5145_v15 = vpop.f32.mrb[33].mxu0 }
0x1b0e   :  { %v6774_v16 = vadd.f32 %v5138_v10, %v2315_v14  ;;  %v6776_v17 = vadd.f32 %v2315_v14, %v2219_v44  ;;  %v2332_v57 = vadd.f32 %v2315_v14, %v2189_v53  ;;  %v6778_v54 = vadd.f32 %v5129_v51, %v2315_v14  ;;  %v5178_v51 = vpop.f32.mrb[27].mxu1 }
0x1b0f   :  { %v6780_v19 = vadd.f32 %v2315_v14, %v2199_v56  ;;  %v6782_v20 = vadd.f32 %v5132_v55, %v2315_v14  ;;  %v6784_v21 = vadd.f32 %v2315_v14, %v2209_v8  ;;  %v6786_v22 = vadd.f32 %v5135_v7, %v2315_v14  ;;  %v6859_v55 = vld [vmem:[%s7240_s16] ss:$0 sm:$0xff] }
0x1b13   :  { %v2401_v24 = vpop.f32.mrb[34].mxu0 }
0x1b14   :  { %v2405_v25 = vadd.f32 %v2401_v24, %v2332_v57  ;;  %v5156_v1 = vpop.f32.mrb[35].mxu0 }
0x1b16   :  { %5960 = vtanh.f32 %v2405_v25  ;;  %v4830_v27 = vmul.f32 -1.442695, %v2405_v25 }
0x1b18   :  { %5962 = vpow2.f32 %v4830_v27 }
0x1b20   :  { %v5961_v46 = vpop.eup %5960 }
0x1b21   :  { %2415 = vrot.lane.b32.xlu1 %v5961_v46, %s6116_s29 }
0x1b22   :  { %v5963_v28 = vpop.eup %5962 }
0x1b23   :  { %v2409_v31 = vadd.f32 1.0, %v5963_v28 }
0x1b25   :  { %5964 = vrcp.f32 %v2409_v31 }
0x1b2f   :  { %v5965_v35 = vpop.eup %5964 }
0x1b30   :  { %v2413_v36 = vmul.f32 0.0, %v5965_v35 }
0x1b93   :  { %v2416_v34 = vpop.permute.xlu1 %2415 }
0x1b94   :  { %v2418_v5 = vmul.f32 %v5965_v35, %v2416_v34 }
0x1b96   :  { %2420 = vrot.lane.b32.xlu0 %v2418_v5, %s6118_s30 }
0x1c08   :  { %v2421_v37 = vpop.permute.xlu0 %2420 }
0x1c09   :  { %v6790_v52 = vadd.f32 %v2421_v37, %v2413_v36 }
0x1c0b   :  { %5966 = vtanh.f32 %v6790_v52 }
0x1c15   :  { %v5967_v29 = vpop.eup %5966 }
0x1c16   :  { %2426 = vrot.lane.b32.xlu1 %v5967_v29, %s6116_s29 }
0x1c88   :  { %v2427_v32 = vpop.permute.xlu1 %2426 }
0x1c89   :  { %v2429_v49 = vmul.f32 %v5965_v35, %v2427_v32 }
0x1c8b   :  { %2431 = vrot.lane.b32.xlu0 %v2429_v49, %s6118_s30 }
0x1cfd   :  { %v2432_v61 = vpop.permute.xlu0 %2431 }
0x1cfe   :  { %5166 = vmatmul.mubr.msk.f32.vlgmr.msra.gmra.mrb[36].mxu0 %vm86_vm0, %v2432_v61 }
0x1cff   :  { %5625 = vmatpush3.bf16.msra.mxu0 %v6750_v60  ;;  %5187 = vmatprep.mubr.msk.f32.mxu0 %vm6120_vm2, %v6117_v33 }
0x1d00   :  { %5626 = vmatprep.subr.bf16.mxu0 %v6119_v11 }
0x1d03   :  { %5628 = vmatpush3.bf16.msra.mxu0 %v6761_v4 }
0x1d04   :  { %5635 = vmatprep.subr.bf16.mxu0 %v6119_v11 }
0x1d06   :  { %5188 = vmatmul.mubr.msk.f32.vlgmr.msra.gmra.mrb[38].mxu0 %vm86_vm0, %v2432_v61 }
0x1d07   :  { %5637 = vmatpush3.bf16.msra.mxu0 %v6813_v47  ;;  %5209 = vmatprep.mubr.msk.f32.mxu0 %vm6120_vm2, %v6117_v33 }
0x1d08   :  { %5638 = vmatprep.subr.bf16.mxu0 %v6119_v11 }
0x1d0b   :  { %5640 = vmatpush3.bf16.msra.mxu0 %v6826_v26 }
0x1d0c   :  { %5647 = vmatprep.subr.bf16.mxu0 %v6119_v11 }
0x1dd1   :  { %v2501_v53 = vpop.f32.mrb[36].mxu0 }
0x1dd2   :  { %v2572_v56 = vadd.f32 %v2571_v50, %v2501_v53  ;;  %v5167_v6 = vpop.f32.mrb[37].mxu0 }
0x1dd4   :  { %v2581_v41 = vadd.f32 %v6859_v55, %v2572_v56 }
0x1dd6   :  { %5968 = vtanh.f32 %v2581_v41  ;;  %v4833_v2 = vmul.f32 -1.442695, %v2581_v41 }
0x1dd9   :  { %v2680_v48 = vpop.f32.mrb[38].mxu0 }
0x1dda   :  { %v2684_v63 = vadd.f32 %v2680_v48, %v6778_v54  ;;  %v5189_v58 = vpop.f32.mrb[39].mxu0 }
0x1ddc   :  { %5970 = vtanh.f32 %v2684_v63  ;;  %v4835_v7 = vmul.f32 -1.442695, %v2684_v63 }
0x1ddd   :  { %5972 = vpow2.f32 %v4833_v2 }
0x1dde   :  { %5974 = vpow2.f32 %v4835_v7 }
0x1de0   :  { %v5969_v62 = vpop.eup %5968 }
0x1de1   :  { %2591 = vrot.lane.b32.xlu0 %v5969_v62, %s6116_s29 }
0x1de6   :  { %v5971_v0 = vpop.eup %5970 }
0x1de7   :  { %2694 = vrot.lane.b32.xlu1 %v5971_v0, %s6116_s29  ;;  %v5973_v8 = vpop.eup %5972 }
0x1de8   :  { %v2585_v10 = vadd.f32 1.0, %v5973_v8  ;;  %v5975_v44 = vpop.eup %5974 }
0x1de9   :  { %v2688_v3 = vadd.f32 1.0, %v5975_v44 }
0x1dea   :  { %5976 = vrcp.f32 %v2585_v10 }
0x1deb   :  { %5978 = vrcp.f32 %v2688_v3 }
0x1df4   :  { %v5977_v12 = vpop.eup %5976 }
0x1df5   :  { %v5979_v57 = vpop.eup %5978  ;;  %v2589_v25 = vmul.f32 0.0, %v5977_v12 }
0x1df6   :  { %v2692_v27 = vmul.f32 %v5979_v57, %v6790_v52 }
0x1e53   :  { %v2592_v14 = vpop.permute.xlu0 %2591 }
0x1e54   :  { %v2594_v15 = vmul.f32 %v5977_v12, %v2592_v14 }
0x1e56   :  { %2596 = vrot.lane.b32.xlu0 %v2594_v15, %s6118_s30 }
0x1e59   :  { %v2695_v54 = vpop.permute.xlu1 %2694 }
0x1e5a   :  { %v2697_v24 = vmul.f32 %v5979_v57, %v2695_v54 }
0x1e5c   :  { %2699 = vrot.lane.b32.xlu1 %v2697_v24, %s6118_s30 }
0x1ec8   :  { %v2597_v1 = vpop.permute.xlu0 %2596 }
0x1ec9   :  { %v6867_v46 = vadd.f32 %v2597_v1, %v2589_v25 }
0x1ecb   :  { %5980 = vtanh.f32 %v6867_v46 }
0x1ece   :  { %v2700_v28 = vpop.permute.xlu1 %2699 }
0x1ecf   :  { %v6871_v31 = vadd.f32 %v2700_v28, %v2692_v27 }
0x1ed1   :  { %5982 = vtanh.f32 %v6871_v31 }
0x1ed5   :  { %v5981_v35 = vpop.eup %5980 }
0x1ed6   :  { %2602 = vrot.lane.b32.xlu0 %v5981_v35, %s6116_s29 }
0x1edb   :  { %v5983_v34 = vpop.eup %5982 }
0x1edc   :  { %2705 = vrot.lane.b32.xlu1 %v5983_v34, %s6116_s29 }
0x1f48   :  { %v2603_v5 = vpop.permute.xlu0 %2602 }
0x1f49   :  { %v2605_v36 = vmul.f32 %v5977_v12, %v2603_v5 }
0x1f4b   :  { %2607 = vrot.lane.b32.xlu0 %v2605_v36, %s6118_s30 }
0x1f4e   :  { %v2706_v37 = vpop.permute.xlu1 %2705 }
0x1f4f   :  { %v2708_v59 = vmul.f32 %v5979_v57, %v2706_v37 }
0x1f51   :  { %2710 = vrot.lane.b32.xlu1 %v2708_v59, %s6118_s30 }
0x1fbd   :  { %v2608_v52 = vpop.permute.xlu0 %2607 }
0x1fbe   :  { %2610 = vst.msk [vmem:[#allocation4] sm:$0xff] %vm86_vm0, %v2608_v52  ;;  %5210 = vmatmul.mubr.msk.f32.vlgmr.msra.gmra.mrb[40].mxu0 %vm86_vm0, %v2608_v52 }
0x1fbf   :  { %5649 = vmatpush3.bf16.msra.mxu0 %v6802_v40  ;;  %5231 = vmatprep.mubr.msk.f32.mxu0 %vm6120_vm2, %v6117_v33 }
0x1fc0   :  { %5650 = vmatprep.subr.bf16.mxu0 %v6119_v11 }
0x1fc3   :  { %v2711_v38 = vpop.permute.xlu1 %2710  ;;  %5652 = vmatpush3.bf16.msra.mxu0 %v6822_v23 }
0x1fc4   :  { %5199 = vmatmul.mubr.msk.f32.vlgmr.msra.gmra.mrb[28].mxu1 %vm86_vm0, %v2711_v38  ;;  %5659 = vmatprep.subr.bf16.mxu0 %v6119_v11 }
0x1fc5   :  { %5643 = vmatpush3.bf16.msra.mxu1 %v6750_v60  ;;  %5220 = vmatprep.mubr.msk.f32.mxu1 %vm6120_vm2, %v6117_v33 }
0x1fc6   :  { %5644 = vmatprep.subr.bf16.mxu1 %v6119_v11 }
0x1fc9   :  { %5646 = vmatpush3.bf16.msra.mxu1 %v6761_v4 }
0x1fca   :  { %5653 = vmatprep.subr.bf16.mxu1 %v6119_v11 }
0x1fcc   :  { %5221 = vmatmul.mubr.msk.f32.vlgmr.msra.gmra.mrb[30].mxu1 %vm86_vm0, %v2711_v38 }
0x1fcd   :  { %5655 = vmatpush3.bf16.msra.mxu1 %v6813_v47  ;;  %5242 = vmatprep.mubr.msk.f32.mxu1 %vm6120_vm2, %v6117_v33 }
0x1fce   :  { %5656 = vmatprep.subr.bf16.mxu1 %v6119_v11 }
0x1fd1   :  { %5658 = vmatpush3.bf16.msra.mxu1 %v6826_v26 }
0x1fd2   :  { %5665 = vmatprep.subr.bf16.mxu1 %v6119_v11 }
0x2091   :  { %v2852_v39 = vpop.f32.mrb[40].mxu0 }
0x2092   :  { %v5211_v42 = vpop.f32.mrb[41].mxu0 }
0x2097   :  { %v2780_v43 = vpop.f32.mrb[28].mxu1 }
0x2098   :  { %v2853_v9 = vadd.f32 %v2852_v39, %v2780_v43  ;;  %v5200_v13 = vpop.f32.mrb[29].mxu1 }
0x209a   :  { %v2856_v18 = vadd.f32 %v6859_v55, %v2853_v9 }
0x209c   :  { %5984 = vtanh.f32 %v2856_v18  ;;  %v4838_v51 = vmul.f32 -1.442695, %v2856_v18 }
0x209f   :  { %v2956_v29 = vpop.f32.mrb[30].mxu1 }
0x20a0   :  { %v2960_v32 = vadd.f32 %v2956_v29, %v6780_v19  ;;  %v5222_v49 = vpop.f32.mrb[31].mxu1 }
0x20a2   :  { %5986 = vtanh.f32 %v2960_v32  ;;  %v4840_v53 = vmul.f32 -1.442695, %v2960_v32 }
0x20a3   :  { %5988 = vpow2.f32 %v4838_v51 }
0x20a4   :  { %5990 = vpow2.f32 %v4840_v53 }
0x20a6   :  { %v5985_v61 = vpop.eup %5984 }
0x20a7   :  { %2866 = vrot.lane.b32.xlu0 %v5985_v61, %s6116_s29 }
0x20ac   :  { %v5987_v50 = vpop.eup %5986 }
0x20ad   :  { %2970 = vrot.lane.b32.xlu1 %v5987_v50, %s6116_s29  ;;  %v5989_v56 = vpop.eup %5988 }
0x20ae   :  { %v2860_v6 = vadd.f32 1.0, %v5989_v56  ;;  %v5991_v41 = vpop.eup %5990 }
0x20af   :  { %v2964_v48 = vadd.f32 1.0, %v5991_v41 }
0x20b0   :  { %5992 = vrcp.f32 %v2860_v6 }
0x20b1   :  { %5994 = vrcp.f32 %v2964_v48 }
0x20ba   :  { %v5993_v63 = vpop.eup %5992 }
0x20bb   :  { %v5995_v62 = vpop.eup %5994  ;;  %v2864_v7 = vmul.f32 %v5993_v63, %v6867_v46 }
0x20bc   :  { %v2968_v44 = vmul.f32 %v5995_v62, %v6871_v31 }
0x2119   :  { %v2867_v19 = vpop.permute.xlu0 %2866 }
0x211a   :  { %v2869_v58 = vmul.f32 %v5993_v63, %v2867_v19 }
0x211c   :  { %2871 = vrot.lane.b32.xlu0 %v2869_v58, %s6118_s30 }
0x211f   :  { %v2971_v0 = vpop.permute.xlu1 %2970 }
0x2120   :  { %v2973_v2 = vmul.f32 %v5995_v62, %v2971_v0 }
0x2122   :  { %2975 = vrot.lane.b32.xlu1 %v2973_v2, %s6118_s30 }
0x218e   :  { %v2872_v8 = vpop.permute.xlu0 %2871 }
0x218f   :  { %v6907_v10 = vadd.f32 %v2872_v8, %v2864_v7 }
0x2191   :  { %5996 = vtanh.f32 %v6907_v10 }
0x2194   :  { %v2976_v3 = vpop.permute.xlu1 %2975 }
0x2195   :  { %v6911_v12 = vadd.f32 %v2976_v3, %v2968_v44 }
0x2197   :  { %5998 = vtanh.f32 %v6911_v12 }
0x219b   :  { %v5997_v14 = vpop.eup %5996 }
0x219c   :  { %2877 = vrot.lane.b32.xlu0 %v5997_v14, %s6116_s29 }
0x21a1   :  { %v5999_v15 = vpop.eup %5998 }
0x21a2   :  { %2981 = vrot.lane.b32.xlu1 %v5999_v15, %s6116_s29 }
0x220e   :  { %v2878_v57 = vpop.permute.xlu0 %2877 }
0x220f   :  { %v2880_v54 = vmul.f32 %v5993_v63, %v2878_v57 }
0x2211   :  { %2882 = vrot.lane.b32.xlu0 %v2880_v54, %s6118_s30 }
0x2214   :  { %v2982_v24 = vpop.permute.xlu1 %2981 }
0x2215   :  { %v2984_v25 = vmul.f32 %v5995_v62, %v2982_v24 }
0x2217   :  { %2986 = vrot.lane.b32.xlu1 %v2984_v25, %s6118_s30 }
0x2283   :  { %v2883_v1 = vpop.permute.xlu0 %2882 }
0x2284   :  { %2886 = vst.msk [vmem:[#allocation4 + $0x8] sm:$0xff] %vm86_vm0, %v2883_v1  ;;  %5243 = vmatmul.mubr.msk.f32.vlgmr.msra.gmra.mrb[32].mxu1 %vm86_vm0, %v2883_v1 }
0x2285   :  { %5667 = vmatpush3.bf16.msra.mxu1 %v6802_v40  ;;  %5264 = vmatprep.mubr.msk.f32.mxu1 %vm6120_vm2, %v6117_v33 }
0x2286   :  { %5668 = vmatprep.subr.bf16.mxu1 %v6119_v11 }
0x2289   :  { %v2987_v46 = vpop.permute.xlu1 %2986  ;;  %5670 = vmatpush3.bf16.msra.mxu1 %v6822_v23 }
0x228a   :  { %5232 = vmatmul.mubr.msk.f32.vlgmr.msra.gmra.mrb[42].mxu0 %vm86_vm0, %v2987_v46  ;;  %5677 = vmatprep.subr.bf16.mxu1 %v6119_v11 }
0x228b   :  { %5661 = vmatpush3.bf16.msra.mxu0 %v6750_v60  ;;  %5253 = vmatprep.mubr.msk.f32.mxu0 %vm6120_vm2, %v6117_v33 }
0x228c   :  { %5662 = vmatprep.subr.bf16.mxu0 %v6119_v11 }
0x228f   :  { %5664 = vmatpush3.bf16.msra.mxu0 %v6761_v4 }
0x2290   :  { %5671 = vmatprep.subr.bf16.mxu0 %v6119_v11 }
0x2292   :  { %5254 = vmatmul.mubr.msk.f32.vlgmr.msra.gmra.mrb[44].mxu0 %vm86_vm0, %v2987_v46 }
0x2293   :  { %5673 = vmatpush3.bf16.msra.mxu0 %v6813_v47  ;;  %5275 = vmatprep.mubr.msk.f32.mxu0 %vm6120_vm2, %v6117_v33 }
0x2294   :  { %5674 = vmatprep.subr.bf16.mxu0 %v6119_v11 }
0x2297   :  { %5676 = vmatpush3.bf16.msra.mxu0 %v6826_v26 }
0x2298   :  { %5683 = vmatprep.subr.bf16.mxu0 %v6119_v11 }
0x2357   :  { %v3128_v27 = vpop.f32.mrb[32].mxu1 }
0x2358   :  { %v5244_v28 = vpop.f32.mrb[33].mxu1 }
0x235d   :  { %v3056_v31 = vpop.f32.mrb[42].mxu0 }
0x235e   :  { %v3129_v35 = vadd.f32 %v3128_v27, %v3056_v31  ;;  %v5233_v34 = vpop.f32.mrb[43].mxu0 }
0x2360   :  { %v3132_v5 = vadd.f32 %v6859_v55, %v3129_v35 }
0x2362   :  { %6000 = vtanh.f32 %v3132_v5  ;;  %v4843_v39 = vmul.f32 -1.442695, %v3132_v5 }
0x2365   :  { %v3232_v36 = vpop.f32.mrb[44].mxu0 }
0x2366   :  { %v3236_v37 = vadd.f32 %v3232_v36, %v6782_v20  ;;  %v5255_v59 = vpop.f32.mrb[45].mxu0 }
0x2368   :  { %6002 = vtanh.f32 %v3236_v37  ;;  %v4845_v42 = vmul.f32 -1.442695, %v3236_v37 }
0x2369   :  { %6004 = vpow2.f32 %v4843_v39 }
0x236a   :  { %6006 = vpow2.f32 %v4845_v42 }
0x236c   :  { %v6001_v52 = vpop.eup %6000 }
0x236d   :  { %3142 = vrot.lane.b32.xlu0 %v6001_v52, %s6116_s29 }
0x2372   :  { %v6003_v38 = vpop.eup %6002 }
0x2373   :  { %3246 = vrot.lane.b32.xlu1 %v6003_v38, %s6116_s29  ;;  %v6005_v43 = vpop.eup %6004 }
0x2374   :  { %v3136_v9 = vadd.f32 1.0, %v6005_v43  ;;  %v6007_v13 = vpop.eup %6006 }
0x2375   :  { %v3240_v18 = vadd.f32 1.0, %v6007_v13 }
0x2376   :  { %6008 = vrcp.f32 %v3136_v9 }
0x2377   :  { %6010 = vrcp.f32 %v3240_v18 }
0x2380   :  { %v6009_v29 = vpop.eup %6008 }
0x2381   :  { %v6011_v49 = vpop.eup %6010  ;;  %v3140_v51 = vmul.f32 %v6009_v29, %v6907_v10 }
0x2382   :  { %v3244_v6 = vmul.f32 %v6011_v49, %v6911_v12 }
0x23df   :  { %v3143_v20 = vpop.permute.xlu0 %3142 }
0x23e0   :  { %v3145_v32 = vmul.f32 %v6009_v29, %v3143_v20 }
0x23e2   :  { %3147 = vrot.lane.b32.xlu0 %v3145_v32, %s6118_s30 }
0x23e5   :  { %v3247_v61 = vpop.permute.xlu1 %3246 }
0x23e6   :  { %v3249_v50 = vmul.f32 %v6011_v49, %v3247_v61 }
0x23e8   :  { %3251 = vrot.lane.b32.xlu1 %v3249_v50, %s6118_s30 }
0x2454   :  { %v3148_v53 = vpop.permute.xlu0 %3147 }
0x2455   :  { %v6947_v56 = vadd.f32 %v3148_v53, %v3140_v51 }
0x2457   :  { %6012 = vtanh.f32 %v6947_v56 }
0x245a   :  { %v3252_v41 = vpop.permute.xlu1 %3251 }
0x245b   :  { %v6951_v48 = vadd.f32 %v3252_v41, %v3244_v6 }
0x245d   :  { %6014 = vtanh.f32 %v6951_v48 }
0x2461   :  { %v6013_v63 = vpop.eup %6012 }
0x2462   :  { %3153 = vrot.lane.b32.xlu0 %v6013_v63, %s6116_s29 }
0x2467   :  { %v6015_v19 = vpop.eup %6014 }
0x2468   :  { %3257 = vrot.lane.b32.xlu1 %v6015_v19, %s6116_s29 }
0x24d4   :  { %v3154_v58 = vpop.permute.xlu0 %3153 }
0x24d5   :  { %v3156_v62 = vmul.f32 %v6009_v29, %v3154_v58 }
0x24d7   :  { %3158 = vrot.lane.b32.xlu0 %v3156_v62, %s6118_s30 }
0x24da   :  { %v3258_v0 = vpop.permute.xlu1 %3257 }
0x24db   :  { %v3260_v2 = vmul.f32 %v6011_v49, %v3258_v0 }
0x24dd   :  { %3262 = vrot.lane.b32.xlu1 %v3260_v2, %s6118_s30 }
0x2549   :  { %v3159_v7 = vpop.permute.xlu0 %3158 }
0x254a   :  { %3162 = vst.msk [vmem:[#allocation4 + $0x10] sm:$0xff] %vm86_vm0, %v3159_v7  ;;  %5276 = vmatmul.mubr.msk.f32.vlgmr.msra.gmra.mrb[46].mxu0 %vm86_vm0, %v3159_v7 }
0x254b   :  { %5685 = vmatpush3.bf16.msra.mxu0 %v6802_v40  ;;  %5297 = vmatprep.mubr.msk.f32.mxu0 %vm6120_vm2, %v6117_v33 }
0x254c   :  { %5686 = vmatprep.subr.bf16.mxu0 %v6119_v11 }
0x254f   :  { %v3263_v8 = vpop.permute.xlu1 %3262  ;;  %5688 = vmatpush3.bf16.msra.mxu0 %v6822_v23 }
0x2550   :  { %5265 = vmatmul.mubr.msk.f32.vlgmr.msra.gmra.mrb[34].mxu1 %vm86_vm0, %v3263_v8  ;;  %5695 = vmatprep.subr.bf16.mxu0 %v6119_v11 }
0x2551   :  { %5679 = vmatpush3.bf16.msra.mxu1 %v6750_v60  ;;  %5286 = vmatprep.mubr.msk.f32.mxu1 %vm6120_vm2, %v6117_v33 }
0x2552   :  { %5680 = vmatprep.subr.bf16.mxu1 %v6119_v11 }
0x2555   :  { %5682 = vmatpush3.bf16.msra.mxu1 %v6761_v4 }
0x2556   :  { %5689 = vmatprep.subr.bf16.mxu1 %v6119_v11 }
0x2558   :  { %5287 = vmatmul.mubr.msk.f32.vlgmr.msra.gmra.mrb[36].mxu1 %vm86_vm0, %v3263_v8 }
0x2559   :  { %5691 = vmatpush3.bf16.msra.mxu1 %v6813_v47  ;;  %5308 = vmatprep.mubr.msk.f32.mxu1 %vm6120_vm2, %v6117_v33 }
0x255a   :  { %5692 = vmatprep.subr.bf16.mxu1 %v6119_v11 }
0x255d   :  { %5694 = vmatpush3.bf16.msra.mxu1 %v6826_v26 }
0x255e   :  { %5701 = vmatprep.subr.bf16.mxu1 %v6119_v11 }
0x261d   :  { %v3404_v10 = vpop.f32.mrb[46].mxu0 }
0x261e   :  { %v5277_v44 = vpop.f32.mrb[47].mxu0 }
0x2623   :  { %v3332_v3 = vpop.f32.mrb[34].mxu1 }
0x2624   :  { %v3405_v12 = vadd.f32 %v3404_v10, %v3332_v3  ;;  %v5266_v14 = vpop.f32.mrb[35].mxu1 }
0x2626   :  { %v3408_v15 = vadd.f32 %v6859_v55, %v3405_v12 }
0x2628   :  { %6016 = vtanh.f32 %v3408_v15  ;;  %v4848_v46 = vmul.f32 -1.442695, %v3408_v15 }
0x262b   :  { %v3508_v57 = vpop.f32.mrb[36].mxu1 }
0x262c   :  { %v3512_v54 = vadd.f32 %v3508_v57, %v6784_v21  ;;  %v5288_v24 = vpop.f32.mrb[37].mxu1 }
0x262e   :  { %6018 = vtanh.f32 %v3512_v54  ;;  %v4850_v27 = vmul.f32 -1.442695, %v3512_v54 }
0x262f   :  { %6020 = vpow2.f32 %v4848_v46 }
0x2630   :  { %6022 = vpow2.f32 %v4850_v27 }
0x2632   :  { %v6017_v25 = vpop.eup %6016 }
0x2633   :  { %3418 = vrot.lane.b32.xlu0 %v6017_v25, %s6116_s29 }
0x2638   :  { %v6019_v1 = vpop.eup %6018 }
0x2639   :  { %3522 = vrot.lane.b32.xlu1 %v6019_v1, %s6116_s29  ;;  %v6021_v28 = vpop.eup %6020 }
0x263a   :  { %v3412_v31 = vadd.f32 1.0, %v6021_v28  ;;  %v6023_v35 = vpop.eup %6022 }
0x263b   :  { %v3516_v34 = vadd.f32 1.0, %v6023_v35 }
0x263c   :  { %6024 = vrcp.f32 %v3412_v31 }
0x263d   :  { %6026 = vrcp.f32 %v3516_v34 }
0x2646   :  { %v6025_v5 = vpop.eup %6024 }
0x2647   :  { %v6027_v37 = vpop.eup %6026  ;;  %v3416_v38 = vmul.f32 %v6025_v5, %v6947_v56 }
0x2648   :  { %v3520_v43 = vmul.f32 %v6027_v37, %v6951_v48 }
0x26a5   :  { %v3419_v21 = vpop.permute.xlu0 %3418 }
0x26a6   :  { %v3421_v36 = vmul.f32 %v6025_v5, %v3419_v21 }
0x26a8   :  { %3423 = vrot.lane.b32.xlu0 %v3421_v36, %s6118_s30 }
0x26ab   :  { %v3523_v59 = vpop.permute.xlu1 %3522 }
0x26ac   :  { %v3525_v52 = vmul.f32 %v6027_v37, %v3523_v59 }
0x26ae   :  { %3527 = vrot.lane.b32.xlu1 %v3525_v52, %s6118_s30 }
0x271a   :  { %v3424_v39 = vpop.permute.xlu0 %3423 }
0x271b   :  { %v6987_v42 = vadd.f32 %v3424_v39, %v3416_v38 }
0x271d   :  { %6028 = vtanh.f32 %v6987_v42 }
0x2720   :  { %v3528_v9 = vpop.permute.xlu1 %3527 }
0x2721   :  { %v6991_v13 = vadd.f32 %v3528_v9, %v3520_v43 }
0x2723   :  { %6030 = vtanh.f32 %v6991_v13 }
0x2727   :  { %v6029_v18 = vpop.eup %6028 }
0x2728   :  { %3429 = vrot.lane.b32.xlu0 %v6029_v18, %s6116_s29 }
0x272d   :  { %v6031_v29 = vpop.eup %6030 }
0x272e   :  { %3533 = vrot.lane.b32.xlu1 %v6031_v29, %s6116_s29 }
0x279a   :  { %v3430_v20 = vpop.permute.xlu0 %3429 }
0x279b   :  { %v3432_v32 = vmul.f32 %v6025_v5, %v3430_v20 }
0x279d   :  { %3434 = vrot.lane.b32.xlu0 %v3432_v32, %s6118_s30 }
0x27a0   :  { %v3534_v49 = vpop.permute.xlu1 %3533 }
0x27a1   :  { %v3536_v61 = vmul.f32 %v6027_v37, %v3534_v49 }
0x27a3   :  { %3538 = vrot.lane.b32.xlu1 %v3536_v61, %s6118_s30 }
0x280f   :  { %v3435_v50 = vpop.permute.xlu0 %3434 }
0x2810   :  { %3438 = vst.msk [vmem:[#allocation4 + $0x18] sm:$0xff] %vm86_vm0, %v3435_v50  ;;  %5309 = vmatmul.mubr.msk.f32.vlgmr.msra.gmra.mrb[38].mxu1 %vm86_vm0, %v3435_v50 }
0x2811   :  { %5703 = vmatpush3.bf16.msra.mxu1 %v6802_v40  ;;  %5330 = vmatprep.mubr.msk.f32.mxu1 %vm6120_vm2, %v6117_v33 }
0x2812   :  { %5704 = vmatprep.subr.bf16.mxu1 %v6119_v11 }
0x2815   :  { %v3539_v51 = vpop.permute.xlu1 %3538  ;;  %5706 = vmatpush3.bf16.msra.mxu1 %v6822_v23 }
0x2816   :  { %5298 = vmatmul.mubr.msk.f32.vlgmr.msra.gmra.mrb[48].mxu0 %vm86_vm0, %v3539_v51  ;;  %5713 = vmatprep.subr.bf16.mxu1 %v6119_v11 }
0x2817   :  { %5697 = vmatpush3.bf16.msra.mxu0 %v6750_v60  ;;  %5319 = vmatprep.mubr.msk.f32.mxu0 %vm6120_vm2, %v6117_v33 }
0x2818   :  { %5698 = vmatprep.subr.bf16.mxu0 %v6119_v11 }
0x281b   :  { %5700 = vmatpush3.bf16.msra.mxu0 %v6761_v4 }
0x281c   :  { %5707 = vmatprep.subr.bf16.mxu0 %v6119_v11 }
0x281e   :  { %5320 = vmatmul.mubr.msk.f32.vlgmr.msra.gmra.mrb[50].mxu0 %vm86_vm0, %v3539_v51 }
0x281f   :  { %5709 = vmatpush3.bf16.msra.mxu0 %v6813_v47  ;;  %5341 = vmatprep.mubr.msk.f32.mxu0 %vm6120_vm2, %v6117_v33 }
0x2820   :  { %5710 = vmatprep.subr.bf16.mxu0 %v6119_v11 }
0x2823   :  { %5712 = vmatpush3.bf16.msra.mxu0 %v6826_v26 }
0x2824   :  { %5719 = vmatprep.subr.bf16.mxu0 %v6119_v11 }
0x28e3   :  { %v3680_v53 = vpop.f32.mrb[38].mxu1 }
0x28e4   :  { %v5310_v56 = vpop.f32.mrb[39].mxu1 }
0x28e9   :  { %v3608_v6 = vpop.f32.mrb[48].mxu0 }
0x28ea   :  { %v3681_v41 = vadd.f32 %v3680_v53, %v3608_v6  ;;  %v5299_v48 = vpop.f32.mrb[49].mxu0 }
0x28ec   :  { %v3684_v63 = vadd.f32 %v6859_v55, %v3681_v41 }
0x28ee   :  { %6032 = vtanh.f32 %v3684_v63  ;;  %v4853_v7 = vmul.f32 -1.442695, %v3684_v63 }
0x28f1   :  { %v3784_v19 = vpop.f32.mrb[50].mxu0 }
0x28f2   :  { %v3788_v58 = vadd.f32 %v3784_v19, %v6786_v22  ;;  %v5321_v62 = vpop.f32.mrb[51].mxu0 }
0x28f4   :  { %6034 = vtanh.f32 %v3788_v58  ;;  %v4855_v8 = vmul.f32 -1.442695, %v3788_v58 }
0x28f5   :  { %6036 = vpow2.f32 %v4853_v7 }
0x28f6   :  { %6038 = vpow2.f32 %v4855_v8 }
0x28f8   :  { %v6033_v0 = vpop.eup %6032 }
0x28f9   :  { %3694 = vrot.lane.b32.xlu0 %v6033_v0, %s6116_s29 }
0x28fe   :  { %v6035_v2 = vpop.eup %6034 }
0x28ff   :  { %3798 = vrot.lane.b32.xlu1 %v6035_v2, %s6116_s29  ;;  %v6037_v10 = vpop.eup %6036 }
0x2900   :  { %v3688_v44 = vadd.f32 1.0, %v6037_v10  ;;  %v6039_v3 = vpop.eup %6038 }
0x2901   :  { %v3792_v12 = vadd.f32 1.0, %v6039_v3 }
0x2902   :  { %6040 = vrcp.f32 %v3688_v44 }
0x2903   :  { %6042 = vrcp.f32 %v3792_v12 }
0x290c   :  { %v6041_v14 = vpop.eup %6040 }
0x290d   :  { %v6043_v57 = vpop.eup %6042  ;;  %v3692_v25 = vmul.f32 %v6041_v14, %v6987_v42 }
0x290e   :  { %v3796_v27 = vmul.f32 %v6043_v57, %v6991_v13 }
0x296b   :  { %v3695_v22 = vpop.permute.xlu0 %3694 }
0x296c   :  { %v3697_v15 = vmul.f32 %v6041_v14, %v3695_v22 }
0x296e   :  { %3699 = vrot.lane.b32.xlu0 %v3697_v15, %s6118_s30 }
0x2971   :  { %v3799_v54 = vpop.permute.xlu1 %3798 }
0x2972   :  { %v3801_v24 = vmul.f32 %v6043_v57, %v3799_v54 }
0x2974   :  { %3803 = vrot.lane.b32.xlu1 %v3801_v24, %s6118_s30 }
0x29e0   :  { %v3700_v1 = vpop.permute.xlu0 %3699 }
0x29e1   :  { %v7027_v46 = vadd.f32 %v3700_v1, %v3692_v25 }
0x29e3   :  { %6044 = vtanh.f32 %v7027_v46 }
0x29e6   :  { %v3804_v28 = vpop.permute.xlu1 %3803 }
0x29e7   :  { %v7031_v31 = vadd.f32 %v3804_v28, %v3796_v27 }
0x29e9   :  { %6046 = vtanh.f32 %v7031_v31 }
0x29ed   :  { %v6045_v35 = vpop.eup %6044 }
0x29ee   :  { %3705 = vrot.lane.b32.xlu0 %v6045_v35, %s6116_s29 }
0x29f3   :  { %v6047_v34 = vpop.eup %6046 }
0x29f4   :  { %3809 = vrot.lane.b32.xlu1 %v6047_v34, %s6116_s29 }
0x2a60   :  { %v3706_v5 = vpop.permute.xlu0 %3705 }
0x2a61   :  { %v3708_v21 = vmul.f32 %v6041_v14, %v3706_v5 }
0x2a63   :  { %3710 = vrot.lane.b32.xlu0 %v3708_v21, %s6118_s30 }
0x2a66   :  { %v3810_v36 = vpop.permute.xlu1 %3809 }
0x2a67   :  { %v3812_v37 = vmul.f32 %v6043_v57, %v3810_v36 }
0x2a69   :  { %3814 = vrot.lane.b32.xlu1 %v3812_v37, %s6118_s30 }
0x2ad5   :  { %v3711_v59 = vpop.permute.xlu0 %3710 }
0x2ad6   :  { %3714 = vst.msk [vmem:[#allocation4 + $0x20] sm:$0xff] %vm86_vm0, %v3711_v59  ;;  %5342 = vmatmul.mubr.msk.f32.vlgmr.msra.gmra.mrb[52].mxu0 %vm86_vm0, %v3711_v59 }
0x2ad7   :  { %5721 = vmatpush3.bf16.msra.mxu0 %v6802_v40  ;;  %5363 = vmatprep.mubr.msk.f32.mxu0 %vm6120_vm2, %v6117_v33 }
0x2ad8   :  { %5722 = vmatprep.subr.bf16.mxu0 %v6119_v11 }
0x2adb   :  { %v3815_v52 = vpop.permute.xlu1 %3814  ;;  %5724 = vmatpush3.bf16.msra.mxu0 %v6822_v23 }
0x2adc   :  { %5331 = vmatmul.mubr.msk.f32.vlgmr.msra.gmra.mrb[40].mxu1 %vm86_vm0, %v3815_v52  ;;  %5731 = vmatprep.subr.bf16.mxu0 %v6119_v11 }
0x2add   :  { %5715 = vmatpush3.bf16.msra.mxu1 %v6750_v60  ;;  %5352 = vmatprep.mubr.msk.f32.mxu1 %vm6120_vm2, %v6117_v33 }
0x2ade   :  { %5716 = vmatprep.subr.bf16.mxu1 %v6119_v11 }
0x2ae1   :  { %5718 = vmatpush3.bf16.msra.mxu1 %v6761_v4 }
0x2ae2   :  { %5725 = vmatprep.subr.bf16.mxu1 %v6119_v11 }
0x2ae4   :  { %5353 = vmatmul.mubr.msk.f32.vlgmr.msra.gmra.mrb[42].mxu1 %vm86_vm0, %v3815_v52 }
0x2ae5   :  { %5727 = vmatpush3.bf16.msra.mxu1 %v6813_v47  ;;  %5374 = vmatprep.mubr.msk.f32.mxu1 %vm6120_vm2, %v6117_v33 }
0x2ae6   :  { %5728 = vmatprep.subr.bf16.mxu1 %v6119_v11 }
0x2ae9   :  { %5730 = vmatpush3.bf16.msra.mxu1 %v6826_v26 }
0x2aea   :  { %5737 = vmatprep.subr.bf16.mxu1 %v6119_v11 }
0x2ba9   :  { %v3956_v38 = vpop.f32.mrb[52].mxu0 }
0x2baa   :  { %v5343_v39 = vpop.f32.mrb[53].mxu0 }
0x2baf   :  { %v3884_v42 = vpop.f32.mrb[40].mxu1 }
0x2bb0   :  { %v3957_v43 = vadd.f32 %v3956_v38, %v3884_v42  ;;  %v5332_v9 = vpop.f32.mrb[41].mxu1 }
0x2bb2   :  { %v3960_v13 = vadd.f32 %v6859_v55, %v3957_v43 }
0x2bb4   :  { %6048 = vtanh.f32 %v3960_v13  ;;  %v4858_v61 = vmul.f32 -1.442695, %v3960_v13 }
0x2bb7   :  { %v4060_v18 = vpop.f32.mrb[42].mxu1 }
0x2bb8   :  { %v4064_v29 = vadd.f32 %v4060_v18, %v6776_v17  ;;  %v5354_v20 = vpop.f32.mrb[43].mxu1 }
0x2bb9   :  { %v4567_v20 = vld [vmem:[%s7241_s17 + $0x8] sm:$0xff] }
0x2bba   :  { %6050 = vtanh.f32 %v4064_v29  ;;  %v4860_v50 = vmul.f32 -1.442695, %v4064_v29  ;;  %v4566_v29 = vld [vmem:[%s7241_s17] sm:$0xff] }
0x2bbb   :  { %6052 = vpow2.f32 %v4858_v61 }
0x2bbc   :  { %6054 = vpow2.f32 %v4860_v50 }
0x2bbe   :  { %v6049_v32 = vpop.eup %6048 }
0x2bbf   :  { %3970 = vrot.lane.b32.xlu0 %v6049_v32, %s6116_s29  ;;  %v5749_v32 = vpack.c.bf16 %v4567_v20, %v4566_v29 }
0x2bc4   :  { %v6051_v49 = vpop.eup %6050 }
0x2bc5   :  { %4074 = vrot.lane.b32.xlu1 %v6051_v49, %s6116_s29  ;;  %v6053_v51 = vpop.eup %6052 }
0x2bc6   :  { %v3964_v53 = vadd.f32 1.0, %v6053_v51  ;;  %v6055_v56 = vpop.eup %6054 }
0x2bc7   :  { %v4068_v6 = vadd.f32 1.0, %v6055_v56  ;;  %v4568_v56 = vld [vmem:[%s7241_s17 + $0x10] sm:$0xff] }
0x2bc8   :  { %6056 = vrcp.f32 %v3964_v53 }
0x2bc9   :  { %6058 = vrcp.f32 %v4068_v6  ;;  %v4569_v6 = vld [vmem:[%s7241_s17 + $0x18] sm:$0xff] }
0x2bd2   :  { %v6057_v41 = vpop.eup %6056 }
0x2bd3   :  { %v6059_v63 = vpop.eup %6058  ;;  %v3968_v62 = vmul.f32 %v6057_v41, %v7027_v46 }
0x2bd4   :  { %v4072_v7 = vmul.f32 %v6059_v63, %v7031_v31 }
0x2c31   :  { %v3971_v17 = vpop.permute.xlu0 %3970 }
0x2c32   :  { %v3973_v48 = vmul.f32 %v6057_v41, %v3971_v17 }
0x2c34   :  { %3975 = vrot.lane.b32.xlu0 %v3973_v48, %s6118_s30  ;;  %v4558_v48 = vld [vmem:[#allocation4] sm:$0xff] }
0x2c37   :  { %v4075_v19 = vpop.permute.xlu1 %4074 }
0x2c38   :  { %v4077_v58 = vmul.f32 %v6059_v63, %v4075_v19  ;;  %v4560_v19 = vld [vmem:[#allocation4 + $0x10] sm:$0xff] }
0x2c3a   :  { %4079 = vrot.lane.b32.xlu1 %v4077_v58, %s6118_s30  ;;  %v4561_v58 = vld [vmem:[#allocation4 + $0x18] sm:$0xff] }
0x2ca6   :  { %v3976_v0 = vpop.permute.xlu0 %3975 }
0x2ca7   :  { %v7067_v2 = vadd.f32 %v3976_v0, %v3968_v62  ;;  %v4562_v62 = vld [vmem:[#allocation4 + $0x20] sm:$0xff] }
0x2ca9   :  { %6060 = vtanh.f32 %v7067_v2 }
0x2cac   :  { %v4080_v8 = vpop.permute.xlu1 %4079 }
0x2cad   :  { %v7071_v10 = vadd.f32 %v4080_v8, %v4072_v7 }
0x2caf   :  { %6062 = vtanh.f32 %v7071_v10 }
0x2cb3   :  { %v6061_v44 = vpop.eup %6060 }
0x2cb4   :  { %3981 = vrot.lane.b32.xlu0 %v6061_v44, %s6116_s29 }
0x2cb9   :  { %v6063_v3 = vpop.eup %6062 }
0x2cba   :  { %4085 = vrot.lane.b32.xlu1 %v6063_v3, %s6116_s29 }
0x2d26   :  { %v3982_v12 = vpop.permute.xlu0 %3981 }
0x2d27   :  { %v3984_v14 = vmul.f32 %v6057_v41, %v3982_v12  ;;  %v5753_v41 = vpack.c.bf16 %v4569_v6, %v4568_v56  ;;  %v6090_v12 = vld [vmem:[%s7240_s16] ss:$0 sm:$0xff] }
0x2d29   :  { %3986 = vrot.lane.b32.xlu0 %v3984_v14, %s6118_s30 }
0x2d2c   :  { %v4086_v22 = vpop.permute.xlu1 %4085 }
0x2d2d   :  { %v4088_v15 = vmul.f32 %v6059_v63, %v4086_v22  ;;  %v4559_v63 = vld [vmem:[#allocation4 + $0x8] sm:$0xff]  ;;  %v7148_v22 = vld [vmem:[%s7242_s18] ss:$0 sm:$0xff] }
0x2d2f   :  { %4090 = vrot.lane.b32.xlu1 %v4088_v15, %s6118_s30 }
0x2d9b   :  { %v3987_v57 = vpop.permute.xlu0 %3986 }
0x2d9c   :  { %3990 = vst.msk [vmem:[#allocation4 + $0x28] sm:$0xff] %vm86_vm0, %v3987_v57  ;;  %5375 = vmatmul.mubr.msk.f32.vlgmr.msra.gmra.mrb[44].mxu1 %vm86_vm0, %v3987_v57 }
0x2d9d   :  { %5739 = vmatpush3.bf16.msra.mxu1 %v6802_v40  ;;  %5396 = vmatprep.mubr.msk.f32.mxu1 %vm6120_vm2, %v6117_v33 }
0x2d9e   :  { %5740 = vmatprep.subr.bf16.mxu1 %v6119_v11 }
0x2da1   :  { %v4091_v54 = vpop.permute.xlu1 %4090  ;;  %5742 = vmatpush3.bf16.msra.mxu1 %v6822_v23 }
0x2da2   :  { %5364 = vmatmul.mubr.msk.f32.vlgmr.msra.gmra.mrb[54].mxu0 %vm86_vm0, %v4091_v54  ;;  %5750 = vmatprep.subr.bf16.mxu1 %v5749_v32 }
0x2da3   :  { %5733 = vmatpush3.bf16.msra.mxu0 %v6750_v60  ;;  %5385 = vmatprep.mubr.msk.f32.mxu0 %vm6120_vm2, %v6117_v33  ;;  %v4563_v0 = vld [vmem:[#allocation4 + $0x28] sm:$0xff] }
0x2da4   :  { %5734 = vmatprep.subr.bf16.mxu0 %v6119_v11 }
0x2da7   :  { %5736 = vmatpush3.bf16.msra.mxu0 %v6761_v4 }
0x2da8   :  { %5743 = vmatprep.subr.bf16.mxu0 %v6119_v11 }
0x2daa   :  { %5386 = vmatmul.mubr.msk.f32.vlgmr.msra.gmra.mrb[56].mxu0 %vm86_vm0, %v4091_v54 }
0x2dab   :  { %5745 = vmatpush3.bf16.msra.mxu0 %v6813_v47  ;;  %5407 = vmatprep.mubr.msk.f32.mxu0 %vm6120_vm2, %v6117_v33 }
0x2dac   :  { %5746 = vmatprep.subr.bf16.mxu0 %v6119_v11 }
0x2daf   :  { %5748 = vmatpush3.bf16.msra.mxu0 %v6826_v26 }
0x2e6f   :  { %v4232_v60 = vpop.f32.mrb[44].mxu1 }
0x2e70   :  { %v5376_v40 = vpop.f32.mrb[45].mxu1 }
0x2e75   :  { %v4160_v23 = vpop.f32.mrb[54].mxu0 }
0x2e76   :  { %v4233_v24 = vadd.f32 %v4232_v60, %v4160_v23  ;;  %v5365_v25 = vpop.f32.mrb[55].mxu0 }
0x2e78   :  { %v4236_v4 = vadd.f32 %v6859_v55, %v4233_v24 }
0x2e7a   :  { %6064 = vtanh.f32 %v4236_v4  ;;  %v4863_v11 = vmul.f32 -1.442695, %v4236_v4 }
0x2e7d   :  { %v4336_v1 = vpop.f32.mrb[56].mxu0 }
0x2e7e   :  { %v4340_v46 = vadd.f32 %v4336_v1, %v6774_v16  ;;  %v5387_v27 = vpop.f32.mrb[57].mxu0 }
0x2e80   :  { %6066 = vtanh.f32 %v4340_v46  ;;  %v4865_v26 = vmul.f32 -1.442695, %v4340_v46 }
0x2e81   :  { %6068 = vpow2.f32 %v4863_v11 }
0x2e82   :  { %6070 = vpow2.f32 %v4865_v26 }
0x2e84   :  { %v6065_v47 = vpop.eup %6064 }
0x2e85   :  { %4246 = vrot.lane.b32.xlu1 %v6065_v47, %s6116_s29 }
0x2e8a   :  { %v6067_v28 = vpop.eup %6066 }
0x2e8b   :  { %4350 = vrot.lane.b32.xlu0 %v6067_v28, %s6116_s29  ;;  %v6069_v31 = vpop.eup %6068 }
0x2e8c   :  { %v4240_v35 = vadd.f32 1.0, %v6069_v31  ;;  %v6071_v34 = vpop.eup %6070 }
0x2e8d   :  { %v4344_v55 = vadd.f32 1.0, %v6071_v34 }
0x2e8e   :  { %6072 = vrcp.f32 %v4240_v35 }
0x2e8f   :  { %6074 = vrcp.f32 %v4344_v55 }
0x2e98   :  { %v6073_v5 = vpop.eup %6072 }
0x2e99   :  { %v6075_v36 = vpop.eup %6074  ;;  %v4244_v52 = vmul.f32 %v6073_v5, %v7067_v2 }
0x2e9a   :  { %v4348_v42 = vmul.f32 %v6075_v36, %v7071_v10 }
0x2ef7   :  { %v4247_v16 = vpop.permute.xlu1 %4246 }
0x2ef8   :  { %v4249_v21 = vmul.f32 %v6073_v5, %v4247_v16 }
0x2efa   :  { %4251 = vrot.lane.b32.xlu1 %v4249_v21, %s6118_s30 }
0x2efd   :  { %v4351_v37 = vpop.permute.xlu0 %4350 }
0x2efe   :  { %v4353_v59 = vmul.f32 %v6075_v36, %v4351_v37  ;;  %v2065_v37 = vmul.f32 1.442695, %v6712_v45 }
0x2f00   :  { %4355 = vrot.lane.b32.xlu0 %v4353_v59, %s6118_s30 }
0x2f6c   :  { %v4252_v38 = vpop.permute.xlu1 %4251 }
0x2f6d   :  { %v7105_v39 = vadd.f32 %v4252_v38, %v4244_v52 }
0x2f6f   :  { %6076 = vtanh.f32 %v7105_v39 }
0x2f72   :  { %v4356_v43 = vpop.permute.xlu0 %4355 }
0x2f73   :  { %v7109_v9 = vadd.f32 %v4356_v43, %v4348_v42 }
0x2f75   :  { %6078 = vtanh.f32 %v7109_v9 }
0x2f79   :  { %v6077_v13 = vpop.eup %6076 }
0x2f7a   :  { %4257 = vrot.lane.b32.xlu1 %v6077_v13, %s6116_s29 }
0x2f7f   :  { %v6079_v18 = vpop.eup %6078 }
0x2f80   :  { %4361 = vrot.lane.b32.xlu0 %v6079_v18, %s6116_s29 }
0x2fec   :  { %v4258_v49 = vpop.permute.xlu1 %4257 }
0x2fed   :  { %v4260_v61 = vmul.f32 %v6073_v5, %v4258_v49  ;;  %v4819_v49 = vsel %vm2056_vm4, 1.0, %v6117_v33 }
0x2fef   :  { %4262 = vrot.lane.b32.xlu1 %v4260_v61, %s6118_s30 }
0x2ff2   :  { %v4362_v50 = vpop.permute.xlu0 %4361 }
0x2ff3   :  { %v4364_v51 = vmul.f32 %v6075_v36, %v4362_v50  ;;  %v2059_v36 = vmul.f32 %v6712_v45, %v6712_v45 }
0x2ff5   :  { %4366 = vrot.lane.b32.xlu0 %v4364_v51, %s6118_s30 }
0x3061   :  { %v4263_v53 = vpop.permute.xlu1 %4262 }
0x3062   :  { %4266 = vst.msk [vmem:[#allocation4 + $0x30] sm:$0xff] %vm86_vm0, %v4263_v53  ;;  %5408 = vmatmul.mubr.msk.f32.vlgmr.msra.gmra.mrb[58].mxu0 %vm86_vm0, %v4263_v53 }
0x3067   :  { %v4367_v17 = vpop.permute.xlu0 %4366 }
0x3068   :  { %4544 = vst.msk [vmem:[%s7244_s20] sm:$0xff] %vm86_vm0, %v4367_v17  ;;  %5397 = vmatmul.mubr.msk.f32.vlgmr.msra.gmra.mrb[46].mxu1 %vm86_vm0, %v4367_v17 }
0x3069   :  { %5752 = vmatpush3.bf16.msra.mxu1 %v5749_v32  ;;  %5418 = vmatprep.mubr.msk.f32.mxu1 %vm86_vm0, %v4558_v48  ;;  %v4564_v2 = vld [vmem:[#allocation4 + $0x30] sm:$0xff] }
0x306a   :  { %5754 = vmatprep.subr.bf16.mxu1 %v5753_v41 }
0x306d   :  { %5756 = vmatpush3.bf16.msra.mxu1 %v5753_v41 }
0x3070   :  { %5419 = vmatmul.mubr.msk.f32.vlgmr.msra.gmra.mrb[48].mxu1 %vm86_vm0, %v4559_v63 }
0x3071   :  { %5421 = vmatprep.mubr.msk.f32.mxu1 %vm86_vm0, %v4560_v19 }
0x3074   :  { %5422 = vmatmul.mubr.msk.f32.gmra.mrb[50].mxu1 %vm86_vm0, %v4561_v58 }
0x3075   :  { %5424 = vmatprep.mubr.msk.f32.mxu1 %vm86_vm0, %v4562_v62 }
0x3078   :  { %5425 = vmatmul.mubr.msk.f32.gmra.mrb[52].mxu1 %vm86_vm0, %v4563_v0 }
0x3079   :  { %5427 = vmatprep.mubr.msk.f32.mxu1 %vm86_vm0, %v4564_v2 }
0x3135   :  { %v4508_v7 = vpop.f32.mrb[58].mxu0 }
0x3136   :  { %v5409_v8 = vpop.f32.mrb[59].mxu0 }
0x313b   :  { %v4436_v10 = vpop.f32.mrb[46].mxu1 }
0x313c   :  { %v4509_v44 = vadd.f32 %v4508_v7, %v4436_v10  ;;  %v5398_v3 = vpop.f32.mrb[47].mxu1 }
0x313e   :  { %v4512_v14 = vadd.f32 %v6090_v12, %v4509_v44 }
0x3140   :  { %6080 = vtanh.f32 %v4512_v14  ;;  %v4868_v28 = vmul.f32 -1.442695, %v4512_v14 }
0x3142   :  { %6082 = vpow2.f32 %v4868_v28 }
0x3143   :  { %v5420_v15 = vpop.f32.mrb[48].mxu1 }
0x3144   :  { %v4673_v57 = vadd.f32 %v5420_v15, %v7148_v22  ;;  %v4667_v54 = vpop.f32.mrb[49].mxu1 }
0x3145   :  { %v4668_v60 = vadd.f32 %v7148_v22, %v4667_v54 }
0x3146   :  { %4707 = vst [vmem:[%s7243_s19 + $0x8] sm:$0xff] %v4673_v57 }
0x3147   :  { %4706 = vst [vmem:[%s7243_s19] sm:$0xff] %v4668_v60  ;;  %v5423_v40 = vpop.f32.mrb[50].mxu1 }
0x3148   :  { %v4683_v23 = vadd.f32 %v5423_v40, %v7148_v22  ;;  %v4677_v24 = vpop.f32.mrb[51].mxu1 }
0x3149   :  { %v4678_v25 = vadd.f32 %v7148_v22, %v4677_v24 }
0x314a   :  { %v6081_v4 = vpop.eup %6080  ;;  %4709 = vst [vmem:[%s7243_s19 + $0x18] sm:$0xff] %v4683_v23 }
0x314b   :  { %4708 = vst [vmem:[%s7243_s19 + $0x10] sm:$0xff] %v4678_v25  ;;  %v5426_v1 = vpop.f32.mrb[52].mxu1  ;;  %4522 = vrot.lane.b32.xlu1 %v6081_v4, %s6116_s29 }
0x314c   :  { %v4693_v46 = vadd.f32 %v5426_v1, %v7148_v22  ;;  %v4687_v27 = vpop.f32.mrb[53].mxu1  ;;  %v6083_v11 = vpop.eup %6082 }
0x314d   :  { %v4688_v47 = vadd.f32 %v7148_v22, %v4687_v27  ;;  %v4516_v26 = vadd.f32 1.0, %v6083_v11 }
0x314e   :  { %4711 = vst [vmem:[%s7243_s19 + $0x28] sm:$0xff] %v4693_v46 }
0x314f   :  { %4710 = vst [vmem:[%s7243_s19 + $0x20] sm:$0xff] %v4688_v47  ;;  %6084 = vrcp.f32 %v4516_v26 }
0x3159   :  { %v6085_v31 = vpop.eup %6084 }
0x315a   :  { %v4520_v55 = vmul.f32 %v6085_v31, %v7105_v39 }
0x31bd   :  { %v4523_v35 = vpop.permute.xlu1 %4522 }
0x31be   :  { %v4525_v34 = vmul.f32 %v6085_v31, %v4523_v35 }
0x31c0   :  { %4527 = vrot.lane.b32.xlu0 %v4525_v34, %s6118_s30 }
0x3232   :  { %v4528_v5 = vpop.permute.xlu0 %4527 }
0x3233   :  { %v4530_v16 = vadd.f32 %v4528_v5, %v4520_v55 }
0x3235   :  { %6086 = vtanh.f32 %v4530_v16 }
0x3236   :  { %6088 = vpow2.f32 %v2065_v37 }
0x323f   :  { %v6087_v21 = vpop.eup %6086 }
0x3240   :  { %4533 = vrot.lane.b32.xlu1 %v6087_v21, %s6116_s29  ;;  %v6089_v42 = vpop.eup %6088 }
0x3244   :  { %2061 = vrot.lane.b32.xlu1 %v2059_v36, %s6122_s11 }
0x32b2   :  { %v4534_v59 = vpop.permute.xlu1 %4533 }
0x32b3   :  { %v4536_v52 = vmul.f32 %v6085_v31, %v4534_v59 }
0x32b5   :  { %4538 = vrot.lane.b32.xlu0 %v4536_v52, %s6118_s30 }
0x32b6   :  { %v2062_v38 = vpop.permute.xlu1 %2061 }
0x32b7   :  { %v2064_v39 = vsub.f32 %v6712_v45, %v2062_v38 }
0x32b9   :  { %v2067_v43 = vsub.f32 %v2064_v39, %v6089_v42 }
0x32bb   :  { %v2068_v13 = vadd.f32 1.0, %v2067_v43 }
0x32bd   :  { %2070 = vrot.lane.b32.xlu0 %v2068_v13, %s6121_s10 }
0x32c1   :  { %4546 = vrot.lane.b32.xlu0 %v7109_v9, %s6115_s24 }
0x32c5   :  { %4553 = vrot.lane.b32.xlu0 %v4530_v16, %s6115_s24 }
0x3327   :  { %v4539_v18 = vpop.permute.xlu0 %4538 }
0x3328   :  { %4542 = vst.msk [vmem:[#allocation4 + $0x38] sm:$0xff] %vm86_vm0, %v4539_v18  ;;  %4869 = vst.msk [vmem:[%s7244_s20 + $0x8] sm:$0xff] %vm86_vm0, %v4539_v18  ;;  %s6123_s20 = smov [#allocation5]  }
0x3329   :  { %s4726_s8 = sshll.u32 %s6123_s20, 4  ;;  %s4727_s8 = int_to_ptr.vmem [resolvable:$true] %s4726_s8 }
0x332a   :  { %s6091_s25 = scalar_lea.vmem %s4727_s8, 16  ;;  %p6096_p1 = scmp.lt.s32.totalorder %s4727_s8, %s4727_s8 }
0x332b   :  { %p6092_p0 = scmp.ne.s32.totalorder %s4727_s8, %s6091_s25 }
0x332f   :  { %v2071_v29 = vpop.permute.xlu0 %2070  ;;  %v4565_v45 = vld [vmem:[#allocation4 + $0x38] sm:$0xff] }
0x3330   :  { %v2074_v20 = vsel %vm2073_vm3, %v2071_v29, 0.0  ;;  %5428 = vmatmul.mubr.msk.f32.gmra.mrb[54].mxu1 %vm86_vm0, %v4565_v45 }
0x3331   :  { %2075 = vadd.xlane.f32.xlu1 %v2074_v20 }
0x3333   :  { %v4547_v32 = vpop.permute.xlu0 %4546 }
0x3334   :  { %4549 = vst.msk [vmem:[%s7245_s21] sm:$0xff] %vm86_vm0, %v4547_v32 }
0x3337   :  { %v4554_v9 = vpop.permute.xlu0 %4553 }
0x3338   :  { %4870 = vst.msk [vmem:[%s7245_s21 + $0x8] sm:$0xff] %vm86_vm0, %v4554_v9  ;;  %s6095_s21 = scalar_lea.vmem %s4727_s8, 32 }
0x3339   :  { %p6097_p2 = scmp.lt.s32.totalorder %s6095_s21, %s6091_s25 }
0x333b   :  { %p6098_p3 = por %p6097_p2, %p6096_p1 }
0x333d   :  { %p6099_p4 = pnand %p6098_p3, %p6092_p0 }
0x33be   :  { %v2076_v61 = vpop.xlane.xlu1 %2075 }
0x33bf   :  { %v2077_v50 = vmul.f32 %v4819_v49, %v2076_v61 }
0x33c1   :  { %v2078_v51 = vrot.slane %v2077_v50, 4 }
0x33c3   :  { %v2079_v53 = vadd.f32 %v2078_v51, %v2077_v50 }
0x33c5   :  { %v2080_v56 = vrot.slane %v2079_v53, 2 }
0x33c7   :  { %v2081_v6 = vadd.f32 %v2080_v56, %v2079_v53 }
0x33c9   :  { %v2082_v41 = vrot.slane %v2081_v6, 1 }
0x33cb   :  { %v2083_v17 = vadd.f32 %v2082_v41, %v2081_v6 }
0x33cd   :  { %v2084_v48 = vmul.f32 -0.25, %v2083_v17 }
0x33cf   :  { %2086 = vst.msk [vmem:[#allocation5] sm:$0x1] %vm2085_vm5, %v2084_v48 }
0x33d0   :  { %6102 = shalt.err (!%p6099_p4)
}
0x33d1   :  { %s6103_s17 = scalar_lea.hbm %s7246_s22, 16 }
0x33d2   :  { %p6104_p5 = scmp.ne.s32.totalorder %s7246_s22, %s6103_s17  ;;  %p6107_p6 = scmp.lt.u32.totalorder %s6103_s17, %s7246_s22 }
0x33d4   :  { %p6109_p7 = pnand %p6107_p6, %p6104_p5 }
0x33d6   :  { %6112 = shalt.err (!%p6109_p7)
}
0x33d7   :  { %4729 = dma.vmem_to_hbm [thread:$0]  %s4727_s8, 16, %s7246_s22, [#allocation6]  }
0x3403   :  { %v5429_v33 = vpop.f32.mrb[54].mxu1 }
0x3404   :  { %v4703_v30 = vadd.f32 %v5429_v33, %v7148_v22  ;;  %v4697_v63 = vpop.f32.mrb[55].mxu1 }
0x3405   :  { %v4698_v19 = vadd.f32 %v7148_v22, %v4697_v63 }
0x3406   :  { %4713 = vst [vmem:[%s7243_s19 + $0x38] sm:$0xff] %v4703_v30 }
0x3407   :  { %4712 = vst [vmem:[%s7243_s19 + $0x30] sm:$0xff] %v4698_v19 }
0x3408   :  { %6113 = dma.done.wait [#allocation6], 16  }
0x3409   :  { %6114 = vsyncadd [#allocation6], 4294967280 }
0x340a   :  { %4739 = vsyncpa [#allocation6], 1 }

</bundles_post_ra>
